<compile_context>
chip_gen: v6e
topology: v6e:2x2x1
jax: 0.10.0
libtpu: 0.0.40
codegen_flags: <defaults>
</compile_context>

<pallas_src>
import math
import functools

import jax
import jax.numpy as jnp
import numpy as np
from jax import lax
from jax.experimental import pallas as pl
from jax.experimental.pallas import tpu as pltpu


def _sa_kernel(x_ref, wq_ref, wkT_ref, wvT_ref, wo_ref,
               bq_ref, bk_ref, bv_ref, bo_ref, gamma_ref,
               o_ref, q_sc, ctx_sc, *, head_size, tile_n1):
    D = head_size
    s = pl.program_id(1)
    inv_sqrt_d = 1.0 / math.sqrt(D)

    @pl.when(s == 0)
    def _():
        # Full-Q projection once per batch element; 1/sqrt(D) folded in here so
        # the per-strip score path never touches a (T, N) scale pass.
        x_bf = x_ref[0].astype(jnp.bfloat16)                                  # (C, N)
        q = jnp.dot(wq_ref[...], x_bf, preferred_element_type=jnp.float32)    # (D, N) f32
        q = (q + bq_ref[...]) * inv_sqrt_d
        q_sc[...] = q.astype(q_sc.dtype)                                      # bf16
        ctx_sc[...] = jnp.zeros_like(ctx_sc)

    # Current n1 strip of the input (lane slice at a tile-aligned offset).
    start = pl.multiple_of(s * tile_n1, tile_n1)
    x_strip = x_ref[0, :, pl.ds(start, tile_n1)].astype(jnp.bfloat16)         # (C, T)

    # Per-strip K/V projection, token-major (T, D): contraction depth C on the
    # MXU; no persistent K/V scratch, no big qkv temporary.
    kT = lax.dot_general(x_strip, wkT_ref[...], (((0,), (0,)), ((), ())),
                         preferred_element_type=jnp.float32) + bk_ref[...]    # (T, D)
    vT = lax.dot_general(x_strip, wvT_ref[...], (((0,), (0,)), ((), ())),
                         preferred_element_type=jnp.float32) + bv_ref[...]    # (T, D)

    # scores[n1, n2] = K[:, n1] . Q_scaled[:, n2]  -> canonical (T,D)@(D,N) MXU form.
    scores = jnp.dot(kT.astype(jnp.bfloat16), q_sc[...],
                     preferred_element_type=jnp.float32)                      # (T, N)

    # Exact row softmax over n2 (the strip holds the full row).  The
    # normalization is folded into the (T, D) V strip (EUP reciprocal on a
    # (T, 1) vector + D*T multiply) instead of a (T, N) probs multiply.
    m = jnp.max(scores, axis=-1, keepdims=True)
    e = jnp.exp(scores - m)                                                   # (T, N) f32
    r = pl.reciprocal(jnp.sum(e, axis=-1, keepdims=True), approx=True)        # (T, 1)
    probs = e.astype(jnp.bfloat16)                                            # unnormalized
    v_scaled = (vT * r).astype(jnp.bfloat16)                                  # (T, D)

    # ctx[d, n2] += sum_{n1 in strip} V_scaled[n1, d] * probs[n1, n2]
    ctx_sc[...] += lax.dot_general(v_scaled, probs, (((0,), (0,)), ((), ())),
                                   preferred_element_type=jnp.float32)        # (D, N)

    @pl.when(s == pl.num_programs(1) - 1)
    def _():
        out = jnp.dot(wo_ref[...], ctx_sc[...].astype(jnp.bfloat16),
                      preferred_element_type=jnp.float32) + bo_ref[...]       # (C, N) f32
        # Residual uses the original f32 x (module fidelity), then ReLU.
        y = x_ref[0] + gamma_ref[0, 0] * out
        o_ref[0] = jnp.maximum(y, 0.0)


def _pick_tile(N, tile_n1):
    if tile_n1 is not None and N % tile_n1 == 0 and tile_n1 % 128 == 0:
        return tile_n1
    if N % 256 == 0:
        return 256      # fills the 256-deep v6e/v7x MXU contraction of the ctx matmul
    if N % 128 == 0:
        return 128      # v5e-native contraction depth
    # TODO(synk): tile with an explicit n1 mask for non-128-multiple H*W instead
    # of falling back to a single full-N strip (VMEM-heavy at large N).
    return N


def _vmem_limit_bytes(C, N, D, T):
    # What actually lives in VMEM: double-buffered f32 x and out blocks, the
    # bf16 Q + f32 ctx scratch, and the per-strip score temporaries
    # (scores f32 + exp f32 + bf16 probs ~= 10 B per element of (T, N)).
    est = (2 * C * N * 4) + (2 * C * N * 4) + D * N * 6 + T * N * 10
    est += 4 << 20  # weights / biases / headroom
    # v5e & v6e have 128 MiB physical VMEM (the budget could go toward ~100 MiB
    # there); v7x has 64 MiB per TensorCore, so cap the request at 64 MiB to
    # keep the same tiling valid on every generation.
    return int(min(max(est, 32 << 20), 64 << 20))


def sa_module_pallas(x_nchw, params, *, reduction, tile_n1=None):
    """x_nchw: (B, C, H, W) float32. Returns (B, C, H, W) float32."""
    B, C, H, W = x_nchw.shape
    N = H * W
    D = C // reduction

    T = _pick_tile(N, tile_n1)
    n_strips = N // T

    # Channels on sublanes, tokens on lanes; x stays f32 for the residual add.
    x_tok = x_nchw.reshape(B, C, N)

    wq = params["wq"].astype(jnp.bfloat16)                 # (D, C)
    wkT = params["wk"].T.astype(jnp.bfloat16)              # (C, D)  token-major K strips
    wvT = params["wv"].T.astype(jnp.bfloat16)              # (C, D)  token-major V strips
    wo = params["wo"].astype(jnp.bfloat16)                 # (C, D)
    bq = params["bq"].reshape(D, 1).astype(jnp.float32)    # column broadcast over N
    bk = params["bk"].reshape(1, D).astype(jnp.float32)    # row broadcast over T
    bv = params["bv"].reshape(1, D).astype(jnp.float32)
    bo = params["bo"].reshape(C, 1).astype(jnp.float32)
    gamma = params["gamma"].reshape(1, 1).astype(jnp.float32)   # SMEM scalar

    kernel = functools.partial(_sa_kernel, head_size=D, tile_n1=T)

    out = pl.pallas_call(
        kernel,
        out_shape=jax.ShapeDtypeStruct((B, C, N), jnp.float32),
        grid_spec=pltpu.PrefetchScalarGridSpec(
            num_scalar_prefetch=0,
            grid=(B, n_strips),
            in_specs=[
                pl.BlockSpec((1, C, N), lambda b, s: (b, 0, 0)),            # x (f32)
                pl.BlockSpec((D, C), lambda b, s: (0, 0)),                  # Wq
                pl.BlockSpec((C, D), lambda b, s: (0, 0)),                  # Wk^T
                pl.BlockSpec((C, D), lambda b, s: (0, 0)),                  # Wv^T
                pl.BlockSpec((C, D), lambda b, s: (0, 0)),                  # Wo
                pl.BlockSpec((D, 1), lambda b, s: (0, 0)),                  # b_q
                pl.BlockSpec((1, D), lambda b, s: (0, 0)),                  # b_k
                pl.BlockSpec((1, D), lambda b, s: (0, 0)),                  # b_v
                pl.BlockSpec((C, 1), lambda b, s: (0, 0)),                  # b_o
                pl.BlockSpec(memory_space=pltpu.MemorySpace.SMEM),          # gamma
            ],
            out_specs=pl.BlockSpec((1, C, N), lambda b, s: (b, 0, 0)),
            scratch_shapes=[
                pltpu.VMEM((D, N), jnp.bfloat16),   # Q (scaled), per batch element
                pltpu.VMEM((D, N), jnp.float32),    # ctx accumulator
            ],
        ),
        compiler_params=pltpu.CompilerParams(
            # Batch axis is independent (shards across v7x's 2 TensorCores when
            # B >= 2); the strip axis revisits the same output block/accumulator.
            # TODO(synk): for B == 1 on v7x, split the strip axis across cores
            # with per-core partial ctx and a cross-core add.
            dimension_semantics=("parallel", "arbitrary"),
            vmem_limit_bytes=_vmem_limit_bytes(C, N, D, T),
        ),
    )(x_tok, wq, wkT, wvT, wo, bq, bk, bv, bo, gamma)

    return out.reshape(B, C, H, W)


def sa_module_ref(x_nchw, params, *, reduction):
    """Pure-JAX reference mirroring the kernel's compute order (same bf16
    matmul-input rounding), for verification against the module semantics."""
    B, C, H, W = x_nchw.shape
    N = H * W
    D = C // reduction
    inv_sqrt_d = 1.0 / math.sqrt(D)

    x32 = x_nchw.reshape(B, C, N)
    xb = x32.astype(jnp.bfloat16)

    q = jnp.einsum("dc,bcn->bdn", params["wq"].astype(jnp.bfloat16), xb,
                   preferred_element_type=jnp.float32) + params["bq"][None, :, None]
    q = (q * inv_sqrt_d).astype(jnp.bfloat16)
    kT = jnp.einsum("bcn,cd->bnd", xb, params["wk"].T.astype(jnp.bfloat16),
                    preferred_element_type=jnp.float32) + params["bk"][None, None, :]
    vT = jnp.einsum("bcn,cd->bnd", xb, params["wv"].T.astype(jnp.bfloat16),
                    preferred_element_type=jnp.float32) + params["bv"][None, None, :]

    scores = jnp.einsum("bnd,bdm->bnm", kT.astype(jnp.bfloat16), q,
                        preferred_element_type=jnp.float32)
    m = jnp.max(scores, axis=-1, keepdims=True)
    e = jnp.exp(scores - m)
    r = 1.0 / jnp.sum(e, axis=-1, keepdims=True)

    ctx = jnp.einsum("bnd,bnm->bdm", (vT * r).astype(jnp.bfloat16),
                     e.astype(jnp.bfloat16), preferred_element_type=jnp.float32)
    out = jnp.einsum("cd,bdm->bcm", params["wo"].astype(jnp.bfloat16),
                     ctx.astype(jnp.bfloat16), preferred_element_type=jnp.float32)
    out = out + params["bo"][None, :, None]

    y = jnp.maximum(x32 + params["gamma"][0, 0] * out, 0.0)
    return y.reshape(B, C, H, W)


def init_params(key, channels, reduction):
    D = channels // reduction
    ks = jax.random.split(key, 8)
    scale = 0.1
    return dict(
        # conv-style layout: (out_ch, in_ch)
        wq=scale * jax.random.normal(ks[0], (D, channels), jnp.float32),
        wk=scale * jax.random.normal(ks[1], (D, channels), jnp.float32),
        wv=scale * jax.random.normal(ks[2], (D, channels), jnp.float32),
        wo=scale * jax.random.normal(ks[3], (channels, D), jnp.float32),
        bq=scale * jax.random.normal(ks[4], (D,), jnp.float32),
        bk=scale * jax.random.normal(ks[5], (D,), jnp.float32),
        bv=scale * jax.random.normal(ks[6], (D,), jnp.float32),
        bo=scale * jax.random.normal(ks[7], (channels,), jnp.float32),
        # PyTorch inits gamma to 0.0; use a nonzero value so the attention path
        # actually contributes in this synthetic correctness check.
        gamma=jnp.full((1, 1), 0.5, jnp.float32),
    )


if __name__ == "__main__":
    B, C, H, W = 2, 8, 16, 32     # N = 512 -> two 256-wide n1 strips
    reduction = 2

    key = jax.random.PRNGKey(0)
    kx, kp = jax.random.split(key)
    x = jax.random.normal(kx, (B, C, H, W), jnp.float32)
    params = init_params(kp, C, reduction)

    y = jax.block_until_ready(sa_module_pallas(x, params, reduction=reduction))
    y_ref = jax.block_until_ready(sa_module_ref(x, params, reduction=reduction))
    np.testing.assert_allclose(np.asarray(y), np.asarray(y_ref), atol=3e-3, rtol=3e-3)

    print("KERNEL_OK")
</pallas_src>

<mosaic_0001>
module attributes {stable_mosaic.version = 11 : i64} {
  func.func @_sa_kernel(%arg0: i32, %arg1: i32, %arg2: memref<1x8x512xf32, #tpu.memory_space<vmem>>, %arg3: memref<4x8xbf16, #tpu.memory_space<vmem>>, %arg4: memref<8x4xbf16, #tpu.memory_space<vmem>>, %arg5: memref<8x4xbf16, #tpu.memory_space<vmem>>, %arg6: memref<8x4xbf16, #tpu.memory_space<vmem>>, %arg7: memref<4x1xf32, #tpu.memory_space<vmem>>, %arg8: memref<1x4xf32, #tpu.memory_space<vmem>>, %arg9: memref<1x4xf32, #tpu.memory_space<vmem>>, %arg10: memref<8x1xf32, #tpu.memory_space<vmem>>, %arg11: memref<1x1xf32, #tpu.memory_space<smem>>, %arg12: memref<1x8x512xf32, #tpu.memory_space<vmem>>, %arg13: memref<4x512xbf16, #tpu.memory_space<vmem>>, %arg14: memref<4x512xf32, #tpu.memory_space<vmem>>) attributes {dimension_semantics = [#tpu.dimension_semantics<parallel>, #tpu.dimension_semantics<arbitrary>], iteration_bounds = array<i64: 2, 2>, scalar_prefetch = 0 : i64, scratch_operands = 2 : i64, tpu.core_type = #tpu.core_type<tc>, window_params = [{transform_indices = @transform_0, window_bounds = array<i64: 1, 8, 512>}, {pipeline_mode = #tpu.pipeline_mode<synchronous>, transform_indices = @transform_1, window_bounds = array<i64: 4, 8>}, {pipeline_mode = #tpu.pipeline_mode<synchronous>, transform_indices = @transform_2, window_bounds = array<i64: 8, 4>}, {pipeline_mode = #tpu.pipeline_mode<synchronous>, transform_indices = @transform_3, window_bounds = array<i64: 8, 4>}, {pipeline_mode = #tpu.pipeline_mode<synchronous>, transform_indices = @transform_4, window_bounds = array<i64: 8, 4>}, {pipeline_mode = #tpu.pipeline_mode<synchronous>, transform_indices = @transform_5, window_bounds = array<i64: 4, 1>}, {pipeline_mode = #tpu.pipeline_mode<synchronous>, transform_indices = @transform_6, window_bounds = array<i64: 1, 4>}, {pipeline_mode = #tpu.pipeline_mode<synchronous>, transform_indices = @transform_7, window_bounds = array<i64: 1, 4>}, {pipeline_mode = #tpu.pipeline_mode<synchronous>, transform_indices = @transform_8, window_bounds = array<i64: 8, 1>}, {transform_indices = @transform_9, window_bounds = array<i64: 1, 1>}, {transform_indices = @transform_10, window_bounds = array<i64: 1, 8, 512>}]} {
    %c0_i32 = arith.constant 0 : i32
    %0 = arith.cmpi eq, %arg1, %c0_i32 : i32
    %1 = arith.extui %0 : i1 to i32
    %c0_i32_0 = arith.constant 0 : i32
    %2 = arith.cmpi ne, %1, %c0_i32_0 : i32
    scf.if %2 {
      %c0_22 = arith.constant 0 : index
      %c0_23 = arith.constant 0 : index
      %c0_24 = arith.constant 0 : index
      %41 = vector.load %arg2[%c0_22, %c0_23, %c0_24] : memref<1x8x512xf32, #tpu.memory_space<vmem>>, vector<1x8x512xf32>
      %42 = vector.shape_cast %41 : vector<1x8x512xf32> to vector<8x512xf32>
      %43 = arith.truncf %42 : vector<8x512xf32> to vector<8x512xbf16>
      %c0_25 = arith.constant 0 : index
      %c0_26 = arith.constant 0 : index
      %44 = vector.load %arg3[%c0_25, %c0_26] : memref<4x8xbf16, #tpu.memory_space<vmem>>, vector<4x8xbf16>
      %cst_27 = arith.constant dense<0.000000e+00> : vector<4x512xf32>
      %45 = tpu.matmul %44, %43, %cst_27 {dimension_numbers = #tpu.dot_dimension_numbers<[1], [0], [0], [1], [0, 0, 1, 1], [], []>} : vector<4x8xbf16>, vector<8x512xbf16>, vector<4x512xf32> -> vector<4x512xf32>
      %c0_28 = arith.constant 0 : index
      %c0_29 = arith.constant 0 : index
      %46 = vector.load %arg7[%c0_28, %c0_29] : memref<4x1xf32, #tpu.memory_space<vmem>>, vector<4x1xf32>
      %47 = vector.broadcast %46 : vector<4x1xf32> to vector<4x512xf32>
      %48 = arith.addf %45, %47 : vector<4x512xf32>
      %cst_30 = arith.constant 5.000000e-01 : f32
      %49 = vector.broadcast %cst_30 : f32 to vector<4x512xf32>
      %50 = arith.mulf %48, %49 : vector<4x512xf32>
      %51 = arith.truncf %50 : vector<4x512xf32> to vector<4x512xbf16>
      %c0_31 = arith.constant 0 : index
      %c0_32 = arith.constant 0 : index
      %52 = vector.load %arg13[%c0_31, %c0_32] : memref<4x512xbf16, #tpu.memory_space<vmem>>, vector<4x512xbf16>
      tpu.vector_store %arg13[%c0_31, %c0_32], %51 {strides = array<i32>} : memref<4x512xbf16, #tpu.memory_space<vmem>>, vector<4x512xbf16>,
      %cst_33 = arith.constant 0.000000e+00 : f32
      %53 = vector.broadcast %cst_33 : f32 to vector<4x512xf32>
      %c0_34 = arith.constant 0 : index
      %c0_35 = arith.constant 0 : index
      %54 = vector.load %arg14[%c0_34, %c0_35] : memref<4x512xf32, #tpu.memory_space<vmem>>, vector<4x512xf32>
      tpu.vector_store %arg14[%c0_34, %c0_35], %53 {strides = array<i32>} : memref<4x512xf32, #tpu.memory_space<vmem>>, vector<4x512xf32>,
    } else {
    }
    %c256_i32 = arith.constant 256 : i32
    %3 = arith.muli %arg1, %c256_i32 : i32
    %4 = tpu.assume_multiple %3, 256 : i32
    %c0 = arith.constant 0 : index
    %c0_1 = arith.constant 0 : index
    %5 = arith.index_cast %4 : i32 to index
    %6 = vector.load %arg2[%c0, %c0_1, %5] : memref<1x8x512xf32, #tpu.memory_space<vmem>>, vector<1x8x256xf32>
    %7 = vector.shape_cast %6 : vector<1x8x256xf32> to vector<8x256xf32>
    %8 = arith.truncf %7 : vector<8x256xf32> to vector<8x256xbf16>
    %c0_2 = arith.constant 0 : index
    %c0_3 = arith.constant 0 : index
    %9 = vector.load %arg4[%c0_2, %c0_3] : memref<8x4xbf16, #tpu.memory_space<vmem>>, vector<8x4xbf16>
    %cst = arith.constant dense<0.000000e+00> : vector<256x4xf32>
    %10 = tpu.matmul %8, %9, %cst {dimension_numbers = #tpu.dot_dimension_numbers<[0], [0], [1], [1], [0, 1, 1, 1], [], []>} : vector<8x256xbf16>, vector<8x4xbf16>, vector<256x4xf32> -> vector<256x4xf32>
    %c0_4 = arith.constant 0 : index
    %c0_5 = arith.constant 0 : index
    %11 = vector.load %arg8[%c0_4, %c0_5] : memref<1x4xf32, #tpu.memory_space<vmem>>, vector<1x4xf32>
    %12 = vector.broadcast %11 : vector<1x4xf32> to vector<256x4xf32>
    %13 = arith.addf %10, %12 : vector<256x4xf32>
    %c0_6 = arith.constant 0 : index
    %c0_7 = arith.constant 0 : index
    %14 = vector.load %arg5[%c0_6, %c0_7] : memref<8x4xbf16, #tpu.memory_space<vmem>>, vector<8x4xbf16>
    %cst_8 = arith.constant dense<0.000000e+00> : vector<256x4xf32>
    %15 = tpu.matmul %8, %14, %cst_8 {dimension_numbers = #tpu.dot_dimension_numbers<[0], [0], [1], [1], [0, 1, 1, 1], [], []>} : vector<8x256xbf16>, vector<8x4xbf16>, vector<256x4xf32> -> vector<256x4xf32>
    %c0_9 = arith.constant 0 : index
    %c0_10 = arith.constant 0 : index
    %16 = vector.load %arg9[%c0_9, %c0_10] : memref<1x4xf32, #tpu.memory_space<vmem>>, vector<1x4xf32>
    %17 = vector.broadcast %16 : vector<1x4xf32> to vector<256x4xf32>
    %18 = arith.addf %15, %17 : vector<256x4xf32>
    %19 = arith.truncf %13 : vector<256x4xf32> to vector<256x4xbf16>
    %c0_11 = arith.constant 0 : index
    %c0_12 = arith.constant 0 : index
    %20 = vector.load %arg13[%c0_11, %c0_12] : memref<4x512xbf16, #tpu.memory_space<vmem>>, vector<4x512xbf16>
    %cst_13 = arith.constant dense<0.000000e+00> : vector<256x512xf32>
    %21 = tpu.matmul %19, %20, %cst_13 {dimension_numbers = #tpu.dot_dimension_numbers<[1], [0], [0], [1], [0, 0, 1, 1], [], []>} : vector<256x4xbf16>, vector<4x512xbf16>, vector<256x512xf32> -> vector<256x512xf32>
    %cst_14 = arith.constant dense<0xFF800000> : vector<256xf32>
    %22 = vector.multi_reduction <maximumf>, %21, %cst_14 [1] : vector<256x512xf32> to vector<256xf32>
    %23 = vector.shape_cast %22 : vector<256xf32> to vector<256x1xf32>
    %24 = vector.broadcast %23 : vector<256x1xf32> to vector<256x512xf32>
    %25 = arith.subf %21, %24 : vector<256x512xf32>
    %26 = math.exp %25 : vector<256x512xf32>
    %cst_15 = arith.constant dense<0.000000e+00> : vector<256xf32>
    %27 = vector.multi_reduction <add>, %26, %cst_15 [1] : vector<256x512xf32> to vector<256xf32>
    %28 = vector.shape_cast %27 : vector<256xf32> to vector<256x1xf32>
    %29 = tpu.reciprocal %28 {approx = true} : vector<256x1xf32> -> vector<256x1xf32>
    %30 = arith.truncf %26 : vector<256x512xf32> to vector<256x512xbf16>
    %31 = vector.broadcast %29 : vector<256x1xf32> to vector<256x4xf32>
    %32 = arith.mulf %18, %31 : vector<256x4xf32>
    %33 = arith.truncf %32 : vector<256x4xf32> to vector<256x4xbf16>
    %c0_16 = arith.constant 0 : index
    %c0_17 = arith.constant 0 : index
    %34 = vector.load %arg14[%c0_16, %c0_17] : memref<4x512xf32, #tpu.memory_space<vmem>>, vector<4x512xf32>
    %cst_18 = arith.constant dense<0.000000e+00> : vector<4x512xf32>
    %35 = tpu.matmul %33, %30, %cst_18 {dimension_numbers = #tpu.dot_dimension_numbers<[0], [0], [1], [1], [0, 1, 1, 1], [], []>} : vector<256x4xbf16>, vector<256x512xbf16>, vector<4x512xf32> -> vector<4x512xf32>
    %36 = arith.addf %34, %35 : vector<4x512xf32>
    %c0_19 = arith.constant 0 : index
    %c0_20 = arith.constant 0 : index
    %37 = vector.load %arg14[%c0_19, %c0_20] : memref<4x512xf32, #tpu.memory_space<vmem>>, vector<4x512xf32>
    tpu.vector_store %arg14[%c0_19, %c0_20], %36 {strides = array<i32>} : memref<4x512xf32, #tpu.memory_space<vmem>>, vector<4x512xf32>,
    %c1_i32 = arith.constant 1 : i32
    %38 = arith.cmpi eq, %arg1, %c1_i32 : i32
    %39 = arith.extui %38 : i1 to i32
    %c0_i32_21 = arith.constant 0 : i32
    %40 = arith.cmpi ne, %39, %c0_i32_21 : i32
    scf.if %40 {
      %c0_22 = arith.constant 0 : index
      %c0_23 = arith.constant 0 : index
      %41 = vector.load %arg6[%c0_22, %c0_23] : memref<8x4xbf16, #tpu.memory_space<vmem>>, vector<8x4xbf16>
      %c0_24 = arith.constant 0 : index
      %c0_25 = arith.constant 0 : index
      %42 = vector.load %arg14[%c0_24, %c0_25] : memref<4x512xf32, #tpu.memory_space<vmem>>, vector<4x512xf32>
      %43 = arith.truncf %42 : vector<4x512xf32> to vector<4x512xbf16>
      %cst_26 = arith.constant dense<0.000000e+00> : vector<8x512xf32>
      %44 = tpu.matmul %41, %43, %cst_26 {dimension_numbers = #tpu.dot_dimension_numbers<[1], [0], [0], [1], [0, 0, 1, 1], [], []>} : vector<8x4xbf16>, vector<4x512xbf16>, vector<8x512xf32> -> vector<8x512xf32>
      %c0_27 = arith.constant 0 : index
      %c0_28 = arith.constant 0 : index
      %45 = vector.load %arg10[%c0_27, %c0_28] : memref<8x1xf32, #tpu.memory_space<vmem>>, vector<8x1xf32>
      %46 = vector.broadcast %45 : vector<8x1xf32> to vector<8x512xf32>
      %47 = arith.addf %44, %46 : vector<8x512xf32>
      %c0_29 = arith.constant 0 : index
      %c0_30 = arith.constant 0 : index
      %c0_31 = arith.constant 0 : index
      %48 = vector.load %arg2[%c0_29, %c0_30, %c0_31] : memref<1x8x512xf32, #tpu.memory_space<vmem>>, vector<1x8x512xf32>
      %49 = vector.shape_cast %48 : vector<1x8x512xf32> to vector<8x512xf32>
      %c0_32 = arith.constant 0 : index
      %c0_33 = arith.constant 0 : index
      %50 = memref.load %arg11[%c0_32, %c0_33] : memref<1x1xf32, #tpu.memory_space<smem>>
      %51 = vector.broadcast %50 : f32 to vector<8x512xf32>
      %52 = arith.mulf %51, %47 : vector<8x512xf32>
      %53 = arith.addf %49, %52 : vector<8x512xf32>
      %cst_34 = arith.constant 0.000000e+00 : f32
      %54 = vector.broadcast %cst_34 : f32 to vector<8x512xf32>
      %55 = arith.maximumf %53, %54 : vector<8x512xf32>
      %c0_35 = arith.constant 0 : index
      %c0_36 = arith.constant 0 : index
      %c0_37 = arith.constant 0 : index
      %56 = vector.load %arg12[%c0_35, %c0_36, %c0_37] : memref<1x8x512xf32, #tpu.memory_space<vmem>>, vector<1x8x512xf32>
      %57 = vector.shape_cast %56 : vector<1x8x512xf32> to vector<8x512xf32>
      %58 = vector.shape_cast %55 : vector<8x512xf32> to vector<1x8x512xf32>
      tpu.vector_store %arg12[%c0_35, %c0_36, %c0_37], %58 {strides = array<i32>} : memref<1x8x512xf32, #tpu.memory_space<vmem>>, vector<1x8x512xf32>,
    } else {
    }
    return
  }
  func.func @transform_0(%arg0: i32, %arg1: i32) -> (i32, i32, i32) {
    %c0_i32 = arith.constant 0 : i32
    %c0_i32_0 = arith.constant 0 : i32
    %c0_i32_1 = arith.constant 0 : i32
    return %arg0, %c0_i32, %c0_i32_0 : i32, i32, i32
  }
  func.func @transform_1(%arg0: i32, %arg1: i32) -> (i32, i32) {
    %c0_i32 = arith.constant 0 : i32
    %c0_i32_0 = arith.constant 0 : i32
    %c0_i32_1 = arith.constant 0 : i32
    return %c0_i32, %c0_i32_0 : i32, i32
  }
  func.func @transform_2(%arg0: i32, %arg1: i32) -> (i32, i32) {
    %c0_i32 = arith.constant 0 : i32
    %c0_i32_0 = arith.constant 0 : i32
    %c0_i32_1 = arith.constant 0 : i32
    return %c0_i32, %c0_i32_0 : i32, i32
  }
  func.func @transform_3(%arg0: i32, %arg1: i32) -> (i32, i32) {
    %c0_i32 = arith.constant 0 : i32
    %c0_i32_0 = arith.constant 0 : i32
    %c0_i32_1 = arith.constant 0 : i32
    return %c0_i32, %c0_i32_0 : i32, i32
  }
  func.func @transform_4(%arg0: i32, %arg1: i32) -> (i32, i32) {
    %c0_i32 = arith.constant 0 : i32
    %c0_i32_0 = arith.constant 0 : i32
    %c0_i32_1 = arith.constant 0 : i32
    return %c0_i32, %c0_i32_0 : i32, i32
  }
  func.func @transform_5(%arg0: i32, %arg1: i32) -> (i32, i32) {
    %c0_i32 = arith.constant 0 : i32
    %c0_i32_0 = arith.constant 0 : i32
    %c0_i32_1 = arith.constant 0 : i32
    return %c0_i32, %c0_i32_0 : i32, i32
  }
  func.func @transform_6(%arg0: i32, %arg1: i32) -> (i32, i32) {
    %c0_i32 = arith.constant 0 : i32
    %c0_i32_0 = arith.constant 0 : i32
    %c0_i32_1 = arith.constant 0 : i32
    return %c0_i32, %c0_i32_0 : i32, i32
  }
  func.func @transform_7(%arg0: i32, %arg1: i32) -> (i32, i32) {
    %c0_i32 = arith.constant 0 : i32
    %c0_i32_0 = arith.constant 0 : i32
    %c0_i32_1 = arith.constant 0 : i32
    return %c0_i32, %c0_i32_0 : i32, i32
  }
  func.func @transform_8(%arg0: i32, %arg1: i32) -> (i32, i32) {
    %c0_i32 = arith.constant 0 : i32
    %c0_i32_0 = arith.constant 0 : i32
    %c0_i32_1 = arith.constant 0 : i32
    return %c0_i32, %c0_i32_0 : i32, i32
  }
  func.func @transform_9(%arg0: i32, %arg1: i32) -> (i32, i32) {
    %c0_i32 = arith.constant 0 : i32
    %c0_i32_0 = arith.constant 0 : i32
    %c0_i32_1 = arith.constant 0 : i32
    return %c0_i32, %c0_i32_0 : i32, i32
  }
  func.func @transform_10(%arg0: i32, %arg1: i32) -> (i32, i32, i32) {
    %c0_i32 = arith.constant 0 : i32
    %c0_i32_0 = arith.constant 0 : i32
    %c0_i32_1 = arith.constant 0 : i32
    return %arg0, %c0_i32, %c0_i32_0 : i32, i32, i32
  }
}

</mosaic_0001>

<bundles_post_ra>
// kernel: tpu_custom_call.1
= control target key start
LH: loop header
LB: loop body
LE: loop exit
PB: predicated region body
PF: predicated region fallthrough
CT: control target
= control target key end

     0   :  { %s5110_s0 = inlined_call_operand.hbm [shape: f32[2,8,512], index: 0, kind: input, shape index: {}]   ;;  %s5111_s1 = inlined_call_operand.vmem [shape: bf16[4,8], index: 1, kind: input, shape index: {}]   ;;  %s5112_s2 = inlined_call_operand.vmem [shape: bf16[8,4], index: 2, kind: input, shape index: {}]   ;;  %s5113_s3 = inlined_call_operand.vmem [shape: bf16[8,4], index: 3, kind: input, shape index: {}]   ;;  %s5114_s4 = inlined_call_operand.vmem [shape: bf16[8,4], index: 4, kind: input, shape index: {}]   ;;  %s5115_s5 = inlined_call_operand.vmem [shape: f32[4,1], index: 5, kind: input, shape index: {}]   ;;  %s5116_s6 = inlined_call_operand.vmem [shape: f32[1,4], index: 6, kind: input, shape index: {}]   ;;  %s5117_s7 = inlined_call_operand.vmem [shape: f32[1,4], index: 7, kind: input, shape index: {}]   ;;  %s5118_s8 = inlined_call_operand.vmem [shape: f32[8,1], index: 8, kind: input, shape index: {}]   ;;  %s5119_s9 = inlined_call_operand.<no memory space> [shape: f32[1,1], index: 9, kind: input, shape index: {}]   ;;  %s5120_s10 = inlined_call_operand.hbm [shape: f32[2,8,512], index: 10, kind: output, shape index: {}]  }
   0x1   :  { %5278 = sst [smem:[#allocation156_spill]] %s5120_s10 }
   0x2   :  { %15 = sst [smem:[#allocation4]] %s5119_s9 }
   0x3   :  { %16 = vsyncpa [#allocation6], 0 }
   0x4   :  { %18 = vsyncpa [#allocation6 + $0x1], 0 }
   0x5   :  { %19 = vsyncpa [#allocation7], 0 }
   0x6   :  { %21 = vsyncpa [#allocation7 + $0x1], 0  ;;  %s3480_s15 = smov 0   ;;  %s3482_s16 = smov 0  }
   0x7   :  { %s3484_s17 = smov 0   ;;  %s3486_s18 = smov 0  }
   0x8   :  { %s3488_s19 = smov 0   ;;  %s3490_s20 = smov 0  }
   0x9   :  { %s3492_s21 = smov 0   ;;  %s3494_s22 = smov 0  }
   0xa LB: > { %5279 = sst [smem:[#allocation11_spill]] %s3384_s15  ;;  %s2675_s9 = sadd.s32 4294967295, %s3412_s22   ;;  %s3412_s22 = sphi %s3494_s22, %s27_s22   ;;  %s3408_s21 = sphi %s3492_s21, %s5722_s21   ;;  %s3404_s20 = sphi %s3490_s20, %s5716_s20   ;;  %s3400_s19 = sphi %s3488_s19, %s5721_s19   ;;  %s3396_s18 = sphi %s3486_s18, %s5715_s18   ;;  %s3392_s17 = sphi %s3484_s17, %s5720_s17   ;;  %s3388_s16 = sphi %s3482_s16, %s5719_s16   ;;  %s3384_s15 = sphi %s3480_s15, %s5718_s15  }
   0xb   : > { %5280 = sst [smem:[#allocation12_spill]] %s3404_s20  ;;  %s2676_s23 = sadd.s32 4294967294, %s3412_s22  }
   0xc   : > { %s36_s24 = sadd.s32 1, %s3404_s20  ;;  %s39_s25 = sadd.s32 1, %s3408_s21 }
   0xd   : > { %p37_p0 = scmp.ge.s32.totalorder %s36_s24, 2  ;;  %s46_s26 = sadd.s32 1, %s3392_s17 }
   0xe   : > { %p53_p1 = scmp.ne.s32.totalorder %s3392_s17, %s3388_s16  ;;  %p54_p2 = scmp.eq.s32.totalorder %s3412_s22, 0 }
   0xf   : > { %s5724_s24 = smov (%p37_p0, %s36_s24), 0  ;;  %s5726_s25 = smov (!%p37_p0, %s39_s25), %s3408_s21 }
  0x10   : > { %5281 = sst [smem:[#allocation13_spill]] %s5724_s24  ;;  %p3531_p3 = por %p54_p2, %p53_p1 }
  0x11   : > { %p59_p4 = scmp.ne.s32.totalorder %s3388_s16, %s3384_s15  ;;  %p41_p5 = scmp.ge.s32.totalorder %s5726_s25, 2 }
  0x12   : > { %p60_p6 = scmp.eq.s32.totalorder %s2675_s9, 0  ;;  %p272_p7 = scmp.eq.s32.totalorder %s2675_s9, 3 }
  0x13   : > { %p278_p8 = scmp.eq.s32.totalorder %s2676_s23, 3  ;;  %s5728_s25 = smov (%p41_p5, %s5726_s25), 0 }
  0x14   : > { %5283 = sst [smem:[#allocation14_spill]] %s5728_s25  ;;  %p3539_p9 = por %p60_p6, %p59_p4 }
  0x15   : > { %p3543_p10 = por %p272_p7, %p53_p1  ;;  %s43_s30 = ssub.s32 %s3408_s21, %s5728_s25 }
  0x16   : > { %p3549_p11 = por %p278_p8, %p59_p4  ;;  %p44_p12 = scmp.eq.s32.totalorder %s43_s30, 0 }
  0x17   : > { %p2890_p13 = scmp.lt.s32.totalorder %s3412_s22, 4  ;;  %s325_s12 = sand.u32 1, %s3392_s17  }
  0x18   : > { %s5286_s11 = scalar_select %p3549_p11, 1, 0 }
  0x19   : > { %s3556_s13 = scalar_select %p44_p12, %s3392_s17, %s46_s26  }
  0x1a   : > { %s2679_s14 = sshll.u32 %s325_s12, 5  ;;  %s2772_s9 = sshll.u32 %s3408_s21, 9 }
  0x1b   : > { %s335_s20 = scalar_lea.hbm %s5110_s0, %s2772_s9  ;;  %s329_s15 = scalar_lea.vmem [#allocation5], %s2679_s14 }
  0x1c   : > { %s337_s10 = sshll.u32 %s329_s15, 4  ;;  %p3564_p0 = pnand %p2890_p13, %p3531_p3  ;;  %s338_s10 = int_to_ptr.vmem [resolvable:$true] %s337_s10 }
  0x1d   : > { %p2682_p1 = scmp.ge.s32.totalorder %s3412_s22, 1  ;;  %p342_p2 = scmp.lt.s32.totalorder %s3412_s22, 5 }
  0x1e   : > { %s326_s30 = scalar_lea.sflag [#allocation6], %s325_s12  ;;  %p3290_p4 = pneg %p3564_p0 }
  0x1f   : > { %s3301_s26 = scalar_lea.vmem %s338_s10, 512  ;;  %s3414_s24 = smov [#allocation5]  }
  0x20   : > { %p3302_p5 = scmp.ne.s32.totalorder %s338_s10, %s3301_s26  ;;  %s3306_s9 = sshll.u32 %s3414_s24, 4  ;;  %s3307_s9 = int_to_ptr.vmem [resolvable:$false] %s3306_s9 }
  0x21   : > { %s3308_s15 = scalar_lea.vmem %s3307_s9, 1024  ;;  %p3309_p8 = scmp.lt.s32.totalorder %s338_s10, %s3307_s9 }
  0x22   : > { %p3304_p6 = pnand %p3302_p5, %p3290_p4  ;;  %p3310_p12 = scmp.lt.s32.totalorder %s3308_s15, %s3301_s26 }
  0x24   : > { %p3305_p7 = pneg %p3304_p6  ;;  %p3311_p3 = por %p3310_p12, %p3309_p8 }
  0x26   : > { %p3312_p13 = pnand %p3311_p3, %p3305_p7 }
  0x28   : > { %3315 = shalt.err (!%p3312_p13)
}
  0x29   : > { %2885 = dma.hbm_to_vmem [thread:$0]  (!%p3564_p0), %s335_s20, 512, %s338_s10, %s326_s30  }
  0x2a   : > { %p343_p11 = pnand %p2682_p1, %p342_p2 }
  0x2c   : > { %346 = sbr.rel (%p343_p11) target bundleno = 1752 (0x6d8), region = 60 }
  0x31   : > { %s3579_s27 = sand.u32 1, %s3388_s16  }
  0x32   : > { %s2683_s12 = sshll.u32 %s3579_s27, 5  ;;  %s349_s14 = scalar_lea.sflag [#allocation6], %s3579_s27 }
  0x33   : > { %s3583_s23 = scalar_lea.vmem [#allocation5], %s2683_s12 }
  0x34   : > { %3375 = dma.done.wait (%p3539_p9), %s349_s14, 512  }
  0x35   : > { %3377 = vsyncadd (%p3539_p9), %s349_s14, 4294966784  ;;  %s3589_s10 = scalar_lea.vmem [#allocation8], %s2683_s12  ;;  %p2685_p0 = scmp.ne.s32.totalorder %s3396_s18, 0 }
  0x37   : > { %393 = sbr.rel (%p2685_p0) target bundleno = 274 (0x112), region = 68 }
  0x3c   : > { %v395_v0 = vld [vmem:[%s3583_s23 + $0x8] sm:$0xff]  ;;  %vm413_vm0 = vcmask 1043456   ;;  %v397_v1 = vld [vmem:[%s3583_s23 + $0x18] sm:$0xff]  ;;  %v394_v2 = vld [vmem:[%s3583_s23] sm:$0xff]  ;;  %v3415_v7 = vmov 0   ;;  %vm409_vm1 = vcmask 64512   ;;  %v525_v16 = vlaneseq }
  0x3d   : > { %v399_v3 = vpack.c.bf16 %v395_v0, %v395_v0  ;;  %v401_v4 = vpack.c.bf16 %v397_v1, %v397_v1  ;;  %v398_v5 = vpack.c.bf16 %v394_v2, %v394_v2  ;;  %v396_v6 = vld [vmem:[%s3583_s23 + $0x10] sm:$0xff]  ;;  %458 = vmatprep.mubr.bf16.mxu0 %v3415_v7  ;;  %499 = vmatprep.mubr.bf16.mxu1 %v3415_v7  ;;  %v403_v8 = vld [vmem:[%s5115_s5] sm:$0xf]  ;;  %v3416_v13 = vmov 0.0  }
  0x3e   : > { %v400_v9 = vpack.c.bf16 %v396_v6, %v396_v6  ;;  %2962 = vset.pattern.permute.xlu0 %v3415_v7  ;;  %v402_v12 = vld [vmem:[%s5111_s1] sm:$0x3]  ;;  %539 = vst [vmem:[#allocation3] sm:$0xff] %v3416_v13  ;;  %540 = vst [vmem:[#allocation3 + $0x8] sm:$0xff] %v3416_v13  ;;  %v3417_v14 = vmov 1983009808  }
  0x3f   : > { %2686 = vmatprep.subr.msk.bf16.mxu0 %vm413_vm0, %v399_v3  ;;  %2688 = vmatprep.subr.msk.bf16.mxu1 %vm413_vm0, %v401_v4  ;;  %v415_v10 = vsel %vm413_vm0, %v398_v5, 0  ;;  %v523_v15 = vunpack.c.l.s4 %v3417_v14  ;;  %v526_v22 = vshrl.u32 %v525_v16, 7 }
  0x40   : > { %441 = vmatpush1.bf16.msra.mxu0 %v415_v10  ;;  %v421_v11 = vsel %vm413_vm0, %v400_v9, 0  ;;  %406 = vperm.xlu0 %2962, %v403_v8  }
  0x41   : > { %482 = vmatpush1.bf16.msra.mxu1 %v421_v11  ;;  %v524_v21 = vunpack.c.0.s8 %v523_v15 }
  0x43   : > { %2687 = vmatmul.mubr.msk.bf16.vlgmr.msra.gmra.mxu0 %vm409_vm1, %v402_v12  ;;  %v527_v31 = vsub.s32 %v524_v21, %v526_v22 }
  0x44   : > { %2689 = vmatmul.mubr.msk.bf16.vlgmr.msra.gmra.mxu1 %vm409_vm1, %v402_v12 }
  0xbb   : > { %v407_v17 = vpop.permute.xlu0 %406 }
 0x103   : > { %v460_v18 = vpop.f32.mrf.mxu0 }
 0x104   : > { %v461_v19 = vadd.f32 %v460_v18, %v407_v17  ;;  %v501_v20 = vpop.f32.mrf.mxu1 }
 0x105   : > { %v502_v23 = vadd.f32 %v501_v20, %v407_v17  ;;  %v462_v24 = vpop.f32.mrf.mxu0 }
 0x106   : > { %v463_v25 = vadd.f32 %v462_v24, %v407_v17  ;;  %v503_v26 = vpop.f32.mrf.mxu1  ;;  %v508_v29 = vmul.f32 0.5, %v461_v19 }
 0x107   : > { %v504_v27 = vadd.f32 %v503_v26, %v407_v17  ;;  %v464_v28 = vpop.f32.mrf.mxu0  ;;  %v510_v33 = vmul.f32 0.5, %v502_v23 }
 0x108   : > { %v509_v30 = vmul.f32 0.5, %v463_v25  ;;  %v505_v32 = vpop.f32.mrf.mxu1 }
 0x109   : > { %v511_v34 = vmul.f32 0.5, %v504_v27  ;;  %v465_v35 = vpop.f32.mrf.mxu0 }
 0x10a   : > { %v2690_v36 = vpack.c.bf16 %v509_v30, %v508_v29  ;;  %v506_v37 = vpop.f32.mrf.mxu1 }
 0x10b   : > { %v2691_v38 = vpack.c.bf16 %v511_v34, %v510_v33 }
 0x10c   : > { %v528_v39 = vrot.slane %v2690_v36, %v527_v31 }
 0x10d   : > { %v535_v40 = vrot.slane %v2691_v38, %v527_v31 }
 0x10f   : > { %v536_v41 = vcombine.low %v528_v39, %v535_v40 }
 0x111   : > { %538 = vst [vmem:[#allocation2] sm:$0xff] %v536_v41 }
 0x112 PF: > { %s2692_s26 = sshll.u32 %s3396_s18, 8  ;;  %v550_v42 = vld [vmem:[%s5112_s2] sm:$0xf]  ;;  %vm639_vm2 = vcmask 1043456   ;;  %v998_v51 = vlaneseq  ;;  %v3418_v52 = vmov 1983009808  }
 0x113   : > { %s542_s15 = sshra.s32 %s2692_s26, 7  ;;  %2876 = vmatprep.subr.msk.bf16.mxu0 %vm639_vm2, %v550_v42  ;;  %v804_v43 = vld [vmem:[%s5113_s3] sm:$0xf]  ;;  %v641_v44 = vsel %vm639_vm2, %v550_v42, 0  ;;  %v996_v53 = vunpack.c.l.s4 %v3418_v52  ;;  %vm1060_vm3 = vcmask 1041408   ;;  %vm590_vm4 = vcmask 64512  }
 0x114   : > { %s2693_s20 = sshll.u32 %s542_s15, 3  ;;  %2877 = vmatprep.subr.msk.bf16.mxu1 %vm639_vm2, %v804_v43  ;;  %2809 = vmatpush3.bf16.msra.mxu0 %v641_v44  ;;  %v813_v45 = vsel %vm639_vm2, %v804_v43, 0  ;;  %v999_v54 = vshrl.u32 %v998_v51, 7  ;;  %v3419_v16 = vmov 0   ;;  %v3661_v23 = vld [vmem:[%s5116_s6] ss:$0 sm:$0xff] }
 0x115   : > { %s545_s25 = scalar_lea.vmem %s3583_s23, %s2693_s20 [#allocation5]  ;;  %2843 = vmatpush3.bf16.msra.mxu1 %v813_v45  ;;  %v997_v55 = vunpack.c.0.s8 %v996_v53  ;;  %vm1011_vm5 = vcmask 31744   ;;  %p2762_p9 = scmp.ne.s32.totalorder %s3396_s18, 1 }
 0x116   : > { %v546_v46 = vld [vmem:[%s545_s25] sm:$0xff]  ;;  %v547_v48 = vld [vmem:[%s545_s25 + $0x8] sm:$0xff]  ;;  %s2559_s25 = sld [smem:[#allocation4]] (!%p2762_p9) }
 0x117   : > { %v548_v47 = vpack.c.bf16 %v546_v46, %v546_v46  ;;  %v549_v49 = vpack.c.bf16 %v547_v48, %v547_v48  ;;  %v1000_v57 = vsub.s32 %v997_v55, %v999_v54 }
 0x118   : > { %v992_v50 = vld [vmem:[#allocation2] sm:$0xff] }
 0x119   : > { %558 = vxpose.xlu0.c.b16.start.end [1/1] (short) %v548_v47, 128  ;;  %v994_v56 = vcombine.high %v992_v50, %v992_v50  ;;  %v1001_v58 = vrot.slane %v992_v50, %v1000_v57  ;;  %v3698_v47 = vld [vmem:[%s5117_s7] ss:$0 sm:$0xff] }
 0x11b   : > { %v1008_v59 = vrot.slane %v994_v56, %v1000_v57  ;;  %v1009_v60 = vcombine.high %v1001_v58, %v1001_v58  ;;  %v1062_v63 = vsel %vm1060_vm3, %v1001_v58, 0 }
 0x11d   : > { %v1010_v61 = vcombine.high %v1008_v59, %v1008_v59  ;;  %2728 = vmatprep.subr.msk.bf16.mxu0 %vm1060_vm3, %v1009_v60  ;;  %v1068_v0 = vsel %vm1060_vm3, %v1008_v59, 0 }
 0x11f   : > { %2745 = vmatprep.subr.msk.bf16.mxu1 %vm1060_vm3, %v1010_v61 }
 0x136   : > { %574 = vxpose.xlu0.c.b16.start.end [1/1] (short) %v549_v49, 128 }
 0x17b   : > { %v566_v62 = vpop.trf.xlu0 }
 0x17c   : > { %2810 = vmatprep.mubr.msk.bf16.mxu0 %vm590_vm4, %v566_v62  ;;  %2844 = vmatprep.mubr.msk.bf16.mxu1 %vm590_vm4, %v566_v62 }
 0x17f   : > { %v567_v1 = vpop.trf.xlu0 }
 0x180   : > { %2811 = vmatmul.mubr.msk.bf16.vlgmr.msra.gmra.mxu0 %vm590_vm4, %v567_v1  ;;  %2845 = vmatmul.mubr.msk.bf16.vlgmr.msra.gmra.mxu1 %vm590_vm4, %v567_v1 }
 0x181   : > { %1088 = vmatpush1.bf16.msra.mxu0 %v1062_v63  ;;  %1281 = vmatpush1.bf16.msra.mxu1 %v1068_v0 }
 0x183   : > { %v568_v2 = vpop.trf.xlu0 }
 0x184   : > { %2814 = vmatprep.mubr.msk.bf16.mxu0 %vm590_vm4, %v568_v2  ;;  %2848 = vmatprep.mubr.msk.bf16.mxu1 %vm590_vm4, %v568_v2 }
 0x187   : > { %v569_v3 = vpop.trf.xlu0 }
 0x188   : > { %2815 = vmatmul.mubr.msk.bf16.gmra.mxu0 %vm590_vm4, %v569_v3  ;;  %2849 = vmatmul.mubr.msk.bf16.gmra.mxu1 %vm590_vm4, %v569_v3 }
 0x18b   : > { %v570_v4 = vpop.trf.xlu0 }
 0x18c   : > { %2818 = vmatprep.mubr.msk.bf16.mxu0 %vm590_vm4, %v570_v4  ;;  %2852 = vmatprep.mubr.msk.bf16.mxu1 %vm590_vm4, %v570_v4 }
 0x18f   : > { %v571_v5 = vpop.trf.xlu0 }
 0x190   : > { %2819 = vmatmul.mubr.msk.bf16.gmra.mxu0 %vm590_vm4, %v571_v5  ;;  %2853 = vmatmul.mubr.msk.bf16.gmra.mxu1 %vm590_vm4, %v571_v5 }
 0x193   : > { %v572_v6 = vpop.trf.xlu0 }
 0x194   : > { %2822 = vmatprep.mubr.msk.bf16.mxu0 %vm590_vm4, %v572_v6  ;;  %2856 = vmatprep.mubr.msk.bf16.mxu1 %vm590_vm4, %v572_v6 }
 0x197   : > { %v573_v7 = vpop.trf.xlu0 }
 0x198   : > { %2823 = vmatmul.mubr.msk.bf16.gmra.mxu0 %vm590_vm4, %v573_v7  ;;  %2857 = vmatmul.mubr.msk.bf16.gmra.mxu1 %vm590_vm4, %v573_v7 }
 0x19b   : > { %v582_v8 = vpop.trf.xlu0 }
 0x19c   : > { %2826 = vmatprep.mubr.msk.bf16.mxu0 %vm590_vm4, %v582_v8  ;;  %2860 = vmatprep.mubr.msk.bf16.mxu1 %vm590_vm4, %v582_v8 }
 0x19f   : > { %v583_v9 = vpop.trf.xlu0 }
 0x1a0   : > { %2827 = vmatmul.mubr.msk.bf16.gmra.mxu0 %vm590_vm4, %v583_v9  ;;  %2861 = vmatmul.mubr.msk.bf16.gmra.mxu1 %vm590_vm4, %v583_v9 }
 0x1a3   : > { %v584_v10 = vpop.trf.xlu0 }
 0x1a4   : > { %2830 = vmatprep.mubr.msk.bf16.mxu0 %vm590_vm4, %v584_v10  ;;  %2864 = vmatprep.mubr.msk.bf16.mxu1 %vm590_vm4, %v584_v10 }
 0x1a7   : > { %v585_v11 = vpop.trf.xlu0 }
 0x1a8   : > { %2831 = vmatmul.mubr.msk.bf16.gmra.mxu0 %vm590_vm4, %v585_v11  ;;  %2865 = vmatmul.mubr.msk.bf16.gmra.mxu1 %vm590_vm4, %v585_v11 }
 0x1ab   : > { %v586_v12 = vpop.trf.xlu0 }
 0x1ac   : > { %2834 = vmatprep.mubr.msk.bf16.mxu0 %vm590_vm4, %v586_v12  ;;  %2868 = vmatprep.mubr.msk.bf16.mxu1 %vm590_vm4, %v586_v12 }
 0x1af   : > { %v587_v13 = vpop.trf.xlu0 }
 0x1b0   : > { %2835 = vmatmul.mubr.msk.bf16.gmra.mxu0 %vm590_vm4, %v587_v13  ;;  %2869 = vmatmul.mubr.msk.bf16.gmra.mxu1 %vm590_vm4, %v587_v13 }
 0x1b3   : > { %v588_v14 = vpop.trf.xlu0 }
 0x1b4   : > { %2838 = vmatprep.mubr.msk.bf16.mxu0 %vm590_vm4, %v588_v14  ;;  %2872 = vmatprep.mubr.msk.bf16.mxu1 %vm590_vm4, %v588_v14 }
 0x1b7   : > { %v589_v15 = vpop.trf.xlu0 }
 0x1b8   : > { %2839 = vmatmul.mubr.msk.bf16.gmra.mxu0 %vm590_vm4, %v589_v15  ;;  %2873 = vmatmul.mubr.msk.bf16.gmra.mxu1 %vm590_vm4, %v589_v15 }
 0x1b9   : > { %1105 = vmatprep.mubr.bf16.mxu0 %v3419_v16  ;;  %1298 = vmatprep.mubr.bf16.mxu1 %v3419_v16 }
 0x240   : > { %v2812_v17 = vpop.f32.mrf.mxu0  ;;  %v3652_v18 = vpop.f32.mrf.mxu1 }
 0x241   : > { %5288 = vst [vmem:[#allocation15_spill] sm:$0xff] %v3652_v18  ;;  %v686_v37 = vadd.f32 %v2812_v17, %v3661_v23 }
 0x242   : > { %v677_v19 = vpop.f32.mrf.mxu0  ;;  %v3654_v20 = vpop.f32.mrf.mxu1 }
 0x243   : > { %5289 = vst [vmem:[#allocation16_spill] sm:$0xff] %v3654_v20  ;;  %v678_v26 = vadd.f32 %v3661_v23, %v677_v19 }
 0x244   : > { %v2813_v21 = vpop.f32.mrf.mxu0  ;;  %v3656_v22 = vpop.f32.mrf.mxu1 }
 0x245   : > { %5290 = vst [vmem:[#allocation17_spill] sm:$0xff] %v3656_v22  ;;  %v689_v34 = vadd.f32 %v2813_v21, %v3661_v23 }
 0x246   : > { %v680_v24 = vpop.f32.mrf.mxu0  ;;  %v3663_v25 = vpop.f32.mrf.mxu1 }
 0x247   : > { %5291 = vst [vmem:[#allocation18_spill] sm:$0xff] %v3663_v25  ;;  %v681_v27 = vadd.f32 %v3661_v23, %v680_v24  ;;  %v977_v39 = vpack.c.bf16 %v689_v34, %v686_v37 }
 0x248   : > { %v2816_v28 = vpop.f32.mrf.mxu0  ;;  %v3667_v29 = vpop.f32.mrf.mxu1 }
 0x249   : > { %5292 = vst [vmem:[#allocation19_spill] sm:$0xff] %v3667_v29  ;;  %v976_v30 = vpack.c.bf16 %v681_v27, %v678_v26  ;;  %v702_v54 = vadd.f32 %v2816_v28, %v3661_v23 }
 0x24a   : > { %v693_v31 = vpop.f32.mrf.mxu0  ;;  %v3669_v32 = vpop.f32.mrf.mxu1 }
 0x24b   : > { %5293 = vst [vmem:[#allocation20_spill] sm:$0xff] %v3669_v32  ;;  %2729 = vmatmul.mubr.msk.bf16.vlgmr.msra.gmra.mxu0 %vm1011_vm5, %v976_v30  ;;  %2746 = vmatmul.mubr.msk.bf16.vlgmr.msra.gmra.mxu1 %vm1011_vm5, %v976_v30  ;;  %v694_v43 = vadd.f32 %v3661_v23, %v693_v31 }
 0x24c   : > { %v3673_v33 = vpop.f32.mrf.mxu1  ;;  %1115 = vmatprep.mubr.bf16.mxu0 %v3419_v16  ;;  %1308 = vmatprep.mubr.bf16.mxu1 %v3419_v16  ;;  %v2817_v35 = vpop.f32.mrf.mxu0 }
 0x24d   : > { %5294 = vst [vmem:[#allocation21_spill] sm:$0xff] %v3673_v33  ;;  %v705_v55 = vadd.f32 %v2817_v35, %v3661_v23 }
 0x24e   : > { %v3678_v36 = vpop.f32.mrf.mxu1  ;;  %v696_v40 = vpop.f32.mrf.mxu0 }
 0x24f   : > { %5295 = vst [vmem:[#allocation22_spill] sm:$0xff] %v3678_v36  ;;  %v697_v44 = vadd.f32 %v3661_v23, %v696_v40  ;;  %v979_v60 = vpack.c.bf16 %v705_v55, %v702_v54 }
 0x250   : > { %v3681_v38 = vpop.f32.mrf.mxu1  ;;  %v2820_v45 = vpop.f32.mrf.mxu0 }
 0x251   : > { %5296 = vst [vmem:[#allocation23_spill] sm:$0xff] %v3681_v38  ;;  %v978_v49 = vpack.c.bf16 %v697_v44, %v694_v43  ;;  %v718_v10 = vadd.f32 %v2820_v45, %v3661_v23 }
 0x252   : > { %v3683_v41 = vpop.f32.mrf.mxu1  ;;  %v709_v51 = vpop.f32.mrf.mxu0 }
 0x253   : > { %5297 = vst [vmem:[#allocation24_spill] sm:$0xff] %v3683_v41  ;;  %2730 = vmatmul.mubr.msk.bf16.gmra.mxu0 %vm1011_vm5, %v977_v39  ;;  %2747 = vmatmul.mubr.msk.bf16.gmra.mxu1 %vm1011_vm5, %v977_v39  ;;  %v710_v0 = vadd.f32 %v3661_v23, %v709_v51 }
 0x254   : > { %1125 = vmatprep.mubr.bf16.mxu0 %v3419_v16  ;;  %1318 = vmatprep.mubr.bf16.mxu1 %v3419_v16  ;;  %v3689_v42 = vpop.f32.mrf.mxu1  ;;  %v2821_v57 = vpop.f32.mrf.mxu0 }
 0x255   : > { %5298 = vst [vmem:[#allocation25_spill] sm:$0xff] %v3689_v42  ;;  %v721_v11 = vadd.f32 %v2821_v57, %v3661_v23 }
 0x256   : > { %v3693_v46 = vpop.f32.mrf.mxu1  ;;  %v712_v61 = vpop.f32.mrf.mxu0 }
 0x257   : > { %5299 = vst [vmem:[#allocation26_spill] sm:$0xff] %v3693_v46  ;;  %v713_v1 = vadd.f32 %v3661_v23, %v712_v61  ;;  %v981_v17 = vpack.c.bf16 %v721_v11, %v718_v10 }
 0x258   : > { %v2858_v48 = vpop.f32.mrf.mxu1  ;;  %v2824_v2 = vpop.f32.mrf.mxu0 }
 0x259   : > { %v3701_v50 = vadd.f32 %v2858_v48, %v3698_v47  ;;  %v980_v5 = vpack.c.bf16 %v713_v1, %v710_v0  ;;  %v734_v51 = vadd.f32 %v2824_v2, %v3661_v23 }
 0x25a   : > { %v3703_v52 = vpop.f32.mrf.mxu1  ;;  %v725_v7 = vpop.f32.mrf.mxu0 }
 0x25b   : > { %5300 = vst [vmem:[#allocation27_spill] sm:$0xff] %v3701_v50  ;;  %5301 = vst [vmem:[#allocation28_spill] sm:$0xff] %v3703_v52  ;;  %2731 = vmatmul.mubr.msk.bf16.gmra.mxu0 %vm1011_vm5, %v978_v49  ;;  %2748 = vmatmul.mubr.msk.bf16.gmra.mxu1 %vm1011_vm5, %v978_v49  ;;  %v726_v28 = vadd.f32 %v3661_v23, %v725_v7 }
 0x25c   : > { %1135 = vmatprep.mubr.bf16.mxu0 %v3419_v16  ;;  %1328 = vmatprep.mubr.bf16.mxu1 %v3419_v16  ;;  %v2859_v53 = vpop.f32.mrf.mxu1  ;;  %v2825_v13 = vpop.f32.mrf.mxu0 }
 0x25d   : > { %v3712_v56 = vadd.f32 %v2859_v53, %v3698_v47  ;;  %v737_v53 = vadd.f32 %v2825_v13, %v3661_v23 }
 0x25e   : > { %v3714_v58 = vpop.f32.mrf.mxu1  ;;  %v728_v21 = vpop.f32.mrf.mxu0 }
 0x25f   : > { %5302 = vst [vmem:[#allocation29_spill] sm:$0xff] %v3712_v56  ;;  %5303 = vst [vmem:[#allocation30_spill] sm:$0xff] %v3714_v58  ;;  %v729_v30 = vadd.f32 %v3661_v23, %v728_v21  ;;  %v983_v57 = vpack.c.bf16 %v737_v53, %v734_v51 }
 0x260   : > { %v3716_v59 = vpop.f32.mrf.mxu1  ;;  %v2828_v34 = vpop.f32.mrf.mxu0 }
 0x261   : > { %5304 = vst [vmem:[#allocation31_spill] sm:$0xff] %v3716_v59  ;;  %v982_v40 = vpack.c.bf16 %v729_v30, %v726_v28 }
 0x262   : > { %v3718_v62 = vpop.f32.mrf.mxu1  ;;  %v741_v44 = vpop.f32.mrf.mxu0 }
 0x263   : > { %5305 = vst [vmem:[#allocation32_spill] sm:$0xff] %v3718_v62  ;;  %2732 = vmatmul.mubr.msk.bf16.gmra.mxu0 %vm1011_vm5, %v979_v60  ;;  %2749 = vmatmul.mubr.msk.bf16.gmra.mxu1 %vm1011_vm5, %v979_v60  ;;  %v742_v61 = vadd.f32 %v3661_v23, %v741_v44 }
 0x264   : > { %1145 = vmatprep.mubr.bf16.mxu0 %v3419_v16  ;;  %1338 = vmatprep.mubr.bf16.mxu1 %v3419_v16  ;;  %v3724_v63 = vpop.f32.mrf.mxu1  ;;  %v2829_v55 = vpop.f32.mrf.mxu0 }
 0x265   : > { %5306 = vst [vmem:[#allocation33_spill] sm:$0xff] %v3724_v63 }
 0x266   : > { %v3728_v3 = vpop.f32.mrf.mxu1  ;;  %v744_v60 = vpop.f32.mrf.mxu0 }
 0x267   : > { %5307 = vst [vmem:[#allocation34_spill] sm:$0xff] %v3728_v3  ;;  %v745_v0 = vadd.f32 %v3661_v23, %v744_v60 }
 0x268   : > { %v2866_v4 = vpop.f32.mrf.mxu1  ;;  %v2832_v1 = vpop.f32.mrf.mxu0 }
 0x269   : > { %v3731_v6 = vadd.f32 %v2866_v4, %v3698_v47  ;;  %v984_v2 = vpack.c.bf16 %v745_v0, %v742_v61 }
 0x26a   : > { %v3733_v8 = vpop.f32.mrf.mxu1  ;;  %v757_v4 = vpop.f32.mrf.mxu0 }
 0x26b   : > { %5308 = vst [vmem:[#allocation35_spill] sm:$0xff] %v3731_v6  ;;  %5309 = vst [vmem:[#allocation36_spill] sm:$0xff] %v3733_v8  ;;  %2733 = vmatmul.mubr.msk.bf16.gmra.mxu0 %vm1011_vm5, %v980_v5  ;;  %2750 = vmatmul.mubr.msk.bf16.gmra.mxu1 %vm1011_vm5, %v980_v5  ;;  %v753_v5 = vadd.f32 %v2829_v55, %v3661_v23  ;;  %v758_v11 = vadd.f32 %v3661_v23, %v757_v4 }
 0x26c   : > { %1155 = vmatprep.mubr.bf16.mxu0 %v3419_v16  ;;  %1348 = vmatprep.mubr.bf16.mxu1 %v3419_v16  ;;  %v2867_v9 = vpop.f32.mrf.mxu1  ;;  %v2833_v7 = vpop.f32.mrf.mxu0 }
 0x26d   : > { %v3742_v12 = vadd.f32 %v2867_v9, %v3698_v47 }
 0x26e   : > { %v3744_v14 = vpop.f32.mrf.mxu1  ;;  %v760_v10 = vpop.f32.mrf.mxu0 }
 0x26f   : > { %5310 = vst [vmem:[#allocation37_spill] sm:$0xff] %v3742_v12  ;;  %5311 = vst [vmem:[#allocation38_spill] sm:$0xff] %v3744_v14  ;;  %v761_v13 = vadd.f32 %v3661_v23, %v760_v10 }
 0x270   : > { %v2870_v15 = vpop.f32.mrf.mxu1 }
 0x271   : > { %v3747_v19 = vadd.f32 %v2870_v15, %v3698_v47  ;;  %v2836_v15 = vpop.f32.mrf.mxu0 }
 0x272   : > { %v945_v24 = vpop.f32.mrf.mxu1 }
 0x273   : > { %5312 = vst [vmem:[#allocation39_spill] sm:$0xff] %v3747_v19  ;;  %2734 = vmatmul.mubr.msk.bf16.gmra.mxu0 %vm1011_vm5, %v981_v17  ;;  %2751 = vmatmul.mubr.msk.bf16.gmra.mxu1 %vm1011_vm5, %v981_v17  ;;  %v3752_v26 = vadd.f32 %v3698_v47, %v945_v24  ;;  %v986_v17 = vpack.c.bf16 %v761_v13, %v758_v11  ;;  %v773_v21 = vpop.f32.mrf.mxu0 }
 0x274   : > { %1165 = vmatprep.mubr.bf16.mxu0 %v3419_v16  ;;  %1358 = vmatprep.mubr.bf16.mxu1 %v3419_v16  ;;  %v2871_v27 = vpop.f32.mrf.mxu1  ;;  %v766_v24 = vadd.f32 %v2832_v1, %v3661_v23 }
 0x275   : > { %5313 = vst [vmem:[#allocation40_spill] sm:$0xff] %v3752_v26  ;;  %v3759_v31 = vadd.f32 %v2871_v27, %v3698_v47  ;;  %v769_v27 = vadd.f32 %v2833_v7, %v3661_v23  ;;  %v2837_v28 = vpop.f32.mrf.mxu0 }
 0x276   : > { %v948_v35 = vpop.f32.mrf.mxu1  ;;  %v785_v51 = vadd.f32 %v2837_v28, %v3661_v23 }
 0x277   : > { %5314 = vst [vmem:[#allocation41_spill] sm:$0xff] %v3759_v31  ;;  %v3762_v37 = vadd.f32 %v3698_v47, %v948_v35  ;;  %v987_v30 = vpack.c.bf16 %v769_v27, %v766_v24  ;;  %v774_v35 = vadd.f32 %v3661_v23, %v773_v21 }
 0x278   : > { %v2874_v39 = vpop.f32.mrf.mxu1 }
 0x279   : > { %5315 = vst [vmem:[#allocation42_spill] sm:$0xff] %v3762_v37  ;;  %v3765_v43 = vadd.f32 %v2874_v39, %v3698_v47 }
 0x27a   : > { %v961_v45 = vpop.f32.mrf.mxu1 }
 0x27b   : > { %5316 = vst [vmem:[#allocation43_spill] sm:$0xff] %v3765_v43  ;;  %2735 = vmatmul.mubr.msk.bf16.gmra.mxu0 %vm1011_vm5, %v982_v40  ;;  %2752 = vmatmul.mubr.msk.bf16.gmra.mxu1 %vm1011_vm5, %v982_v40  ;;  %v3770_v48 = vadd.f32 %v3698_v47, %v961_v45 }
 0x27c   : > { %1175 = vmatprep.mubr.bf16.mxu0 %v3419_v16  ;;  %1368 = vmatprep.mubr.bf16.mxu1 %v3419_v16  ;;  %v2875_v49 = vpop.f32.mrf.mxu1 }
 0x27d   : > { %5317 = vst [vmem:[#allocation44_spill] sm:$0xff] %v3770_v48  ;;  %v3777_v54 = vadd.f32 %v2875_v49, %v3698_v47  ;;  %v750_v47 = vadd.f32 %v2828_v34, %v3661_v23  ;;  %v776_v34 = vpop.f32.mrf.mxu0  ;;  %v782_v49 = vadd.f32 %v2836_v15, %v3661_v23 }
 0x27e   : > { %v777_v39 = vadd.f32 %v3661_v23, %v776_v34 }
 0x27f   : > { %5318 = vst [vmem:[#allocation45_spill] sm:$0xff] %v3777_v54  ;;  %v985_v9 = vpack.c.bf16 %v753_v5, %v750_v47  ;;  %v2840_v40 = vpop.f32.mrf.mxu0  ;;  %v989_v55 = vpack.c.bf16 %v785_v51, %v782_v49  ;;  %v3829_v47 = vpop.f32.mrf.mxu1 }
 0x280   : > { %v988_v44 = vpack.c.bf16 %v777_v39, %v774_v35  ;;  %v798_v1 = vadd.f32 %v2840_v40, %v3661_v23  ;;  %5319 = vst [vmem:[#allocation46_spill] sm:$0xff] %v3829_v47 }
 0x281   : > { %v789_v45 = vpop.f32.mrf.mxu0 }
 0x282   : > { %v790_v60 = vadd.f32 %v3661_v23, %v789_v45 }
 0x283   : > { %2736 = vmatmul.mubr.msk.bf16.gmra.mxu0 %vm1011_vm5, %v983_v57  ;;  %2753 = vmatmul.mubr.msk.bf16.gmra.mxu1 %vm1011_vm5, %v983_v57  ;;  %v2841_v53 = vpop.f32.mrf.mxu0 }
 0x284   : > { %1185 = vmatprep.mubr.bf16.mxu0 %v3419_v16  ;;  %1378 = vmatprep.mubr.bf16.mxu1 %v3419_v16 }
 0x285   : > { %v792_v57 = vpop.f32.mrf.mxu0 }
 0x286   : > { %v793_v61 = vadd.f32 %v3661_v23, %v792_v57 }
 0x288   : > { %v990_v0 = vpack.c.bf16 %v793_v61, %v790_v60 }
 0x28b   : > { %2737 = vmatmul.mubr.msk.bf16.gmra.mxu0 %vm1011_vm5, %v984_v2  ;;  %2754 = vmatmul.mubr.msk.bf16.gmra.mxu1 %vm1011_vm5, %v984_v2  ;;  %v801_v2 = vadd.f32 %v2841_v53, %v3661_v23 }
 0x28c   : > { %1195 = vmatprep.mubr.bf16.mxu0 %v3419_v16  ;;  %1388 = vmatprep.mubr.bf16.mxu1 %v3419_v16 }
 0x28d   : > { %v991_v4 = vpack.c.bf16 %v801_v2, %v798_v1 }
 0x293   : > { %2738 = vmatmul.mubr.msk.bf16.gmra.mxu0 %vm1011_vm5, %v985_v9  ;;  %2755 = vmatmul.mubr.msk.bf16.gmra.mxu1 %vm1011_vm5, %v985_v9 }
 0x294   : > { %1205 = vmatprep.mubr.bf16.mxu0 %v3419_v16  ;;  %1398 = vmatprep.mubr.bf16.mxu1 %v3419_v16 }
 0x29b   : > { %2739 = vmatmul.mubr.msk.bf16.gmra.mxu0 %vm1011_vm5, %v986_v17  ;;  %2756 = vmatmul.mubr.msk.bf16.gmra.mxu1 %vm1011_vm5, %v986_v17 }
 0x29c   : > { %1215 = vmatprep.mubr.bf16.mxu0 %v3419_v16  ;;  %1408 = vmatprep.mubr.bf16.mxu1 %v3419_v16 }
 0x2a3   : > { %2740 = vmatmul.mubr.msk.bf16.gmra.mxu0 %vm1011_vm5, %v987_v30  ;;  %2757 = vmatmul.mubr.msk.bf16.gmra.mxu1 %vm1011_vm5, %v987_v30 }
 0x2a4   : > { %1225 = vmatprep.mubr.bf16.mxu0 %v3419_v16  ;;  %1418 = vmatprep.mubr.bf16.mxu1 %v3419_v16 }
 0x2ab   : > { %2741 = vmatmul.mubr.msk.bf16.gmra.mxu0 %vm1011_vm5, %v988_v44  ;;  %2758 = vmatmul.mubr.msk.bf16.gmra.mxu1 %vm1011_vm5, %v988_v44 }
 0x2ac   : > { %1235 = vmatprep.mubr.bf16.mxu0 %v3419_v16  ;;  %1428 = vmatprep.mubr.bf16.mxu1 %v3419_v16 }
 0x2b3   : > { %2742 = vmatmul.mubr.msk.bf16.gmra.mxu0 %vm1011_vm5, %v989_v55  ;;  %2759 = vmatmul.mubr.msk.bf16.gmra.mxu1 %vm1011_vm5, %v989_v55 }
 0x2b4   : > { %1245 = vmatprep.mubr.bf16.mxu0 %v3419_v16  ;;  %1438 = vmatprep.mubr.bf16.mxu1 %v3419_v16 }
 0x2bb   : > { %2743 = vmatmul.mubr.msk.bf16.gmra.mxu0 %vm1011_vm5, %v990_v0  ;;  %2760 = vmatmul.mubr.msk.bf16.gmra.mxu1 %vm1011_vm5, %v990_v0 }
 0x2bc   : > { %1255 = vmatprep.mubr.bf16.mxu0 %v3419_v16  ;;  %1448 = vmatprep.mubr.bf16.mxu1 %v3419_v16 }
 0x2c3   : > { %2744 = vmatmul.mubr.msk.bf16.gmra.mxu0 %vm1011_vm5, %v991_v4  ;;  %2761 = vmatmul.mubr.msk.bf16.gmra.mxu1 %vm1011_vm5, %v991_v4 }
 0x30b   : > { %v3831_v5 = vpop.f32.mrf.mxu0  ;;  %v3833_v7 = vpop.f32.mrf.mxu1 }
 0x30d   : > { %v3835_v9 = vpop.f32.mrf.mxu0  ;;  %v3837_v10 = vpop.f32.mrf.mxu1 }
 0x30e   : > { %v1459_v16 = vmax.f32 %v3831_v5, %v3835_v9 }
 0x30f   : > { %v3841_v11 = vpop.f32.mrf.mxu0  ;;  %v3843_v23 = vpop.f32.mrf.mxu1 }
 0x310   : > { %v1460_v13 = vmax.f32 %v1459_v16, %v3833_v7 }
 0x311   : > { %v3846_v15 = vpop.f32.mrf.mxu0  ;;  %v3848_v17 = vpop.f32.mrf.mxu1 }
 0x312   : > { %v1464_v21 = vmax.f32 %v3841_v11, %v3846_v15  ;;  %v1461_v24 = vmax.f32 %v1460_v13, %v3837_v10 }
 0x313   : > { %v3853_v27 = vpop.f32.mrf.mxu0  ;;  %v3855_v28 = vpop.f32.mrf.mxu1 }
 0x314   : > { %1462 = vmax.xlane.f32.xlu1 %v1461_v24  ;;  %v1465_v30 = vmax.f32 %v1464_v21, %v3843_v23 }
 0x315   : > { %v3858_v34 = vpop.f32.mrf.mxu0  ;;  %v3860_v35 = vpop.f32.mrf.mxu1 }
 0x316   : > { %v1469_v39 = vmax.f32 %v3853_v27, %v3858_v34  ;;  %v1466_v40 = vmax.f32 %v1465_v30, %v3848_v17 }
 0x317   : > { %v3865_v44 = vpop.f32.mrf.mxu0  ;;  %v3867_v45 = vpop.f32.mrf.mxu1 }
 0x318   : > { %1467 = vmax.xlane.f32.xlu1 %v1466_v40  ;;  %v1470_v49 = vmax.f32 %v1469_v39, %v3855_v28 }
 0x319   : > { %v3870_v51 = vpop.f32.mrf.mxu0  ;;  %v3872_v53 = vpop.f32.mrf.mxu1 }
 0x31a   : > { %v1474_v55 = vmax.f32 %v3865_v44, %v3870_v51  ;;  %v1471_v57 = vmax.f32 %v1470_v49, %v3860_v35 }
 0x31b   : > { %v3877_v60 = vpop.f32.mrf.mxu0  ;;  %v3879_v61 = vpop.f32.mrf.mxu1 }
 0x31c   : > { %1472 = vmax.xlane.f32.xlu1 %v1471_v57  ;;  %v1475_v0 = vmax.f32 %v1474_v55, %v3867_v45 }
 0x31d   : > { %v3882_v1 = vpop.f32.mrf.mxu0  ;;  %v3884_v2 = vpop.f32.mrf.mxu1 }
 0x31e   : > { %v1479_v4 = vmax.f32 %v3877_v60, %v3882_v1  ;;  %v1476_v16 = vmax.f32 %v1475_v0, %v3872_v53 }
 0x31f   : > { %v3889_v13 = vpop.f32.mrf.mxu0  ;;  %v3891_v21 = vpop.f32.mrf.mxu1 }
 0x320   : > { %1477 = vmax.xlane.f32.xlu1 %v1476_v16  ;;  %v1480_v24 = vmax.f32 %v1479_v4, %v3879_v61 }
 0x321   : > { %v3894_v30 = vpop.f32.mrf.mxu0  ;;  %v3896_v39 = vpop.f32.mrf.mxu1 }
 0x322   : > { %v1484_v40 = vmax.f32 %v3889_v13, %v3894_v30  ;;  %v1481_v49 = vmax.f32 %v1480_v24, %v3884_v2 }
 0x323   : > { %v3901_v55 = vpop.f32.mrf.mxu0  ;;  %v3903_v57 = vpop.f32.mrf.mxu1 }
 0x324   : > { %1482 = vmax.xlane.f32.xlu1 %v1481_v49  ;;  %v1485_v0 = vmax.f32 %v1484_v40, %v3891_v21 }
 0x325   : > { %v3906_v56 = vpop.f32.mrf.mxu0  ;;  %v3908_v16 = vpop.f32.mrf.mxu1 }
 0x326   : > { %v1489_v4 = vmax.f32 %v3901_v55, %v3906_v56  ;;  %v1486_v50 = vmax.f32 %v1485_v0, %v3896_v39 }
 0x327   : > { %v3913_v54 = vpop.f32.mrf.mxu0  ;;  %v3915_v43 = vpop.f32.mrf.mxu1 }
 0x328   : > { %1487 = vmax.xlane.f32.xlu1 %v1486_v50  ;;  %v1490_v24 = vmax.f32 %v1489_v4, %v3903_v57 }
 0x329   : > { %v3918_v48 = vpop.f32.mrf.mxu0  ;;  %v3920_v49 = vpop.f32.mrf.mxu1 }
 0x32a   : > { %v1494_v40 = vmax.f32 %v3913_v54, %v3918_v48  ;;  %v1491_v47 = vmax.f32 %v1490_v24, %v3908_v16 }
 0x32b   : > { %v3925_v31 = vpop.f32.mrf.mxu0  ;;  %v3927_v19 = vpop.f32.mrf.mxu1 }
 0x32c   : > { %1492 = vmax.xlane.f32.xlu1 %v1491_v47  ;;  %v1495_v0 = vmax.f32 %v1494_v40, %v3915_v43 }
 0x32d   : > { %v3930_v37 = vpop.f32.mrf.mxu0  ;;  %v3932_v50 = vpop.f32.mrf.mxu1 }
 0x32e   : > { %v1499_v4 = vmax.f32 %v3925_v31, %v3930_v37  ;;  %v1496_v26 = vmax.f32 %v1495_v0, %v3920_v49 }
 0x32f   : > { %v3937_v12 = vpop.f32.mrf.mxu0  ;;  %v3939_v6 = vpop.f32.mrf.mxu1 }
 0x330   : > { %1497 = vmax.xlane.f32.xlu1 %v1496_v26  ;;  %v1500_v24 = vmax.f32 %v1499_v4, %v3927_v19 }
 0x331   : > { %v3942_v14 = vpop.f32.mrf.mxu0  ;;  %v3944_v47 = vpop.f32.mrf.mxu1 }
 0x332   : > { %v1504_v40 = vmax.f32 %v3937_v12, %v3942_v14  ;;  %v1501_v8 = vmax.f32 %v1500_v24, %v3932_v50 }
 0x333   : > { %v3949_v63 = vpop.f32.mrf.mxu0  ;;  %v3951_v59 = vpop.f32.mrf.mxu1 }
 0x334   : > { %5320 = vst [vmem:[#allocation47_spill] sm:$0xff] %v3949_v63  ;;  %5321 = vst [vmem:[#allocation48_spill] sm:$0xff] %v3951_v59  ;;  %1502 = vmax.xlane.f32.xlu1 %v1501_v8  ;;  %v1505_v0 = vmax.f32 %v1504_v40, %v3939_v6 }
 0x335   : > { %v3954_v3 = vpop.f32.mrf.mxu0  ;;  %v3956_v26 = vpop.f32.mrf.mxu1 }
 0x336   : > { %5322 = vst [vmem:[#allocation49_spill] sm:$0xff] %v3954_v3  ;;  %5323 = vst [vmem:[#allocation50_spill] sm:$0xff] %v3956_v26  ;;  %v1509_v4 = vmax.f32 %v3949_v63, %v3954_v3  ;;  %v1506_v62 = vmax.f32 %v1505_v0, %v3944_v47 }
 0x337   : > { %v3961_v58 = vpop.f32.mrf.mxu0  ;;  %v3963_v52 = vpop.f32.mrf.mxu1 }
 0x338   : > { %5324 = vst [vmem:[#allocation51_spill] sm:$0xff] %v3961_v58  ;;  %5325 = vst [vmem:[#allocation52_spill] sm:$0xff] %v3963_v52  ;;  %1507 = vmax.xlane.f32.xlu1 %v1506_v62  ;;  %v1510_v24 = vmax.f32 %v1509_v4, %v3951_v59 }
 0x339   : > { %v3966_v42 = vpop.f32.mrf.mxu0  ;;  %v3968_v8 = vpop.f32.mrf.mxu1 }
 0x33a   : > { %5326 = vst [vmem:[#allocation53_spill] sm:$0xff] %v3966_v42  ;;  %5327 = vst [vmem:[#allocation54_spill] sm:$0xff] %v3968_v8  ;;  %v1514_v40 = vmax.f32 %v3961_v58, %v3966_v42  ;;  %v1511_v38 = vmax.f32 %v1510_v24, %v3956_v26 }
 0x33b   : > { %v3973_v46 = vpop.f32.mrf.mxu0  ;;  %v3975_v41 = vpop.f32.mrf.mxu1 }
 0x33c   : > { %5328 = vst [vmem:[#allocation55_spill] sm:$0xff] %v3973_v46  ;;  %5329 = vst [vmem:[#allocation56_spill] sm:$0xff] %v3975_v41  ;;  %1512 = vmax.xlane.f32.xlu0 %v1511_v38  ;;  %v1515_v0 = vmax.f32 %v1514_v40, %v3963_v52 }
 0x33d   : > { %v3978_v33 = vpop.f32.mrf.mxu0  ;;  %v3980_v62 = vpop.f32.mrf.mxu1 }
 0x33e   : > { %5330 = vst [vmem:[#allocation57_spill] sm:$0xff] %v3978_v33  ;;  %5331 = vst [vmem:[#allocation58_spill] sm:$0xff] %v3980_v62  ;;  %v1519_v4 = vmax.f32 %v3973_v46, %v3978_v33  ;;  %v1516_v29 = vmax.f32 %v1515_v0, %v3968_v8 }
 0x33f   : > { %v3985_v36 = vpop.f32.mrf.mxu0  ;;  %v3987_v32 = vpop.f32.mrf.mxu1 }
 0x340   : > { %5332 = vst [vmem:[#allocation59_spill] sm:$0xff] %v3985_v36  ;;  %5333 = vst [vmem:[#allocation60_spill] sm:$0xff] %v3987_v32  ;;  %1517 = vmax.xlane.f32.xlu1 %v1516_v29  ;;  %v1520_v24 = vmax.f32 %v1519_v4, %v3975_v41 }
 0x341   : > { %v3990_v22 = vpop.f32.mrf.mxu0  ;;  %v3992_v38 = vpop.f32.mrf.mxu1 }
 0x342   : > { %5334 = vst [vmem:[#allocation61_spill] sm:$0xff] %v3990_v22  ;;  %5335 = vst [vmem:[#allocation62_spill] sm:$0xff] %v3992_v38  ;;  %v1524_v40 = vmax.f32 %v3985_v36, %v3990_v22  ;;  %v1521_v18 = vmax.f32 %v1520_v24, %v3980_v62 }
 0x343   : > { %v3997_v25 = vpop.f32.mrf.mxu0  ;;  %v3999_v20 = vpop.f32.mrf.mxu1 }
 0x344   : > { %5336 = vst [vmem:[#allocation63_spill] sm:$0xff] %v3997_v25  ;;  %1522 = vmax.xlane.f32.xlu0 %v1521_v18  ;;  %v1525_v0 = vmax.f32 %v1524_v40, %v3987_v32 }
 0x345   : > { %v4002_v33 = vpop.f32.mrf.mxu0  ;;  %v4004_v29 = vpop.f32.mrf.mxu1 }
 0x346   : > { %5337 = vst [vmem:[#allocation64_spill] sm:$0xff] %v4002_v33  ;;  %v1526_v4 = vmax.f32 %v1525_v0, %v3992_v38 }
 0x347   : > { %v4007_v41 = vpop.f32.mrf.mxu0  ;;  %v4009_v46 = vpop.f32.mrf.mxu1 }
 0x348   : > { %5338 = vst [vmem:[#allocation65_spill] sm:$0xff] %v4007_v41  ;;  %1527 = vmax.xlane.f32.xlu1 %v1526_v4 }
 0x349   : > { %v4011_v22 = vpop.f32.mrf.mxu0  ;;  %v4013_v24 = vpop.f32.mrf.mxu1 }
 0x34a   : > { %5339 = vst [vmem:[#allocation66_spill] sm:$0xff] %v4011_v22 }
 0x34b   : > { %v4015_v36 = vpop.f32.mrf.mxu0  ;;  %v4017_v18 = vpop.f32.mrf.mxu1 }
 0x34c   : > { %5340 = vst [vmem:[#allocation67_spill] sm:$0xff] %v4015_v36  ;;  %5341 = vst [vmem:[#allocation68_spill] sm:$0xff] %v4017_v18 }
 0x34d   : > { %v4019_v40 = vpop.f32.mrf.mxu0  ;;  %v4021_v32 = vpop.f32.mrf.mxu1 }
 0x34e   : > { %5342 = vst [vmem:[#allocation69_spill] sm:$0xff] %v4019_v40  ;;  %5343 = vst [vmem:[#allocation70_spill] sm:$0xff] %v4021_v32  ;;  %v1539_v0 = vmax.f32 %v4015_v36, %v4019_v40 }
 0x34f   : > { %v4025_v38 = vpop.f32.mrf.mxu0  ;;  %v4027_v62 = vpop.f32.mrf.mxu1 }
 0x350   : > { %5344 = vst [vmem:[#allocation71_spill] sm:$0xff] %v4025_v38  ;;  %5345 = vst [vmem:[#allocation72_spill] sm:$0xff] %v4027_v62  ;;  %v1540_v4 = vmax.f32 %v1539_v0, %v4017_v18 }
 0x351   : > { %v4030_v8 = vpop.f32.mrf.mxu0  ;;  %v4032_v52 = vpop.f32.mrf.mxu1 }
 0x352   : > { %5346 = vst [vmem:[#allocation73_spill] sm:$0xff] %v4030_v8  ;;  %5347 = vst [vmem:[#allocation74_spill] sm:$0xff] %v4032_v52  ;;  %v1544_v42 = vmax.f32 %v4025_v38, %v4030_v8  ;;  %v1541_v58 = vmax.f32 %v1540_v4, %v4021_v32 }
 0x353   : > { %v4037_v26 = vpop.f32.mrf.mxu0  ;;  %v4039_v59 = vpop.f32.mrf.mxu1 }
 0x354   : > { %5348 = vst [vmem:[#allocation75_spill] sm:$0xff] %v4037_v26  ;;  %5349 = vst [vmem:[#allocation76_spill] sm:$0xff] %v4039_v59  ;;  %1542 = vmax.xlane.f32.xlu1 %v1541_v58  ;;  %v1545_v40 = vmax.f32 %v1544_v42, %v4027_v62 }
 0x355   : > { %v4042_v36 = vpop.f32.mrf.mxu0  ;;  %v4044_v3 = vpop.f32.mrf.mxu1 }
 0x356   : > { %5350 = vst [vmem:[#allocation77_spill] sm:$0xff] %v4042_v36  ;;  %5351 = vst [vmem:[#allocation78_spill] sm:$0xff] %v4044_v3  ;;  %v1549_v0 = vmax.f32 %v4037_v26, %v4042_v36  ;;  %v1546_v18 = vmax.f32 %v1545_v40, %v4032_v52 }
 0x357   : > { %v4049_v63 = vpop.f32.mrf.mxu0  ;;  %v4051_v8 = vpop.f32.mrf.mxu1 }
 0x358   : > { %5352 = vst [vmem:[#allocation79_spill] sm:$0xff] %v4049_v63  ;;  %5353 = vst [vmem:[#allocation80_spill] sm:$0xff] %v4051_v8  ;;  %1547 = vmax.xlane.f32.xlu1 %v1546_v18  ;;  %v1550_v4 = vmax.f32 %v1549_v0, %v4039_v59 }
 0x359   : > { %v4054_v38 = vpop.f32.mrf.mxu0  ;;  %v4056_v58 = vpop.f32.mrf.mxu1 }
 0x35a   : > { %5354 = vst [vmem:[#allocation81_spill] sm:$0xff] %v4054_v38  ;;  %5355 = vst [vmem:[#allocation82_spill] sm:$0xff] %v4056_v58  ;;  %v1554_v42 = vmax.f32 %v4049_v63, %v4054_v38  ;;  %v1551_v62 = vmax.f32 %v1550_v4, %v4044_v3 }
 0x35b   : > { %v4061_v32 = vpop.f32.mrf.mxu0  ;;  %v4063_v36 = vpop.f32.mrf.mxu1 }
 0x35c   : > { %5356 = vst [vmem:[#allocation83_spill] sm:$0xff] %v4061_v32  ;;  %5357 = vst [vmem:[#allocation84_spill] sm:$0xff] %v4063_v36  ;;  %1552 = vmax.xlane.f32.xlu1 %v1551_v62  ;;  %v1555_v40 = vmax.f32 %v1554_v42, %v4051_v8 }
 0x35d   : > { %v4066_v26 = vpop.f32.mrf.mxu0  ;;  %v4068_v18 = vpop.f32.mrf.mxu1 }
 0x35e   : > { %5358 = vst [vmem:[#allocation85_spill] sm:$0xff] %v4066_v26  ;;  %5359 = vst [vmem:[#allocation86_spill] sm:$0xff] %v4068_v18  ;;  %v1559_v0 = vmax.f32 %v4061_v32, %v4066_v26  ;;  %v1556_v59 = vmax.f32 %v1555_v40, %v4056_v58 }
 0x35f   : > { %v4073_v52 = vpop.f32.mrf.mxu0  ;;  %v4075_v38 = vpop.f32.mrf.mxu1 }
 0x360   : > { %5360 = vst [vmem:[#allocation87_spill] sm:$0xff] %v4073_v52  ;;  %5361 = vst [vmem:[#allocation88_spill] sm:$0xff] %v4075_v38  ;;  %1557 = vmax.xlane.f32.xlu1 %v1556_v59  ;;  %v1560_v4 = vmax.f32 %v1559_v0, %v4063_v36 }
 0x361   : > { %v4078_v63 = vpop.f32.mrf.mxu0  ;;  %v4080_v62 = vpop.f32.mrf.mxu1 }
 0x362   : > { %5362 = vst [vmem:[#allocation89_spill] sm:$0xff] %v4078_v63  ;;  %5363 = vst [vmem:[#allocation90_spill] sm:$0xff] %v4080_v62  ;;  %v1564_v42 = vmax.f32 %v4073_v52, %v4078_v63  ;;  %v1561_v8 = vmax.f32 %v1560_v4, %v4068_v18 }
 0x363   : > { %v4085_v3 = vpop.f32.mrf.mxu0  ;;  %v4087_v26 = vpop.f32.mrf.mxu1 }
 0x364   : > { %5364 = vst [vmem:[#allocation91_spill] sm:$0xff] %v4085_v3  ;;  %5365 = vst [vmem:[#allocation92_spill] sm:$0xff] %v4087_v26  ;;  %1562 = vmax.xlane.f32.xlu1 %v1561_v8  ;;  %v1565_v40 = vmax.f32 %v1564_v42, %v4075_v38 }
 0x365   : > { %v4090_v32 = vpop.f32.mrf.mxu0  ;;  %v4092_v59 = vpop.f32.mrf.mxu1 }
 0x366   : > { %5366 = vst [vmem:[#allocation93_spill] sm:$0xff] %v4090_v32  ;;  %5367 = vst [vmem:[#allocation94_spill] sm:$0xff] %v4092_v59  ;;  %v1569_v0 = vmax.f32 %v4085_v3, %v4090_v32  ;;  %v1566_v36 = vmax.f32 %v1565_v40, %v4080_v62 }
 0x367   : > { %v4097_v58 = vpop.f32.mrf.mxu0  ;;  %v4099_v63 = vpop.f32.mrf.mxu1 }
 0x368   : > { %5368 = vst [vmem:[#allocation95_spill] sm:$0xff] %v4097_v58  ;;  %5369 = vst [vmem:[#allocation96_spill] sm:$0xff] %v4099_v63  ;;  %1567 = vmax.xlane.f32.xlu0 %v1566_v36  ;;  %v1570_v4 = vmax.f32 %v1569_v0, %v4087_v26 }
 0x369   : > { %v4102_v52 = vpop.f32.mrf.mxu0  ;;  %v4104_v8 = vpop.f32.mrf.mxu1 }
 0x36a   : > { %5370 = vst [vmem:[#allocation97_spill] sm:$0xff] %v4102_v52  ;;  %5371 = vst [vmem:[#allocation98_spill] sm:$0xff] %v4104_v8  ;;  %v1574_v42 = vmax.f32 %v4097_v58, %v4102_v52  ;;  %v1571_v38 = vmax.f32 %v1570_v4, %v4092_v59 }
 0x36b   : > { %v4109_v18 = vpop.f32.mrf.mxu0  ;;  %v4111_v32 = vpop.f32.mrf.mxu1 }
 0x36c   : > { %5372 = vst [vmem:[#allocation99_spill] sm:$0xff] %v4109_v18  ;;  %5373 = vst [vmem:[#allocation100_spill] sm:$0xff] %v4111_v32  ;;  %1572 = vmax.xlane.f32.xlu1 %v1571_v38  ;;  %v1575_v40 = vmax.f32 %v1574_v42, %v4099_v63 }
 0x36d   : > { %v4114_v3 = vpop.f32.mrf.mxu0  ;;  %v4116_v36 = vpop.f32.mrf.mxu1 }
 0x36e   : > { %5374 = vst [vmem:[#allocation101_spill] sm:$0xff] %v4114_v3  ;;  %5375 = vst [vmem:[#allocation102_spill] sm:$0xff] %v4116_v36  ;;  %v1579_v0 = vmax.f32 %v4109_v18, %v4114_v3  ;;  %v1576_v26 = vmax.f32 %v1575_v40, %v4104_v8 }
 0x36f   : > { %v4121_v62 = vpop.f32.mrf.mxu0  ;;  %v4123_v52 = vpop.f32.mrf.mxu1 }
 0x370   : > { %5376 = vst [vmem:[#allocation103_spill] sm:$0xff] %v4121_v62  ;;  %5377 = vst [vmem:[#allocation104_spill] sm:$0xff] %v4123_v52  ;;  %1577 = vmax.xlane.f32.xlu1 %v1576_v26  ;;  %v1580_v4 = vmax.f32 %v1579_v0, %v4111_v32 }
 0x371   : > { %v4126_v58 = vpop.f32.mrf.mxu0  ;;  %v4128_v38 = vpop.f32.mrf.mxu1 }
 0x372   : > { %5378 = vst [vmem:[#allocation105_spill] sm:$0xff] %v4126_v58  ;;  %5379 = vst [vmem:[#allocation106_spill] sm:$0xff] %v4128_v38  ;;  %v1584_v42 = vmax.f32 %v4121_v62, %v4126_v58  ;;  %v1581_v63 = vmax.f32 %v1580_v4, %v4116_v36 }
 0x373   : > { %v4133_v59 = vpop.f32.mrf.mxu0  ;;  %v4135_v3 = vpop.f32.mrf.mxu1 }
 0x374   : > { %5380 = vst [vmem:[#allocation107_spill] sm:$0xff] %v4133_v59  ;;  %5381 = vst [vmem:[#allocation108_spill] sm:$0xff] %v4135_v3  ;;  %1582 = vmax.xlane.f32.xlu1 %v1581_v63  ;;  %v1585_v40 = vmax.f32 %v1584_v42, %v4123_v52 }
 0x375   : > { %v4138_v18 = vpop.f32.mrf.mxu0  ;;  %v4140_v26 = vpop.f32.mrf.mxu1 }
 0x376   : > { %5382 = vst [vmem:[#allocation109_spill] sm:$0xff] %v4138_v18  ;;  %5383 = vst [vmem:[#allocation110_spill] sm:$0xff] %v4140_v26  ;;  %v1589_v0 = vmax.f32 %v4133_v59, %v4138_v18  ;;  %v1586_v32 = vmax.f32 %v1585_v40, %v4128_v38 }
 0x377   : > { %v4145_v8 = vpop.f32.mrf.mxu0  ;;  %v4147_v58 = vpop.f32.mrf.mxu1 }
 0x378   : > { %5384 = vst [vmem:[#allocation111_spill] sm:$0xff] %v4145_v8  ;;  %5385 = vst [vmem:[#allocation112_spill] sm:$0xff] %v4147_v58  ;;  %1587 = vmax.xlane.f32.xlu1 %v1586_v32  ;;  %v1590_v4 = vmax.f32 %v1589_v0, %v4135_v3 }
 0x379   : > { %v4150_v62 = vpop.f32.mrf.mxu0  ;;  %v4152_v63 = vpop.f32.mrf.mxu1 }
 0x37a   : > { %5386 = vst [vmem:[#allocation113_spill] sm:$0xff] %v4150_v62  ;;  %v1594_v42 = vmax.f32 %v4145_v8, %v4150_v62  ;;  %v1591_v52 = vmax.f32 %v1590_v4, %v4140_v26 }
 0x37b   : > { %v4157_v36 = vpop.f32.mrf.mxu0  ;;  %v4159_v18 = vpop.f32.mrf.mxu1 }
 0x37c   : > { %5387 = vst [vmem:[#allocation114_spill] sm:$0xff] %v4157_v36  ;;  %5388 = vst [vmem:[#allocation115_spill] sm:$0xff] %v4159_v18  ;;  %1592 = vmax.xlane.f32.xlu0 %v1591_v52  ;;  %v1595_v40 = vmax.f32 %v1594_v42, %v4147_v58 }
 0x37d   : > { %v4162_v59 = vpop.f32.mrf.mxu0  ;;  %v4164_v32 = vpop.f32.mrf.mxu1 }
 0x37e   : > { %5389 = vst [vmem:[#allocation116_spill] sm:$0xff] %v4162_v59  ;;  %v1599_v0 = vmax.f32 %v4157_v36, %v4162_v59  ;;  %v1596_v3 = vmax.f32 %v1595_v40, %v4152_v63 }
 0x37f   : > { %v4169_v38 = vpop.f32.mrf.mxu0  ;;  %v4171_v62 = vpop.f32.mrf.mxu1 }
 0x380   : > { %5390 = vst [vmem:[#allocation117_spill] sm:$0xff] %v4169_v38  ;;  %5391 = vst [vmem:[#allocation118_spill] sm:$0xff] %v4171_v62  ;;  %1597 = vmax.xlane.f32.xlu1 %v1596_v3  ;;  %v1600_v4 = vmax.f32 %v1599_v0, %v4159_v18  ;;  %v1529_v0 = vmax.f32 %v3997_v25, %v4002_v33 }
 0x381   : > { %v4174_v8 = vpop.f32.mrf.mxu0  ;;  %v4176_v52 = vpop.f32.mrf.mxu1 }
 0x382   : > { %5392 = vst [vmem:[#allocation119_spill] sm:$0xff] %v4174_v8  ;;  %v1604_v42 = vmax.f32 %v4169_v38, %v4174_v8  ;;  %v1601_v58 = vmax.f32 %v1600_v4, %v4164_v32 }
 0x383   : > { %v4181_v26 = vpop.f32.mrf.mxu0  ;;  %v4183_v59 = vpop.f32.mrf.mxu1 }
 0x384   : > { %5393 = vst [vmem:[#allocation120_spill] sm:$0xff] %v4181_v26  ;;  %5394 = vst [vmem:[#allocation121_spill] sm:$0xff] %v4183_v59  ;;  %1602 = vmax.xlane.f32.xlu0 %v1601_v58  ;;  %v1605_v40 = vmax.f32 %v1604_v42, %v4171_v62  ;;  %v1534_v62 = vmax.f32 %v4007_v41, %v4011_v22 }
 0x385   : > { %v4186_v36 = vpop.f32.mrf.mxu0  ;;  %v4188_v3 = vpop.f32.mrf.mxu1 }
 0x386   : > { %5395 = vst [vmem:[#allocation122_spill] sm:$0xff] %v4186_v36  ;;  %v1609_v18 = vmax.f32 %v4181_v26, %v4186_v36  ;;  %v1606_v8 = vmax.f32 %v1605_v40, %v4176_v52  ;;  %v1530_v36 = vmax.f32 %v1529_v0, %v3999_v20  ;;  %v1535_v26 = vmax.f32 %v1534_v62, %v4009_v46 }
 0x387   : > { %v4195_v4 = vpop.f32.mrf.mxu0  ;;  %v4198_v58 = vpop.f32.mrf.mxu1 }
 0x388   : > { %1607 = vmax.xlane.f32.xlu1 %v1606_v8  ;;  %v1610_v38 = vmax.f32 %v1609_v18, %v4183_v59  ;;  %5396 = vst [vmem:[#allocation123_spill] sm:$0xff] %v4198_v58  ;;  %v1531_v18 = vmax.f32 %v1530_v36, %v4004_v29  ;;  %v1536_v22 = vmax.f32 %v1535_v26, %v4013_v24 }
 0x389   : > { %v4200_v42 = vpop.f32.mrf.mxu0  ;;  %v4209_v8 = vpop.f32.mrf.mxu1 }
 0x38a   : > { %5397 = vst [vmem:[#allocation124_spill] sm:$0xff] %v4200_v42  ;;  %v1614_v33 = vmax.f32 %v4195_v4, %v4200_v42  ;;  %v1611_v25 = vmax.f32 %v1610_v38, %v4188_v3  ;;  %5398 = vst [vmem:[#allocation125_spill] sm:$0xff] %v4209_v8 }
 0x38c   : > { %1612 = vmax.xlane.f32.xlu0 %v1611_v25  ;;  %v1615_v40 = vmax.f32 %v1614_v33, %v4198_v58 }
 0x38e   : > { %v1616_v59 = vmax.f32 %v1615_v40, %v4209_v8 }
 0x390   : > { %1532 = vmax.xlane.f32.xlu0 %v1531_v18  ;;  %1617 = vmax.xlane.f32.xlu1 %v1616_v59 }
 0x394   : > { %1537 = vmax.xlane.f32.xlu1 %v1536_v22 }
 0x39d   : > { %v1463_v41 = vpop.xlane.xlu1 %1462 }
 0x39e   : > { %v1619_v38 = vsub.f32 %v3831_v5, %v1463_v41  ;;  %v1620_v25 = vsub.f32 %v3835_v9, %v1463_v41  ;;  %v1621_v33 = vsub.f32 %v3833_v7, %v1463_v41  ;;  %v1622_v0 = vsub.f32 %v3837_v10, %v1463_v41 }
 0x3a0   : > { %v1747_v58 = vmul.f32 1.442695, %v1619_v38  ;;  %v1749_v36 = vmul.f32 1.442695, %v1620_v25  ;;  %v1751_v42 = vmul.f32 1.442695, %v1621_v33 }
 0x3a1   : > { %v1753_v40 = vmul.f32 1.442695, %v1622_v0  ;;  %v1468_v8 = vpop.xlane.xlu1 %1467 }
 0x3a2   : > { %2964 = vpow2.f32 %v1747_v58  ;;  %v1623_v62 = vsub.f32 %v3841_v11, %v1468_v8  ;;  %v1624_v59 = vsub.f32 %v3846_v15, %v1468_v8  ;;  %v1625_v22 = vsub.f32 %v3843_v23, %v1468_v8 }
 0x3a3   : > { %2966 = vpow2.f32 %v1749_v36  ;;  %v1626_v5 = vsub.f32 %v3848_v17, %v1468_v8 }
 0x3a4   : > { %2968 = vpow2.f32 %v1751_v42  ;;  %v1755_v9 = vmul.f32 1.442695, %v1623_v62  ;;  %v1757_v7 = vmul.f32 1.442695, %v1624_v59  ;;  %v1759_v26 = vmul.f32 1.442695, %v1625_v22 }
 0x3a5   : > { %2970 = vpow2.f32 %v1753_v40  ;;  %v1761_v41 = vmul.f32 1.442695, %v1626_v5  ;;  %v1473_v10 = vpop.xlane.xlu1 %1472 }
 0x3a6   : > { %2972 = vpow2.f32 %v1755_v9  ;;  %v1627_v18 = vsub.f32 %v3853_v27, %v1473_v10  ;;  %v1628_v58 = vsub.f32 %v3858_v34, %v1473_v10  ;;  %v1629_v11 = vsub.f32 %v3855_v28, %v1473_v10 }
 0x3a7   : > { %2974 = vpow2.f32 %v1757_v7  ;;  %v1630_v23 = vsub.f32 %v3860_v35, %v1473_v10 }
 0x3a8   : > { %2976 = vpow2.f32 %v1759_v26  ;;  %v1763_v15 = vmul.f32 1.442695, %v1627_v18  ;;  %v1765_v17 = vmul.f32 1.442695, %v1628_v58  ;;  %v1767_v42 = vmul.f32 1.442695, %v1629_v11 }
 0x3a9   : > { %2978 = vpow2.f32 %v1761_v41  ;;  %v1769_v8 = vmul.f32 1.442695, %v1630_v23  ;;  %v1478_v38 = vpop.xlane.xlu1 %1477 }
 0x3aa   : > { %2980 = vpow2.f32 %v1763_v15  ;;  %v1631_v25 = vsub.f32 %v3865_v44, %v1478_v38  ;;  %v1632_v33 = vsub.f32 %v3870_v51, %v1478_v38  ;;  %v1633_v27 = vsub.f32 %v3867_v45, %v1478_v38 }
 0x3ab   : > { %2982 = vpow2.f32 %v1765_v17  ;;  %v1634_v28 = vsub.f32 %v3872_v53, %v1478_v38 }
 0x3ac   : > { %2984 = vpow2.f32 %v1767_v42  ;;  %v1771_v34 = vmul.f32 1.442695, %v1631_v25  ;;  %v1773_v35 = vmul.f32 1.442695, %v1632_v33  ;;  %v1775_v0 = vmul.f32 1.442695, %v1633_v27 }
 0x3ad   : > { %2986 = vpow2.f32 %v1769_v8  ;;  %v1777_v36 = vmul.f32 1.442695, %v1634_v28  ;;  %v1483_v40 = vpop.xlane.xlu1 %1482 }
 0x3ae   : > { %2988 = vpow2.f32 %v1771_v34  ;;  %v1635_v62 = vsub.f32 %v3877_v60, %v1483_v40  ;;  %v1636_v59 = vsub.f32 %v3882_v1, %v1483_v40  ;;  %v1637_v44 = vsub.f32 %v3879_v61, %v1483_v40 }
 0x3af   : > { %v4234_v51 = vpop.eup %2964  ;;  %2990 = vpow2.f32 %v1773_v35  ;;  %v1638_v45 = vsub.f32 %v3884_v2, %v1483_v40 }
 0x3b0   : > { %5399 = vst [vmem:[#allocation126_spill] sm:$0xff] %v4234_v51  ;;  %v4237_v53 = vpop.eup %2966  ;;  %2992 = vpow2.f32 %v1775_v0  ;;  %v1779_v22 = vmul.f32 1.442695, %v1635_v62  ;;  %v1781_v5 = vmul.f32 1.442695, %v1636_v59 }
 0x3b1   : > { %5400 = vst [vmem:[#allocation127_spill] sm:$0xff] %v4237_v53  ;;  %v1783_v9 = vmul.f32 1.442695, %v1637_v44  ;;  %v4239_v7 = vpop.eup %2968  ;;  %2994 = vpow2.f32 %v1777_v36  ;;  %v1785_v26 = vmul.f32 1.442695, %v1638_v45  ;;  %v1488_v60 = vpop.xlane.xlu1 %1487  ;;  %v2003_v1 = vadd.f32 %v4237_v53, %v4234_v51  ;;  %v5463_v51 = vld [vmem:[#allocation68_spill] sm:$0xff] }
 0x3b2   : > { %5401 = vst [vmem:[#allocation128_spill] sm:$0xff] %v4239_v7  ;;  %v4243_v61 = vpop.eup %2970  ;;  %2996 = vpow2.f32 %v1779_v22  ;;  %v1639_v41 = vsub.f32 %v3889_v13, %v1488_v60  ;;  %v1640_v2 = vsub.f32 %v3894_v30, %v1488_v60  ;;  %v1641_v10 = vsub.f32 %v3891_v21, %v1488_v60 }
 0x3b3   : > { %5402 = vst [vmem:[#allocation129_spill] sm:$0xff] %v4243_v61  ;;  %v4248_v18 = vpop.eup %2972  ;;  %2998 = vpow2.f32 %v1781_v5  ;;  %v1642_v58 = vsub.f32 %v3896_v39, %v1488_v60  ;;  %v2004_v11 = vadd.f32 %v4239_v7, %v2003_v1  ;;  %v5462_v7 = vld [vmem:[#allocation69_spill] sm:$0xff] }
 0x3b4   : > { %5403 = vst [vmem:[#allocation130_spill] sm:$0xff] %v4248_v18  ;;  %v4252_v23 = vpop.eup %2974  ;;  %3000 = vpow2.f32 %v1783_v9  ;;  %v1787_v15 = vmul.f32 1.442695, %v1639_v41  ;;  %v1789_v17 = vmul.f32 1.442695, %v1640_v2 }
 0x3b5   : > { %5404 = vst [vmem:[#allocation131_spill] sm:$0xff] %v4252_v23  ;;  %v1791_v42 = vmul.f32 1.442695, %v1641_v10  ;;  %v4254_v8 = vpop.eup %2976  ;;  %3002 = vpow2.f32 %v1785_v26  ;;  %v1793_v13 = vmul.f32 1.442695, %v1642_v58  ;;  %v1493_v30 = vpop.xlane.xlu1 %1492  ;;  %v2005_v21 = vadd.f32 %v4243_v61, %v2004_v11 }
 0x3b6   : > { %5405 = vst [vmem:[#allocation132_spill] sm:$0xff] %v4254_v8  ;;  %v2008_v38 = vadd.f32 %v4252_v23, %v4248_v18  ;;  %v4259_v25 = vpop.eup %2978  ;;  %3004 = vpow2.f32 %v1787_v15  ;;  %v1643_v39 = vsub.f32 %v3901_v55, %v1493_v30  ;;  %v1644_v33 = vsub.f32 %v3906_v56, %v1493_v30 }
 0x3b7   : > { %5406 = vst [vmem:[#allocation133_spill] sm:$0xff] %v4259_v25  ;;  %v1645_v27 = vsub.f32 %v3903_v57, %v1493_v30  ;;  %v4264_v28 = vpop.eup %2980  ;;  %3006 = vpow2.f32 %v1789_v17  ;;  %v1646_v34 = vsub.f32 %v3908_v16, %v1493_v30  ;;  %2006 = vadd.xlane.f32.xlu0 %v2005_v21 }
 0x3b8   : > { %5407 = vst [vmem:[#allocation134_spill] sm:$0xff] %v4264_v28  ;;  %v2009_v35 = vadd.f32 %v4254_v8, %v2008_v38  ;;  %v4270_v36 = vpop.eup %2982  ;;  %3008 = vpow2.f32 %v1791_v42  ;;  %v1795_v40 = vmul.f32 1.442695, %v1643_v39  ;;  %v1797_v55 = vmul.f32 1.442695, %v1644_v33 }
 0x3b9   : > { %5408 = vst [vmem:[#allocation135_spill] sm:$0xff] %v4270_v36  ;;  %v1799_v62 = vmul.f32 1.442695, %v1645_v27  ;;  %v4272_v56 = vpop.eup %2984  ;;  %3010 = vpow2.f32 %v1793_v13  ;;  %v1801_v57 = vmul.f32 1.442695, %v1646_v34  ;;  %v1498_v59 = vpop.xlane.xlu1 %1497  ;;  %v2013_v16 = vadd.f32 %v4270_v36, %v4264_v28 }
 0x3ba   : > { %5409 = vst [vmem:[#allocation136_spill] sm:$0xff] %v4272_v56  ;;  %v2010_v44 = vadd.f32 %v4259_v25, %v2009_v35  ;;  %v4277_v45 = vpop.eup %2986  ;;  %3012 = vpow2.f32 %v1795_v40  ;;  %v1647_v22 = vsub.f32 %v3913_v54, %v1498_v59  ;;  %v1648_v5 = vsub.f32 %v3918_v48, %v1498_v59 }
 0x3bb   : > { %5410 = vst [vmem:[#allocation137_spill] sm:$0xff] %v4277_v45  ;;  %v1649_v9 = vsub.f32 %v3915_v43, %v1498_v59  ;;  %v4282_v26 = vpop.eup %2988  ;;  %3014 = vpow2.f32 %v1797_v55  ;;  %v1650_v60 = vsub.f32 %v3920_v49, %v1498_v59  ;;  %v2014_v1 = vadd.f32 %v4272_v56, %v2013_v16 }
 0x3bc   : > { %5411 = vst [vmem:[#allocation138_spill] sm:$0xff] %v4282_v26  ;;  %2011 = vadd.xlane.f32.xlu1 %v2010_v44  ;;  %v4288_v2 = vpop.eup %2990  ;;  %3016 = vpow2.f32 %v1799_v62  ;;  %v1803_v10 = vmul.f32 1.442695, %v1647_v22  ;;  %v1805_v54 = vmul.f32 1.442695, %v1648_v5 }
 0x3bd   : > { %5412 = vst [vmem:[#allocation139_spill] sm:$0xff] %v4288_v2  ;;  %v1807_v58 = vmul.f32 1.442695, %v1649_v9  ;;  %v4290_v48 = vpop.eup %2992  ;;  %3018 = vpow2.f32 %v1801_v57  ;;  %v1809_v43 = vmul.f32 1.442695, %v1650_v60  ;;  %v1503_v11 = vpop.xlane.xlu1 %1502  ;;  %v2015_v15 = vadd.f32 %v4277_v45, %v2014_v1 }
 0x3be   : > { %5413 = vst [vmem:[#allocation140_spill] sm:$0xff] %v4290_v48  ;;  %v2018_v49 = vadd.f32 %v4288_v2, %v4282_v26  ;;  %v4295_v17 = vpop.eup %2994  ;;  %3020 = vpow2.f32 %v1803_v10  ;;  %v1651_v42 = vsub.f32 %v3925_v31, %v1503_v11  ;;  %v1652_v13 = vsub.f32 %v3930_v37, %v1503_v11 }
 0x3bf   : > { %5414 = vst [vmem:[#allocation141_spill] sm:$0xff] %v4295_v17  ;;  %v1653_v30 = vsub.f32 %v3927_v19, %v1503_v11  ;;  %v4300_v21 = vpop.eup %2996  ;;  %3022 = vpow2.f32 %v1805_v54  ;;  %v1654_v38 = vsub.f32 %v3932_v50, %v1503_v11  ;;  %2016 = vadd.xlane.f32.xlu0 %v2015_v15  ;;  %v5423_v11 = vld [vmem:[#allocation47_spill] sm:$0xff] }
 0x3c0   : > { %5415 = vst [vmem:[#allocation142_spill] sm:$0xff] %v4300_v21  ;;  %v2019_v39 = vadd.f32 %v4290_v48, %v2018_v49  ;;  %v4306_v27 = vpop.eup %2998  ;;  %3024 = vpow2.f32 %v1807_v58  ;;  %v1811_v34 = vmul.f32 1.442695, %v1651_v42  ;;  %v1813_v31 = vmul.f32 1.442695, %v1652_v13  ;;  %v5424_v49 = vld [vmem:[#allocation49_spill] sm:$0xff] }
 0x3c1   : > { %5416 = vst [vmem:[#allocation143_spill] sm:$0xff] %v4306_v27  ;;  %v1815_v35 = vmul.f32 1.442695, %v1653_v30  ;;  %v4308_v37 = vpop.eup %3000  ;;  %3026 = vpow2.f32 %v1809_v43  ;;  %v1817_v19 = vmul.f32 1.442695, %v1654_v38  ;;  %v1508_v40 = vpop.xlane.xlu1 %1507  ;;  %v2023_v50 = vadd.f32 %v4306_v27, %v4300_v21  ;;  %v5425_v13 = vld [vmem:[#allocation48_spill] sm:$0xff] }
 0x3c2   : > { %5417 = vst [vmem:[#allocation144_spill] sm:$0xff] %v4308_v37  ;;  %v2020_v55 = vadd.f32 %v4295_v17, %v2019_v39  ;;  %v4313_v62 = vpop.eup %3002  ;;  %3028 = vpow2.f32 %v1811_v34  ;;  %v1655_v57 = vsub.f32 %v3937_v12, %v1508_v40  ;;  %v1656_v59 = vsub.f32 %v3942_v14, %v1508_v40  ;;  %v5427_v39 = vld [vmem:[#allocation50_spill] sm:$0xff]  ;;  %v5466_v48 = vld [vmem:[#allocation71_spill] sm:$0xff]  ;;  %v5468_v17 = vld [vmem:[#allocation72_spill] sm:$0xff] }
 0x3c3   : > { %5418 = vst [vmem:[#allocation145_spill] sm:$0xff] %v4313_v62  ;;  %v1657_v44 = vsub.f32 %v3939_v6, %v1508_v40  ;;  %v4318_v16 = vpop.eup %3004  ;;  %3030 = vpow2.f32 %v1813_v31  ;;  %v1658_v22 = vsub.f32 %v3944_v47, %v1508_v40  ;;  %v2024_v5 = vadd.f32 %v4308_v37, %v2023_v50 }
 0x3c4   : > { %5419 = vst [vmem:[#allocation146_spill] sm:$0xff] %v4318_v16  ;;  %2021 = vadd.xlane.f32.xlu1 %v2020_v55  ;;  %v4324_v60 = vpop.eup %3006  ;;  %3032 = vpow2.f32 %v1815_v35  ;;  %v1819_v1 = vmul.f32 1.442695, %v1655_v57  ;;  %v1821_v12 = vmul.f32 1.442695, %v1656_v59 }
 0x3c5   : > { %5420 = vst [vmem:[#allocation147_spill] sm:$0xff] %v4324_v60  ;;  %v1823_v10 = vmul.f32 1.442695, %v1657_v44  ;;  %v4326_v14 = vpop.eup %3008  ;;  %3034 = vpow2.f32 %v1817_v19  ;;  %v1825_v6 = vmul.f32 1.442695, %v1658_v22  ;;  %v1513_v54 = vpop.xlane.xlu0 %1512  ;;  %v2025_v58 = vadd.f32 %v4313_v62, %v2024_v5 }
 0x3c6   : > { %5421 = vst [vmem:[#allocation148_spill] sm:$0xff] %v4326_v14  ;;  %v2028_v47 = vadd.f32 %v4324_v60, %v4318_v16  ;;  %v4331_v43 = vpop.eup %3010  ;;  %3036 = vpow2.f32 %v1819_v1  ;;  %v1659_v15 = vsub.f32 %v5423_v11, %v1513_v54  ;;  %v1660_v42 = vsub.f32 %v5424_v49, %v1513_v54 }
 0x3c7   : > { %5422 = vst [vmem:[#allocation149_spill] sm:$0xff] %v4331_v43  ;;  %v1661_v30 = vsub.f32 %v5425_v13, %v1513_v54  ;;  %v4336_v38 = vpop.eup %3012  ;;  %3038 = vpow2.f32 %v1821_v12  ;;  %v1662_v34 = vsub.f32 %v5427_v39, %v1513_v54  ;;  %2026 = vadd.xlane.f32.xlu0 %v2025_v58  ;;  %v5431_v12 = vld [vmem:[#allocation51_spill] sm:$0xff]  ;;  %v5432_v58 = vld [vmem:[#allocation53_spill] sm:$0xff] }
 0x3c8   : > { %5426 = vst [vmem:[#allocation47_spill] sm:$0xff] %v4336_v38  ;;  %v2029_v31 = vadd.f32 %v4326_v14, %v2028_v47  ;;  %v4342_v19 = vpop.eup %3014  ;;  %3040 = vpow2.f32 %v1823_v10  ;;  %v1827_v40 = vmul.f32 1.442695, %v1659_v15  ;;  %v1829_v55 = vmul.f32 1.442695, %v1660_v42  ;;  %v5433_v47 = vld [vmem:[#allocation52_spill] sm:$0xff] }
 0x3c9   : > { %5428 = vst [vmem:[#allocation49_spill] sm:$0xff] %v4342_v19  ;;  %v1831_v50 = vmul.f32 1.442695, %v1661_v30  ;;  %v4344_v57 = vpop.eup %3016  ;;  %3042 = vpow2.f32 %v1825_v6  ;;  %v1833_v59 = vmul.f32 1.442695, %v1662_v34  ;;  %v1518_v44 = vpop.xlane.xlu1 %1517  ;;  %v2033_v5 = vadd.f32 %v4342_v19, %v4336_v38  ;;  %v5435_v6 = vld [vmem:[#allocation54_spill] sm:$0xff] }
 0x3ca   : > { %5429 = vst [vmem:[#allocation48_spill] sm:$0xff] %v4344_v57  ;;  %v2030_v22 = vadd.f32 %v4331_v43, %v2029_v31  ;;  %v4349_v1 = vpop.eup %3018  ;;  %3044 = vpow2.f32 %v1827_v40  ;;  %v1663_v54 = vsub.f32 %v5431_v12, %v1518_v44  ;;  %v1664_v10 = vsub.f32 %v5432_v58, %v1518_v44  ;;  %v5448_v13 = vld [vmem:[#allocation61_spill] sm:$0xff] }
 0x3cb   : > { %5430 = vst [vmem:[#allocation50_spill] sm:$0xff] %v4349_v1  ;;  %v1665_v11 = vsub.f32 %v5433_v47, %v1518_v44  ;;  %v4354_v15 = vpop.eup %3020  ;;  %3046 = vpow2.f32 %v1829_v55  ;;  %v1666_v49 = vsub.f32 %v5435_v6, %v1518_v44  ;;  %v2034_v42 = vadd.f32 %v4344_v57, %v2033_v5  ;;  %v5439_v5 = vld [vmem:[#allocation55_spill] sm:$0xff]  ;;  %v5440_v6 = vld [vmem:[#allocation57_spill] sm:$0xff] }
 0x3cc   : > { %5434 = vst [vmem:[#allocation51_spill] sm:$0xff] %v4354_v15  ;;  %2031 = vadd.xlane.f32.xlu1 %v2030_v22  ;;  %v4360_v30 = vpop.eup %3022  ;;  %3048 = vpow2.f32 %v1831_v50  ;;  %v1835_v39 = vmul.f32 1.442695, %v1663_v54  ;;  %v1837_v34 = vmul.f32 1.442695, %v1664_v10  ;;  %v5441_v54 = vld [vmem:[#allocation56_spill] sm:$0xff] }
 0x3cd   : > { %5436 = vst [vmem:[#allocation53_spill] sm:$0xff] %v4360_v30  ;;  %v1839_v31 = vmul.f32 1.442695, %v1665_v11  ;;  %v4362_v40 = vpop.eup %3024  ;;  %3050 = vpow2.f32 %v1833_v59  ;;  %v1841_v12 = vmul.f32 1.442695, %v1666_v49  ;;  %v1523_v58 = vpop.xlane.xlu0 %1522  ;;  %v2035_v55 = vadd.f32 %v4349_v1, %v2034_v42  ;;  %v5443_v59 = vld [vmem:[#allocation58_spill] sm:$0xff] }
 0x3ce   : > { %5437 = vst [vmem:[#allocation52_spill] sm:$0xff] %v4362_v40  ;;  %v2038_v44 = vadd.f32 %v4360_v30, %v4354_v15  ;;  %v4367_v22 = vpop.eup %3026  ;;  %3052 = vpow2.f32 %v1835_v39  ;;  %v1667_v47 = vsub.f32 %v5439_v5, %v1523_v58  ;;  %v1668_v50 = vsub.f32 %v5440_v6, %v1523_v58  ;;  %v5503_v38 = vld [vmem:[#allocation97_spill] sm:$0xff] }
 0x3cf   : > { %5438 = vst [vmem:[#allocation54_spill] sm:$0xff] %v4367_v22  ;;  %v1669_v10 = vsub.f32 %v5441_v54, %v1523_v58  ;;  %v4372_v11 = vpop.eup %3028  ;;  %3054 = vpow2.f32 %v1837_v34  ;;  %v1670_v49 = vsub.f32 %v5443_v59, %v1523_v58  ;;  %2036 = vadd.xlane.f32.xlu0 %v2035_v55 }
 0x3d0   : > { %5442 = vst [vmem:[#allocation55_spill] sm:$0xff] %v4372_v11  ;;  %v2039_v42 = vadd.f32 %v4362_v40, %v2038_v44  ;;  %v4378_v0 = vpop.eup %3030  ;;  %3056 = vpow2.f32 %v1839_v31  ;;  %v1843_v39 = vmul.f32 1.442695, %v1667_v47  ;;  %v1845_v5 = vmul.f32 1.442695, %v1668_v50  ;;  %v5447_v44 = vld [vmem:[#allocation59_spill] sm:$0xff] }
 0x3d1   : > { %5444 = vst [vmem:[#allocation57_spill] sm:$0xff] %v4378_v0  ;;  %v1847_v9 = vmul.f32 1.442695, %v1669_v10  ;;  %v4380_v6 = vpop.eup %3032  ;;  %3058 = vpow2.f32 %v1841_v12  ;;  %v1849_v54 = vmul.f32 1.442695, %v1670_v49  ;;  %v1528_v33 = vpop.xlane.xlu1 %1527  ;;  %v2043_v58 = vadd.f32 %v4378_v0, %v4372_v11  ;;  %v5449_v47 = vld [vmem:[#allocation60_spill] sm:$0xff] }
 0x3d2   : > { %5445 = vst [vmem:[#allocation56_spill] sm:$0xff] %v4380_v6  ;;  %v2040_v34 = vadd.f32 %v4367_v22, %v2039_v42  ;;  %v4385_v55 = vpop.eup %3034  ;;  %3060 = vpow2.f32 %v1843_v39  ;;  %v1671_v59 = vsub.f32 %v5447_v44, %v1528_v33  ;;  %v1672_v31 = vsub.f32 %v5448_v13, %v1528_v33  ;;  %v5451_v12 = vld [vmem:[#allocation62_spill] sm:$0xff] }
 0x3d3   : > { %5446 = vst [vmem:[#allocation58_spill] sm:$0xff] %v4385_v55  ;;  %v1673_v50 = vsub.f32 %v5449_v47, %v1528_v33  ;;  %v4390_v10 = vpop.eup %3036  ;;  %3062 = vpow2.f32 %v1845_v5  ;;  %v1674_v49 = vsub.f32 %v5451_v12, %v1528_v33  ;;  %v2044_v42 = vadd.f32 %v4380_v6, %v2043_v58 }
 0x3d4   : > { %5450 = vst [vmem:[#allocation59_spill] sm:$0xff] %v4390_v10  ;;  %2041 = vadd.xlane.f32.xlu1 %v2040_v34  ;;  %v4396_v41 = vpop.eup %3038  ;;  %3064 = vpow2.f32 %v1847_v9  ;;  %v1851_v39 = vmul.f32 1.442695, %v1671_v59  ;;  %v1853_v44 = vmul.f32 1.442695, %v1672_v31 }
 0x3d5   : > { %5452 = vst [vmem:[#allocation61_spill] sm:$0xff] %v4396_v41  ;;  %v1855_v61 = vmul.f32 1.442695, %v1673_v50  ;;  %v4398_v13 = vpop.eup %3040  ;;  %3066 = vpow2.f32 %v1849_v54  ;;  %v1857_v47 = vmul.f32 1.442695, %v1674_v49  ;;  %v2045_v5 = vadd.f32 %v4385_v55, %v2044_v42 }
 0x3d6   : > { %5453 = vst [vmem:[#allocation60_spill] sm:$0xff] %v4398_v13  ;;  %v2048_v33 = vadd.f32 %v4396_v41, %v4390_v10  ;;  %v4403_v34 = vpop.eup %3042  ;;  %3068 = vpow2.f32 %v1851_v39 }
 0x3d7   : > { %5454 = vst [vmem:[#allocation62_spill] sm:$0xff] %v4403_v34  ;;  %v4411_v31 = vpop.eup %3044  ;;  %3070 = vpow2.f32 %v1853_v44  ;;  %2046 = vadd.xlane.f32.xlu0 %v2045_v5  ;;  %v5467_v44 = vld [vmem:[#allocation73_spill] sm:$0xff] }
 0x3d8   : > { %5455 = vst [vmem:[#allocation150_spill] sm:$0xff] %v4411_v31  ;;  %v2049_v54 = vadd.f32 %v4398_v13, %v2048_v33  ;;  %v4418_v49 = vpop.eup %3046  ;;  %3072 = vpow2.f32 %v1855_v61  ;;  %v5464_v61 = vld [vmem:[#allocation70_spill] sm:$0xff] }
 0x3d9   : > { %v4426_v5 = vpop.eup %3048  ;;  %3074 = vpow2.f32 %v1857_v47  ;;  %v2053_v12 = vadd.f32 %v4418_v49, %v4411_v31 }
 0x3da   : > { %5456 = vst [vmem:[#allocation151_spill] sm:$0xff] %v4426_v5  ;;  %v2050_v33 = vadd.f32 %v4403_v34, %v2049_v54  ;;  %v4433_v35 = vpop.eup %3050 }
 0x3db   : > { %5457 = vst [vmem:[#allocation152_spill] sm:$0xff] %v4433_v35  ;;  %v4441_v47 = vpop.eup %3052  ;;  %v2054_v54 = vadd.f32 %v4426_v5, %v2053_v12 }
 0x3dc   : > { %5458 = vst [vmem:[#allocation153_spill] sm:$0xff] %v4441_v47  ;;  %2051 = vadd.xlane.f32.xlu1 %v2050_v33  ;;  %v4444_v59 = vpop.eup %3054  ;;  %v5461_v33 = vld [vmem:[#allocation67_spill] sm:$0xff] }
 0x3dd   : > { %v4448_v9 = vpop.eup %3056  ;;  %v1543_v50 = vpop.xlane.xlu1 %1542  ;;  %v2055_v42 = vadd.f32 %v4433_v35, %v2054_v54  ;;  %v2058_v39 = vadd.f32 %v4444_v59, %v4441_v47 }
 0x3de   : > { %5459 = vst [vmem:[#allocation154_spill] sm:$0xff] %v4448_v9  ;;  %v4455_v58 = vpop.eup %3058  ;;  %v1683_v12 = vsub.f32 %v5461_v33, %v1543_v50  ;;  %v1684_v8 = vsub.f32 %v5462_v7, %v1543_v50  ;;  %v1685_v18 = vsub.f32 %v5463_v51, %v1543_v50  ;;  %v1686_v25 = vsub.f32 %v5464_v61, %v1543_v50 }
 0x3df   : > { %5460 = vst [vmem:[#allocation155_spill] sm:$0xff] %v4455_v58  ;;  %v4461_v56 = vpop.eup %3060  ;;  %2056 = vadd.xlane.f32.xlu0 %v2055_v42  ;;  %v2059_v54 = vadd.f32 %v4448_v9, %v2058_v39 }
 0x3e0   : > { %v4468_v53 = vpop.eup %3062  ;;  %v1875_v33 = vmul.f32 1.442695, %v1683_v12  ;;  %v1877_v23 = vmul.f32 1.442695, %v1684_v8  ;;  %v1879_v7 = vmul.f32 1.442695, %v1685_v18 }
 0x3e1   : > { %v4470_v28 = vpop.eup %3064  ;;  %v1881_v51 = vmul.f32 1.442695, %v1686_v25  ;;  %v1548_v50 = vpop.xlane.xlu1 %1547  ;;  %v2060_v61 = vadd.f32 %v4455_v58, %v2059_v54  ;;  %v2063_v42 = vadd.f32 %v4468_v53, %v4461_v56  ;;  %v5469_v18 = vld [vmem:[#allocation74_spill] sm:$0xff] }
 0x3e2   : > { %5465 = vst [vmem:[#allocation67_spill] sm:$0xff] %v4470_v28  ;;  %v4475_v39 = vpop.eup %3066  ;;  %3076 = vpow2.f32 %v1875_v33  ;;  %v1687_v26 = vsub.f32 %v5466_v48, %v1548_v50  ;;  %v1688_v45 = vsub.f32 %v5467_v44, %v1548_v50  ;;  %v1689_v12 = vsub.f32 %v5468_v17, %v1548_v50 }
 0x3e3   : > { %v4480_v8 = vpop.eup %3068  ;;  %3078 = vpow2.f32 %v1877_v23  ;;  %v1690_v25 = vsub.f32 %v5469_v18, %v1548_v50  ;;  %2061 = vadd.xlane.f32.xlu1 %v2060_v61  ;;  %v2064_v54 = vadd.f32 %v4470_v28, %v2063_v42  ;;  %v5470_v61 = vld [vmem:[#allocation75_spill] sm:$0xff]  ;;  %v5471_v18 = vld [vmem:[#allocation77_spill] sm:$0xff] }
 0x3e4   : > { %v4484_v37 = vpop.eup %3070  ;;  %3080 = vpow2.f32 %v1879_v7  ;;  %v1883_v14 = vmul.f32 1.442695, %v1687_v26  ;;  %v1885_v36 = vmul.f32 1.442695, %v1688_v45  ;;  %v1887_v33 = vmul.f32 1.442695, %v1689_v12 }
 0x3e5   : > { %v4486_v2 = vpop.eup %3072  ;;  %3082 = vpow2.f32 %v1881_v51  ;;  %v1889_v48 = vmul.f32 1.442695, %v1690_v25  ;;  %v1553_v44 = vpop.xlane.xlu1 %1552  ;;  %v2065_v17 = vadd.f32 %v4475_v39, %v2064_v54  ;;  %v2068_v23 = vadd.f32 %v4484_v37, %v4480_v8  ;;  %v5472_v26 = vld [vmem:[#allocation76_spill] sm:$0xff]  ;;  %v5473_v12 = vld [vmem:[#allocation78_spill] sm:$0xff] }
 0x3e6   : > { %v4491_v50 = vpop.eup %3074  ;;  %3084 = vpow2.f32 %v1883_v14  ;;  %v1691_v42 = vsub.f32 %v5470_v61, %v1553_v44  ;;  %v1692_v7 = vsub.f32 %v5471_v18, %v1553_v44  ;;  %v1693_v45 = vsub.f32 %v5472_v26, %v1553_v44  ;;  %v5475_v26 = vld [vmem:[#allocation81_spill] sm:$0xff] }
 0x3e7   : > { %3086 = vpow2.f32 %v1885_v36  ;;  %v1694_v21 = vsub.f32 %v5473_v12, %v1553_v44  ;;  %2066 = vadd.xlane.f32.xlu0 %v2065_v17  ;;  %v2069_v51 = vadd.f32 %v4486_v2, %v2068_v23  ;;  %v5474_v44 = vld [vmem:[#allocation79_spill] sm:$0xff]  ;;  %v5476_v12 = vld [vmem:[#allocation80_spill] sm:$0xff] }
 0x3e8   : > { %3088 = vpow2.f32 %v1887_v33  ;;  %v1891_v54 = vmul.f32 1.442695, %v1691_v42  ;;  %v1893_v16 = vmul.f32 1.442695, %v1692_v7  ;;  %v1895_v62 = vmul.f32 1.442695, %v1693_v45 }
 0x3e9   : > { %3090 = vpow2.f32 %v1889_v48  ;;  %v1897_v14 = vmul.f32 1.442695, %v1694_v21  ;;  %v1558_v61 = vpop.xlane.xlu1 %1557  ;;  %v2070_v18 = vadd.f32 %v4491_v50, %v2069_v51  ;;  %v5477_v33 = vld [vmem:[#allocation82_spill] sm:$0xff] }
 0x3ea   : > { %3092 = vpow2.f32 %v1891_v54  ;;  %v1695_v17 = vsub.f32 %v5474_v44, %v1558_v61  ;;  %v1696_v23 = vsub.f32 %v5475_v26, %v1558_v61  ;;  %v1697_v43 = vsub.f32 %v5476_v12, %v1558_v61  ;;  %v5478_v26 = vld [vmem:[#allocation83_spill] sm:$0xff]  ;;  %v5482_v21 = vld [vmem:[#allocation86_spill] sm:$0xff] }
 0x3eb   : > { %3094 = vpow2.f32 %v1893_v16  ;;  %v1698_v42 = vsub.f32 %v5477_v33, %v1558_v61  ;;  %2071 = vadd.xlane.f32.xlu1 %v2070_v18  ;;  %v5479_v16 = vld [vmem:[#allocation85_spill] sm:$0xff]  ;;  %v5480_v61 = vld [vmem:[#allocation84_spill] sm:$0xff] }
 0x3ec   : > { %3096 = vpow2.f32 %v1895_v62  ;;  %v1899_v7 = vmul.f32 1.442695, %v1695_v17  ;;  %v1901_v45 = vmul.f32 1.442695, %v1696_v23  ;;  %v1903_v51 = vmul.f32 1.442695, %v1697_v43 }
 0x3ed   : > { %3098 = vpow2.f32 %v1897_v14  ;;  %v1905_v54 = vmul.f32 1.442695, %v1698_v42  ;;  %v1563_v44 = vpop.xlane.xlu1 %1562 }
 0x3ee   : > { %3100 = vpow2.f32 %v1899_v7  ;;  %v1699_v12 = vsub.f32 %v5478_v26, %v1563_v44  ;;  %v1700_v36 = vsub.f32 %v5479_v16, %v1563_v44  ;;  %v1701_v18 = vsub.f32 %v5480_v61, %v1563_v44  ;;  %v5488_v61 = vld [vmem:[#allocation88_spill] sm:$0xff] }
 0x3ef   : > { %v4514_v33 = vpop.eup %3076  ;;  %3102 = vpow2.f32 %v1901_v45  ;;  %v1702_v25 = vsub.f32 %v5482_v21, %v1563_v44  ;;  %v5486_v45 = vld [vmem:[#allocation87_spill] sm:$0xff]  ;;  %v5487_v21 = vld [vmem:[#allocation89_spill] sm:$0xff] }
 0x3f0   : > { %5481 = vst [vmem:[#allocation69_spill] sm:$0xff] %v4514_v33  ;;  %v4517_v48 = vpop.eup %3078  ;;  %3104 = vpow2.f32 %v1903_v51  ;;  %v1907_v62 = vmul.f32 1.442695, %v1699_v12  ;;  %v1909_v43 = vmul.f32 1.442695, %v1700_v36  ;;  %v5490_v36 = vld [vmem:[#allocation90_spill] sm:$0xff] }
 0x3f1   : > { %5483 = vst [vmem:[#allocation68_spill] sm:$0xff] %v4517_v48  ;;  %v1911_v14 = vmul.f32 1.442695, %v1701_v18  ;;  %v4519_v17 = vpop.eup %3080  ;;  %3106 = vpow2.f32 %v1905_v54  ;;  %v1913_v23 = vmul.f32 1.442695, %v1702_v25  ;;  %v1568_v42 = vpop.xlane.xlu0 %1567  ;;  %v2083_v7 = vadd.f32 %v4517_v48, %v4514_v33  ;;  %v5511_v48 = vld [vmem:[#allocation101_spill] sm:$0xff] }
 0x3f2   : > { %5484 = vst [vmem:[#allocation70_spill] sm:$0xff] %v4519_v17  ;;  %v4523_v26 = vpop.eup %3082  ;;  %3108 = vpow2.f32 %v1907_v62  ;;  %v1703_v16 = vsub.f32 %v5486_v45, %v1568_v42  ;;  %v1704_v44 = vsub.f32 %v5487_v21, %v1568_v42  ;;  %v1705_v51 = vsub.f32 %v5488_v61, %v1568_v42 }
 0x3f3   : > { %5485 = vst [vmem:[#allocation71_spill] sm:$0xff] %v4523_v26  ;;  %v4528_v12 = vpop.eup %3084  ;;  %3110 = vpow2.f32 %v1909_v43  ;;  %v1706_v18 = vsub.f32 %v5490_v36, %v1568_v42  ;;  %v2084_v25 = vadd.f32 %v4519_v17, %v2083_v7  ;;  %v5494_v42 = vld [vmem:[#allocation91_spill] sm:$0xff]  ;;  %v5495_v36 = vld [vmem:[#allocation93_spill] sm:$0xff] }
 0x3f4   : > { %5489 = vst [vmem:[#allocation73_spill] sm:$0xff] %v4528_v12  ;;  %v4532_v54 = vpop.eup %3086  ;;  %3112 = vpow2.f32 %v1911_v14  ;;  %v1915_v57 = vmul.f32 1.442695, %v1703_v16  ;;  %v1917_v40 = vmul.f32 1.442695, %v1704_v44  ;;  %v5496_v16 = vld [vmem:[#allocation92_spill] sm:$0xff] }
 0x3f5   : > { %5491 = vst [vmem:[#allocation72_spill] sm:$0xff] %v4532_v54  ;;  %v1919_v27 = vmul.f32 1.442695, %v1705_v51  ;;  %v4534_v62 = vpop.eup %3088  ;;  %3114 = vpow2.f32 %v1913_v23  ;;  %v1921_v45 = vmul.f32 1.442695, %v1706_v18  ;;  %v1573_v21 = vpop.xlane.xlu1 %1572  ;;  %v2085_v61 = vadd.f32 %v4523_v26, %v2084_v25  ;;  %v5498_v23 = vld [vmem:[#allocation94_spill] sm:$0xff] }
 0x3f6   : > { %5492 = vst [vmem:[#allocation74_spill] sm:$0xff] %v4534_v62  ;;  %v2088_v43 = vadd.f32 %v4532_v54, %v4528_v12  ;;  %v4539_v60 = vpop.eup %3090  ;;  %3116 = vpow2.f32 %v1915_v57  ;;  %v1707_v7 = vsub.f32 %v5494_v42, %v1573_v21  ;;  %v1708_v14 = vsub.f32 %v5495_v36, %v1573_v21  ;;  %v5518_v26 = vld [vmem:[#allocation105_spill] sm:$0xff] }
 0x3f7   : > { %5493 = vst [vmem:[#allocation75_spill] sm:$0xff] %v4539_v60  ;;  %v1709_v44 = vsub.f32 %v5496_v16, %v1573_v21  ;;  %v4544_v51 = vpop.eup %3092  ;;  %3118 = vpow2.f32 %v1917_v40  ;;  %v1710_v18 = vsub.f32 %v5498_v23, %v1573_v21  ;;  %2086 = vadd.xlane.f32.xlu0 %v2085_v61 }
 0x3f8   : > { %5497 = vst [vmem:[#allocation77_spill] sm:$0xff] %v4544_v51  ;;  %v2089_v25 = vadd.f32 %v4534_v62, %v2088_v43  ;;  %v4550_v15 = vpop.eup %3094  ;;  %3120 = vpow2.f32 %v1919_v27  ;;  %v1923_v57 = vmul.f32 1.442695, %v1707_v7  ;;  %v1925_v42 = vmul.f32 1.442695, %v1708_v14  ;;  %v5502_v43 = vld [vmem:[#allocation95_spill] sm:$0xff] }
 0x3f9   : > { %5499 = vst [vmem:[#allocation76_spill] sm:$0xff] %v4550_v15  ;;  %v1927_v1 = vmul.f32 1.442695, %v1709_v44  ;;  %v4552_v36 = vpop.eup %3096  ;;  %3122 = vpow2.f32 %v1921_v45  ;;  %v1929_v16 = vmul.f32 1.442695, %v1710_v18  ;;  %v1578_v22 = vpop.xlane.xlu1 %1577  ;;  %v2093_v21 = vadd.f32 %v4550_v15, %v4544_v51  ;;  %v5504_v7 = vld [vmem:[#allocation96_spill] sm:$0xff] }
 0x3fa   : > { %5500 = vst [vmem:[#allocation78_spill] sm:$0xff] %v4552_v36  ;;  %v2090_v40 = vadd.f32 %v4539_v60, %v2089_v25  ;;  %v4557_v61 = vpop.eup %3098  ;;  %3124 = vpow2.f32 %v1923_v57  ;;  %v1711_v23 = vsub.f32 %v5502_v43, %v1578_v22  ;;  %v1712_v27 = vsub.f32 %v5503_v38, %v1578_v22  ;;  %v5506_v45 = vld [vmem:[#allocation98_spill] sm:$0xff]  ;;  %v5524_v15 = vld [vmem:[#allocation109_spill] sm:$0xff] }
 0x3fb   : > { %5501 = vst [vmem:[#allocation79_spill] sm:$0xff] %v4557_v61  ;;  %v1713_v14 = vsub.f32 %v5504_v7, %v1578_v22  ;;  %v4562_v44 = vpop.eup %3100  ;;  %3126 = vpow2.f32 %v1925_v42  ;;  %v1714_v18 = vsub.f32 %v5506_v45, %v1578_v22  ;;  %v2094_v25 = vadd.f32 %v4552_v36, %v2093_v21  ;;  %v5510_v21 = vld [vmem:[#allocation99_spill] sm:$0xff] }
 0x3fc   : > { %5505 = vst [vmem:[#allocation81_spill] sm:$0xff] %v4562_v44  ;;  %2091 = vadd.xlane.f32.xlu1 %v2090_v40  ;;  %v4568_v54 = vpop.eup %3102  ;;  %3128 = vpow2.f32 %v1927_v1  ;;  %v1931_v57 = vmul.f32 1.442695, %v1711_v23  ;;  %v1933_v43 = vmul.f32 1.442695, %v1712_v27  ;;  %v5512_v23 = vld [vmem:[#allocation100_spill] sm:$0xff] }
 0x3fd   : > { %5507 = vst [vmem:[#allocation80_spill] sm:$0xff] %v4568_v54  ;;  %v1935_v6 = vmul.f32 1.442695, %v1713_v14  ;;  %v4570_v38 = vpop.eup %3104  ;;  %3130 = vpow2.f32 %v1929_v16  ;;  %v1937_v7 = vmul.f32 1.442695, %v1714_v18  ;;  %v1583_v13 = vpop.xlane.xlu1 %1582  ;;  %v2095_v42 = vadd.f32 %v4557_v61, %v2094_v25  ;;  %v5513_v16 = vld [vmem:[#allocation102_spill] sm:$0xff] }
 0x3fe   : > { %5508 = vst [vmem:[#allocation82_spill] sm:$0xff] %v4570_v38  ;;  %v2098_v22 = vadd.f32 %v4568_v54, %v4562_v44  ;;  %v4575_v40 = vpop.eup %3106  ;;  %3132 = vpow2.f32 %v1931_v57  ;;  %v1715_v45 = vsub.f32 %v5510_v21, %v1583_v13  ;;  %v1716_v1 = vsub.f32 %v5511_v48, %v1583_v13  ;;  %v5530_v61 = vld [vmem:[#allocation113_spill] sm:$0xff] }
 0x3ff   : > { %5509 = vst [vmem:[#allocation83_spill] sm:$0xff] %v4575_v40  ;;  %v1717_v27 = vsub.f32 %v5512_v23, %v1583_v13  ;;  %v4580_v14 = vpop.eup %3108  ;;  %3134 = vpow2.f32 %v1933_v43  ;;  %v1718_v18 = vsub.f32 %v5513_v16, %v1583_v13  ;;  %2096 = vadd.xlane.f32.xlu0 %v2095_v42 }
 0x400   : > { %v2099_v25 = vadd.f32 %v4570_v38, %v2098_v22  ;;  %v4586_v60 = vpop.eup %3110  ;;  %3136 = vpow2.f32 %v1935_v6  ;;  %v1939_v57 = vmul.f32 1.442695, %v1715_v45  ;;  %v1941_v21 = vmul.f32 1.442695, %v1716_v1  ;;  %v5517_v22 = vld [vmem:[#allocation103_spill] sm:$0xff]  ;;  %v5519_v45 = vld [vmem:[#allocation104_spill] sm:$0xff] }
 0x401   : > { %5514 = vst [vmem:[#allocation85_spill] sm:$0xff] %v4586_v60  ;;  %v1943_v19 = vmul.f32 1.442695, %v1717_v27  ;;  %v4588_v48 = vpop.eup %3112  ;;  %3138 = vpow2.f32 %v1937_v7  ;;  %v1945_v23 = vmul.f32 1.442695, %v1718_v18  ;;  %v1588_v30 = vpop.xlane.xlu1 %1587  ;;  %v2103_v13 = vadd.f32 %v4586_v60, %v4580_v14  ;;  %v5520_v7 = vld [vmem:[#allocation106_spill] sm:$0xff] }
 0x402   : > { %5515 = vst [vmem:[#allocation84_spill] sm:$0xff] %v4588_v48  ;;  %v2100_v43 = vadd.f32 %v4575_v40, %v2099_v25  ;;  %v4593_v42 = vpop.eup %3114  ;;  %3140 = vpow2.f32 %v1939_v57  ;;  %v1719_v16 = vsub.f32 %v5517_v22, %v1588_v30  ;;  %v1720_v6 = vsub.f32 %v5518_v26, %v1588_v30 }
 0x403   : > { %5516 = vst [vmem:[#allocation86_spill] sm:$0xff] %v4593_v42  ;;  %v1721_v1 = vsub.f32 %v5519_v45, %v1588_v30  ;;  %v4598_v27 = vpop.eup %3116  ;;  %3142 = vpow2.f32 %v1941_v21  ;;  %v1722_v18 = vsub.f32 %v5520_v7, %v1588_v30  ;;  %v2104_v25 = vadd.f32 %v4588_v48, %v2103_v13  ;;  %v5523_v13 = vld [vmem:[#allocation107_spill] sm:$0xff] }
 0x404   : > { %2101 = vadd.xlane.f32.xlu1 %v2100_v43  ;;  %v4604_v54 = vpop.eup %3118  ;;  %3144 = vpow2.f32 %v1943_v19  ;;  %v1947_v57 = vmul.f32 1.442695, %v1719_v16  ;;  %v1949_v22 = vmul.f32 1.442695, %v1720_v6  ;;  %v5525_v16 = vld [vmem:[#allocation108_spill] sm:$0xff] }
 0x405   : > { %5521 = vst [vmem:[#allocation87_spill] sm:$0xff] %v4604_v54  ;;  %v1951_v11 = vmul.f32 1.442695, %v1721_v1  ;;  %v4606_v26 = vpop.eup %3120  ;;  %3146 = vpow2.f32 %v1945_v23  ;;  %v1953_v45 = vmul.f32 1.442695, %v1722_v18  ;;  %v1593_v10 = vpop.xlane.xlu0 %1592  ;;  %v2105_v21 = vadd.f32 %v4593_v42, %v2104_v25  ;;  %v5526_v23 = vld [vmem:[#allocation110_spill] sm:$0xff] }
 0x406   : > { %v2108_v30 = vadd.f32 %v4604_v54, %v4598_v27  ;;  %v4611_v43 = vpop.eup %3122  ;;  %3148 = vpow2.f32 %v1947_v57  ;;  %v1723_v7 = vsub.f32 %v5523_v13, %v1593_v10  ;;  %v1724_v19 = vsub.f32 %v5524_v15, %v1593_v10 }
 0x407   : > { %5522 = vst [vmem:[#allocation89_spill] sm:$0xff] %v4611_v43  ;;  %v1725_v6 = vsub.f32 %v5525_v16, %v1593_v10  ;;  %v4616_v1 = vpop.eup %3124  ;;  %3150 = vpow2.f32 %v1949_v22  ;;  %v1726_v18 = vsub.f32 %v5526_v23, %v1593_v10  ;;  %2106 = vadd.xlane.f32.xlu0 %v2105_v21 }
 0x408   : > { %v2109_v25 = vadd.f32 %v4606_v26, %v2108_v30  ;;  %v4622_v40 = vpop.eup %3126  ;;  %3152 = vpow2.f32 %v1951_v11  ;;  %v1955_v57 = vmul.f32 1.442695, %v1723_v7  ;;  %v1957_v13 = vmul.f32 1.442695, %v1724_v19  ;;  %v5529_v30 = vld [vmem:[#allocation111_spill] sm:$0xff]  ;;  %v5531_v7 = vld [vmem:[#allocation112_spill] sm:$0xff] }
 0x409   : > { %5527 = vst [vmem:[#allocation88_spill] sm:$0xff] %v4622_v40  ;;  %v1959_v55 = vmul.f32 1.442695, %v1725_v6  ;;  %v4624_v15 = vpop.eup %3128  ;;  %3154 = vpow2.f32 %v1953_v45  ;;  %v1961_v16 = vmul.f32 1.442695, %v1726_v18  ;;  %v1598_v34 = vpop.xlane.xlu1 %1597  ;;  %v2113_v10 = vadd.f32 %v4622_v40, %v4616_v1 }
 0x40a   : > { %v2110_v22 = vadd.f32 %v4611_v43, %v2109_v25  ;;  %v4629_v21 = vpop.eup %3130  ;;  %3156 = vpow2.f32 %v1955_v57  ;;  %v1727_v23 = vsub.f32 %v5529_v30, %v1598_v34  ;;  %v1728_v11 = vsub.f32 %v5530_v61, %v1598_v34  ;;  %v5535_v25 = vld [vmem:[#allocation116_spill] sm:$0xff] }
 0x40b   : > { %5528 = vst [vmem:[#allocation90_spill] sm:$0xff] %v4629_v21  ;;  %v1729_v19 = vsub.f32 %v5531_v7, %v1598_v34  ;;  %v4634_v6 = vpop.eup %3132  ;;  %3158 = vpow2.f32 %v1957_v13  ;;  %v1730_v45 = vsub.f32 %v4152_v63, %v1598_v34  ;;  %v2114_v18 = vadd.f32 %v4624_v15, %v2113_v10 }
 0x40c   : > { %2111 = vadd.xlane.f32.xlu1 %v2110_v22  ;;  %v4640_v60 = vpop.eup %3134  ;;  %3160 = vpow2.f32 %v1959_v55  ;;  %v1963_v57 = vmul.f32 1.442695, %v1727_v23  ;;  %v1965_v30 = vmul.f32 1.442695, %v1728_v11  ;;  %v5534_v22 = vld [vmem:[#allocation114_spill] sm:$0xff]  ;;  %v5536_v23 = vld [vmem:[#allocation115_spill] sm:$0xff] }
 0x40d   : > { %5532 = vst [vmem:[#allocation91_spill] sm:$0xff] %v4640_v60  ;;  %v1967_v54 = vmul.f32 1.442695, %v1729_v19  ;;  %v4642_v61 = vpop.eup %3136  ;;  %3162 = vpow2.f32 %v1961_v16  ;;  %v1969_v7 = vmul.f32 1.442695, %v1730_v45  ;;  %v1603_v5 = vpop.xlane.xlu0 %1602  ;;  %v2115_v13 = vadd.f32 %v4629_v21, %v2114_v18  ;;  %v5539_v18 = vld [vmem:[#allocation119_spill] sm:$0xff] }
 0x40e   : > { %v2118_v63 = vadd.f32 %v4640_v60, %v4634_v6  ;;  %v4647_v34 = vpop.eup %3138  ;;  %3164 = vpow2.f32 %v1963_v57  ;;  %v1731_v10 = vsub.f32 %v5534_v22, %v1603_v5  ;;  %v1732_v55 = vsub.f32 %v5535_v25, %v1603_v5 }
 0x40f   : > { %5533 = vst [vmem:[#allocation93_spill] sm:$0xff] %v4647_v34  ;;  %v1733_v11 = vsub.f32 %v5536_v23, %v1603_v5  ;;  %v4652_v19 = vpop.eup %3140  ;;  %3166 = vpow2.f32 %v1965_v30  ;;  %v1734_v16 = vsub.f32 %v4164_v32, %v1603_v5  ;;  %2116 = vadd.xlane.f32.xlu0 %v2115_v13  ;;  %v5538_v13 = vld [vmem:[#allocation117_spill] sm:$0xff] }
 0x410   : > { %v2119_v45 = vadd.f32 %v4642_v61, %v2118_v63  ;;  %v4658_v42 = vpop.eup %3142  ;;  %3168 = vpow2.f32 %v1967_v54  ;;  %v1971_v57 = vmul.f32 1.442695, %v1731_v10  ;;  %v1973_v22 = vmul.f32 1.442695, %v1732_v55  ;;  %v5540_v10 = vld [vmem:[#allocation118_spill] sm:$0xff] }
 0x411   : > { %5537 = vst [vmem:[#allocation92_spill] sm:$0xff] %v4658_v42  ;;  %v1975_v43 = vmul.f32 1.442695, %v1733_v11  ;;  %v4660_v25 = vpop.eup %3144  ;;  %3170 = vpow2.f32 %v1969_v7  ;;  %v1977_v23 = vmul.f32 1.442695, %v1734_v16  ;;  %v1608_v9 = vpop.xlane.xlu1 %1607  ;;  %v2123_v32 = vadd.f32 %v4658_v42, %v4652_v19 }
 0x412   : > { %v2120_v30 = vadd.f32 %v4647_v34, %v2119_v45  ;;  %v4665_v5 = vpop.eup %3146  ;;  %3172 = vpow2.f32 %v1971_v57  ;;  %v1735_v63 = vsub.f32 %v5538_v13, %v1608_v9  ;;  %v1736_v54 = vsub.f32 %v5539_v18, %v1608_v9  ;;  %v5543_v45 = vld [vmem:[#allocation122_spill] sm:$0xff] }
 0x413   : > { %v1737_v55 = vsub.f32 %v5540_v10, %v1608_v9  ;;  %v4670_v11 = vpop.eup %3148  ;;  %3174 = vpow2.f32 %v1973_v22  ;;  %v1738_v7 = vsub.f32 %v4176_v52, %v1608_v9  ;;  %v2124_v16 = vadd.f32 %v4660_v25, %v2123_v32 }
 0x414   : > { %2121 = vadd.xlane.f32.xlu1 %v2120_v30  ;;  %v4676_v40 = vpop.eup %3150  ;;  %3176 = vpow2.f32 %v1975_v43  ;;  %v1979_v57 = vmul.f32 1.442695, %v1735_v63  ;;  %v1981_v13 = vmul.f32 1.442695, %v1736_v54  ;;  %v5542_v30 = vld [vmem:[#allocation120_spill] sm:$0xff]  ;;  %v5544_v63 = vld [vmem:[#allocation121_spill] sm:$0xff] }
 0x415   : > { %5541 = vst [vmem:[#allocation94_spill] sm:$0xff] %v4676_v40  ;;  %v1983_v60 = vmul.f32 1.442695, %v1737_v55  ;;  %v4678_v18 = vpop.eup %3152  ;;  %3178 = vpow2.f32 %v1977_v23  ;;  %v1985_v10 = vmul.f32 1.442695, %v1738_v7  ;;  %v1613_v0 = vpop.xlane.xlu0 %1612  ;;  %v2125_v22 = vadd.f32 %v4665_v5, %v2124_v16 }
 0x416   : > { %v2128_v52 = vadd.f32 %v4676_v40, %v4670_v11  ;;  %v4683_v9 = vpop.eup %3154  ;;  %3180 = vpow2.f32 %v1979_v57  ;;  %v1739_v32 = vsub.f32 %v5542_v30, %v1613_v0  ;;  %v1740_v43 = vsub.f32 %v5543_v45, %v1613_v0 }
 0x417   : > { %v1741_v54 = vsub.f32 %v5544_v63, %v1613_v0  ;;  %v4688_v55 = vpop.eup %3156  ;;  %3182 = vpow2.f32 %v1981_v13  ;;  %v1742_v23 = vsub.f32 %v4188_v3, %v1613_v0  ;;  %2126 = vadd.xlane.f32.xlu0 %v2125_v22 }
 0x418   : > { %v2129_v7 = vadd.f32 %v4678_v18, %v2128_v52  ;;  %v4694_v21 = vpop.eup %3158  ;;  %3184 = vpow2.f32 %v1983_v60  ;;  %v1987_v57 = vmul.f32 1.442695, %v1739_v32  ;;  %v1989_v30 = vmul.f32 1.442695, %v1740_v43  ;;  %v5545_v52 = vld [vmem:[#allocation63_spill] sm:$0xff]  ;;  %v5546_v60 = vld [vmem:[#allocation64_spill] sm:$0xff] }
 0x419   : > { %v1991_v34 = vmul.f32 1.442695, %v1741_v54  ;;  %v4696_v45 = vpop.eup %3160  ;;  %3186 = vpow2.f32 %v1985_v10  ;;  %v1993_v63 = vmul.f32 1.442695, %v1742_v23  ;;  %v1533_v41 = vpop.xlane.xlu0 %1532  ;;  %v2133_v0 = vadd.f32 %v4694_v21, %v4688_v55 }
 0x41a   : > { %v1618_v13 = vpop.xlane.xlu1 %1617  ;;  %v2130_v3 = vadd.f32 %v4683_v9, %v2129_v7  ;;  %v4701_v22 = vpop.eup %3162  ;;  %3188 = vpow2.f32 %v1987_v57  ;;  %v1675_v16 = vsub.f32 %v5545_v52, %v1533_v41  ;;  %v1676_v32 = vsub.f32 %v5546_v60, %v1533_v41  ;;  %v5547_v7 = vld [vmem:[#allocation124_spill] sm:$0xff]  ;;  %v5548_v60 = vld [vmem:[#allocation123_spill] sm:$0xff] }
 0x41b   : > { %v1677_v43 = vsub.f32 %v3999_v20, %v1533_v41  ;;  %v4706_v54 = vpop.eup %3164  ;;  %3190 = vpow2.f32 %v1989_v30  ;;  %v1678_v10 = vsub.f32 %v4004_v29, %v1533_v41  ;;  %v1743_v23 = vsub.f32 %v4195_v4, %v1618_v13  ;;  %v5549_v30 = vld [vmem:[#allocation125_spill] sm:$0xff] }
 0x41c   : > { %v1744_v42 = vsub.f32 %v5547_v7, %v1618_v13  ;;  %2131 = vadd.xlane.f32.xlu1 %v2130_v3  ;;  %v4711_v40 = vpop.eup %3166  ;;  %3192 = vpow2.f32 %v1991_v34  ;;  %v1859_v57 = vmul.f32 1.442695, %v1675_v16  ;;  %v1861_v31 = vmul.f32 1.442695, %v1676_v32  ;;  %v5550_v3 = vld [vmem:[#allocation65_spill] sm:$0xff]  ;;  %v5551_v32 = vld [vmem:[#allocation66_spill] sm:$0xff] }
 0x41d   : > { %v1863_v52 = vmul.f32 1.442695, %v1677_v43  ;;  %v4713_v47 = vpop.eup %3168  ;;  %3194 = vpow2.f32 %v1993_v63  ;;  %v1865_v20 = vmul.f32 1.442695, %v1678_v10  ;;  %v1745_v35 = vsub.f32 %v5548_v60, %v1618_v13 }
 0x41e   : > { %v1746_v58 = vsub.f32 %v5549_v30, %v1618_v13  ;;  %v1538_v29 = vpop.xlane.xlu1 %1537  ;;  %v4717_v41 = vpop.eup %3170  ;;  %3196 = vpow2.f32 %v1859_v57  ;;  %v1995_v4 = vmul.f32 1.442695, %v1743_v23  ;;  %v1997_v34 = vmul.f32 1.442695, %v1744_v42 }
 0x41f   : > { %v1679_v7 = vsub.f32 %v5550_v3, %v1538_v29  ;;  %v4720_v28 = vpop.eup %3172  ;;  %3198 = vpow2.f32 %v1861_v31  ;;  %v1999_v16 = vmul.f32 1.442695, %v1745_v35  ;;  %v1680_v43 = vsub.f32 %v5551_v32, %v1538_v29 }
 0x420   : > { %v4723_v63 = vpop.eup %3174  ;;  %3200 = vpow2.f32 %v1863_v52  ;;  %v2001_v10 = vmul.f32 1.442695, %v1746_v58  ;;  %v1681_v13 = vsub.f32 %v4009_v46, %v1538_v29  ;;  %v1682_v60 = vsub.f32 %v4013_v24, %v1538_v29 }
 0x421   : > { %v4727_v30 = vpop.eup %3176  ;;  %3202 = vpow2.f32 %v1865_v20  ;;  %v1867_v23 = vmul.f32 1.442695, %v1679_v7  ;;  %v2134_v57 = vadd.f32 %v4696_v45, %v2133_v0  ;;  %v2138_v31 = vadd.f32 %v4711_v40, %v4706_v54 }
 0x422   : > { %v4732_v35 = vpop.eup %3178  ;;  %3204 = vpow2.f32 %v1995_v4  ;;  %v1869_v42 = vmul.f32 1.442695, %v1680_v43  ;;  %v1871_v3 = vmul.f32 1.442695, %v1681_v13  ;;  %v2143_v58 = vadd.f32 %v4723_v63, %v4720_v28 }
 0x423   : > { %v4736_v46 = vpop.eup %3180  ;;  %3206 = vpow2.f32 %v1997_v34  ;;  %v2135_v24 = vadd.f32 %v4701_v22, %v2134_v57  ;;  %v2139_v52 = vadd.f32 %v4713_v47, %v2138_v31  ;;  %v1873_v34 = vmul.f32 1.442695, %v1682_v60 }
 0x424   : > { %v4742_v20 = vpop.eup %3182  ;;  %3208 = vpow2.f32 %v1999_v16  ;;  %v2144_v29 = vadd.f32 %v4727_v30, %v2143_v58 }
 0x425   : > { %v4749_v32 = vpop.eup %3184  ;;  %3210 = vpow2.f32 %v2001_v10  ;;  %2136 = vadd.xlane.f32.xlu0 %v2135_v24  ;;  %v2140_v43 = vadd.f32 %v4717_v41, %v2139_v52  ;;  %v2148_v13 = vadd.f32 %v4742_v20, %v4736_v46 }
 0x426   : > { %v4754_v57 = vpop.eup %3186  ;;  %3212 = vpow2.f32 %v1867_v23  ;;  %v2145_v16 = vadd.f32 %v4732_v35, %v2144_v29 }
 0x427   : > { %v4761_v7 = vpop.eup %3188  ;;  %3214 = vpow2.f32 %v1869_v42  ;;  %2141 = vadd.xlane.f32.xlu1 %v2140_v43  ;;  %v2149_v10 = vadd.f32 %v4749_v32, %v2148_v13 }
 0x428   : > { %v4766_v24 = vpop.eup %3190  ;;  %3216 = vpow2.f32 %v1871_v3 }
 0x429   : > { %v4774_v58 = vpop.eup %3192  ;;  %3218 = vpow2.f32 %v1873_v34  ;;  %2146 = vadd.xlane.f32.xlu0 %v2145_v16  ;;  %v2150_v42 = vadd.f32 %v4754_v57, %v2149_v10  ;;  %v2153_v43 = vadd.f32 %v4766_v24, %v4761_v7 }
 0x42a   : > { %v4781_v13 = vpop.eup %3194 }
 0x42b   : > { %v3197_v10 = vpop.eup %3196  ;;  %2151 = vadd.xlane.f32.xlu1 %v2150_v42  ;;  %v2154_v23 = vadd.f32 %v4774_v58, %v2153_v43 }
 0x42c   : > { %v3199_v29 = vpop.eup %3198 }
 0x42d   : > { %v3201_v31 = vpop.eup %3200  ;;  %v2155_v34 = vadd.f32 %v4781_v13, %v2154_v23  ;;  %v2073_v0 = vadd.f32 %v3199_v29, %v3197_v10 }
 0x42e   : > { %v3203_v4 = vpop.eup %3202 }
 0x42f   : > { %v4799_v16 = vpop.eup %3204  ;;  %2156 = vadd.xlane.f32.xlu0 %v2155_v34  ;;  %v2074_v42 = vadd.f32 %v3201_v31, %v2073_v0 }
 0x430   : > { %v4801_v43 = vpop.eup %3206 }
 0x431   : > { %v4803_v51 = vpop.eup %3208  ;;  %v2075_v3 = vadd.f32 %v3203_v4, %v2074_v42  ;;  %v2158_v60 = vadd.f32 %v4801_v43, %v4799_v16 }
 0x432   : > { %v4807_v33 = vpop.eup %3210 }
 0x433   : > { %v3213_v52 = vpop.eup %3212  ;;  %2076 = vadd.xlane.f32.xlu0 %v2075_v3  ;;  %v2159_v23 = vadd.f32 %v4803_v51, %v2158_v60  ;;  %v5552_v3 = vpack.c.bf16 %v4484_v37, %v4468_v53  ;;  %v5558_v53 = vld [vmem:[#allocation155_spill] sm:$0xff]  ;;  %v5559_v37 = vld [vmem:[#allocation152_spill] sm:$0xff] }
 0x434   : > { %v3215_v17 = vpop.eup %3214  ;;  %v2223_v62 = vpack.c.bf16 %v3213_v52, %v3197_v10  ;;  %v5553_v10 = vpack.c.bf16 %v4491_v50, %v4475_v39  ;;  %v5562_v39 = vld [vmem:[#allocation150_spill] sm:$0xff] }
 0x435   : > { %v3217_v12 = vpop.eup %3216  ;;  %v2160_v34 = vadd.f32 %v4807_v33, %v2159_v23  ;;  %v2224_v0 = vpack.c.bf16 %v3215_v17, %v3199_v29  ;;  %v2078_v36 = vadd.f32 %v3215_v17, %v3213_v52  ;;  %v5554_v17 = vpack.c.bf16 %v4480_v8, %v4461_v56  ;;  %v5565_v56 = vld [vmem:[#allocation57_spill] sm:$0xff]  ;;  %v5570_v52 = vld [vmem:[#allocation62_spill] sm:$0xff]  ;;  %v5573_v23 = vld [vmem:[#allocation59_spill] sm:$0xff] }
 0x436   : > { %v3219_v38 = vpop.eup %3218  ;;  %v2225_v44 = vpack.c.bf16 %v3217_v12, %v3201_v31  ;;  %v5567_v31 = vld [vmem:[#allocation154_spill] sm:$0xff] }
 0x437   : > { %2161 = vadd.xlane.f32.xlu1 %v2160_v34  ;;  %2341 = vmatprep.subr.bf16.mxu0 %v2224_v0  ;;  %v2226_v42 = vpack.c.bf16 %v3219_v38, %v3203_v4  ;;  %v2079_v48 = vadd.f32 %v3217_v12, %v2078_v36  ;;  %v5555_v12 = vpack.c.bf16 %v4444_v59, %v4418_v49  ;;  %v5564_v4 = vld [vmem:[#allocation61_spill] sm:$0xff]  ;;  %v5568_v59 = vld [vmem:[#allocation151_spill] sm:$0xff] }
 0x438   : > { %2342 = vmatpush1.bf16.msra.mxu0 %v2223_v62  ;;  %v5556_v62 = vld [vmem:[#allocation67_spill] sm:$0xff]  ;;  %v5566_v8 = vpack.c.bf16 %v5564_v4, %v5565_v56  ;;  %v5569_v49 = vpack.c.bf16 %v5567_v31, %v5568_v59  ;;  %v5592_v31 = vld [vmem:[#allocation48_spill] sm:$0xff] }
 0x439   : > { %2382 = vmatprep.subr.bf16.mxu1 %v2226_v42  ;;  %2343 = vmatprep.subr.bf16.mxu0 %v5552_v3  ;;  %v2080_v60 = vadd.f32 %v3219_v38, %v2079_v48  ;;  %v5557_v36 = vpack.c.bf16 %v4486_v2, %v5556_v62  ;;  %v5561_v38 = vld [vmem:[#allocation153_spill] sm:$0xff]  ;;  %v5571_v2 = vld [vmem:[#allocation58_spill] sm:$0xff]  ;;  %v5574_v34 = vld [vmem:[#allocation55_spill] sm:$0xff] }
 0x43a   : > { %2383 = vmatpush1.bf16.msra.mxu1 %v2225_v44  ;;  %v5560_v44 = vpack.c.bf16 %v5558_v53, %v5559_v37  ;;  %v5563_v50 = vpack.c.bf16 %v5561_v38, %v5562_v39  ;;  %v5572_v29 = vpack.c.bf16 %v5570_v52, %v5571_v2  ;;  %v5575_v0 = vpack.c.bf16 %v5573_v23, %v5574_v34  ;;  %v5576_v3 = vld [vmem:[#allocation53_spill] sm:$0xff]  ;;  %v5583_v53 = vld [vmem:[#allocation50_spill] sm:$0xff]  ;;  %v5586_v38 = vld [vmem:[#allocation47_spill] sm:$0xff] }
 0x43b   : > { %2384 = vmatprep.subr.bf16.mxu1 %v5553_v10  ;;  %2081 = vadd.xlane.f32.xlu1 %v2080_v60  ;;  %v5577_v60 = vld [vmem:[#allocation49_spill] sm:$0xff]  ;;  %v5589_v4 = vld [vmem:[#allocation143_spill] sm:$0xff]  ;;  %v5598_v23 = vld [vmem:[#allocation142_spill] sm:$0xff] }
 0x43c   : > { %2344 = vmatpush1.bf16.msra.mxu0 %v5554_v17  ;;  %v5578_v10 = vpack.c.bf16 %v5576_v3, %v5577_v60  ;;  %v5579_v17 = vld [vmem:[#allocation60_spill] sm:$0xff]  ;;  %v5595_v52 = vld [vmem:[#allocation145_spill] sm:$0xff]  ;;  %v5601_v3 = vld [vmem:[#allocation135_spill] sm:$0xff] }
 0x43d   : > { %2345 = vmatprep.subr.bf16.mxu0 %v5555_v12  ;;  %v5580_v12 = vld [vmem:[#allocation56_spill] sm:$0xff] }
 0x43e   : > { %2385 = vmatpush1.bf16.msra.mxu1 %v5557_v36  ;;  %v5581_v62 = vpack.c.bf16 %v5579_v17, %v5580_v12  ;;  %v5582_v36 = vld [vmem:[#allocation54_spill] sm:$0xff]  ;;  %v5604_v17 = vld [vmem:[#allocation144_spill] sm:$0xff] }
 0x43f   : > { %2386 = vmatprep.subr.bf16.mxu1 %v5560_v44  ;;  %v5584_v37 = vpack.c.bf16 %v5582_v36, %v5583_v53  ;;  %v5585_v44 = vld [vmem:[#allocation51_spill] sm:$0xff]  ;;  %v5607_v36 = vld [vmem:[#allocation137_spill] sm:$0xff] }
 0x440   : > { %2346 = vmatpush1.bf16.msra.mxu0 %v5563_v50  ;;  %v2007_v48 = vpop.xlane.xlu0 %2006  ;;  %v5587_v39 = vpack.c.bf16 %v5585_v44, %v5586_v38  ;;  %v5609_v44 = vld [vmem:[#allocation138_spill] sm:$0xff] }
 0x441   : > { %2347 = vmatprep.subr.bf16.mxu0 %v5566_v8  ;;  %3220 = vrcp.f32 %v2007_v48  ;;  %v5588_v48 = vld [vmem:[#allocation147_spill] sm:$0xff]  ;;  %v5591_v8 = vld [vmem:[#allocation52_spill] sm:$0xff]  ;;  %v5610_v38 = vld [vmem:[#allocation134_spill] sm:$0xff] }
 0x442   : > { %2387 = vmatpush1.bf16.msra.mxu1 %v5569_v49  ;;  %v5590_v56 = vpack.c.bf16 %v5588_v48, %v5589_v4  ;;  %v5593_v59 = vpack.c.bf16 %v5591_v8, %v5592_v31  ;;  %v5594_v49 = vld [vmem:[#allocation149_spill] sm:$0xff]  ;;  %v4883_v48 = vld [vmem:[%s5117_s7] ss:$0 sm:$0xff]  ;;  %v5613_v8 = vld [vmem:[#allocation18_spill] sm:$0xff] }
 0x443   : > { %2388 = vmatprep.subr.bf16.mxu1 %v5572_v29  ;;  %v5596_v2 = vpack.c.bf16 %v5594_v49, %v5595_v52  ;;  %v5597_v29 = vld [vmem:[#allocation146_spill] sm:$0xff]  ;;  %v5612_v4 = vld [vmem:[#allocation16_spill] sm:$0xff]  ;;  %v853_v31 = vadd.f32 %v4883_v48, %v5613_v8  ;;  %v5615_v49 = vld [vmem:[#allocation127_spill] sm:$0xff] }
 0x444   : > { %2348 = vmatpush1.bf16.msra.mxu0 %v5575_v0  ;;  %v5599_v34 = vpack.c.bf16 %v5597_v29, %v5598_v23  ;;  %v5617_v29 = vld [vmem:[#allocation140_spill] sm:$0xff] }
 0x445   : > { %v2012_v42 = vpop.xlane.xlu1 %2011  ;;  %2349 = vmatprep.subr.bf16.mxu0 %v5578_v10  ;;  %v5603_v10 = vld [vmem:[#allocation148_spill] sm:$0xff] }
 0x446   : > { %3222 = vrcp.f32 %v2012_v42  ;;  %2389 = vmatpush1.bf16.msra.mxu1 %v5581_v62  ;;  %v5600_v42 = vld [vmem:[#allocation139_spill] sm:$0xff]  ;;  %v5605_v12 = vpack.c.bf16 %v5603_v10, %v5604_v17  ;;  %v5606_v62 = vld [vmem:[#allocation141_spill] sm:$0xff]  ;;  %v5618_v23 = vld [vmem:[#allocation136_spill] sm:$0xff] }
 0x447   : > { %2390 = vmatprep.subr.bf16.mxu1 %v5584_v37  ;;  %v5602_v60 = vpack.c.bf16 %v5600_v42, %v5601_v3  ;;  %v5608_v53 = vpack.c.bf16 %v5606_v62, %v5607_v36  ;;  %v5621_v42 = vld [vmem:[#allocation129_spill] sm:$0xff]  ;;  %v5624_v62 = vld [vmem:[#allocation126_spill] sm:$0xff] }
 0x448   : > { %2350 = vmatpush1.bf16.msra.mxu0 %v5587_v39  ;;  %v2017_v50 = vpop.xlane.xlu0 %2016  ;;  %v5611_v39 = vpack.c.bf16 %v5609_v44, %v5610_v38  ;;  %v2258_v44 = vpack.c.bf16 %v4807_v33, %v4781_v13  ;;  %v5629_v33 = vld [vmem:[#allocation15_spill] sm:$0xff] }
 0x449   : > { %2351 = vmatprep.subr.bf16.mxu0 %v5590_v56  ;;  %3224 = vrcp.f32 %v2017_v50  ;;  %v850_v56 = vadd.f32 %v4883_v48, %v5612_v4  ;;  %v5627_v4 = vld [vmem:[#allocation128_spill] sm:$0xff]  ;;  %v858_v13 = vadd.f32 %v4883_v48, %v5629_v33 }
 0x44a   : > { %2391 = vmatpush1.bf16.msra.mxu1 %v5593_v59  ;;  %v5614_v59 = vld [vmem:[#allocation131_spill] sm:$0xff]  ;;  %v5662_v33 = vld [vmem:[#allocation80_spill] sm:$0xff] }
 0x44b   : > { %2392 = vmatprep.subr.bf16.mxu1 %v5596_v2  ;;  %v5616_v52 = vpack.c.bf16 %v5614_v59, %v5615_v49  ;;  %v5632_v49 = vpack.c.bf16 %v4711_v40, %v4694_v21  ;;  %v5637_v21 = vld [vmem:[#allocation22_spill] sm:$0xff] }
 0x44c   : > { %2352 = vmatpush1.bf16.msra.mxu0 %v5599_v34  ;;  %v5619_v34 = vpack.c.bf16 %v5617_v29, %v5618_v23  ;;  %v5636_v29 = vld [vmem:[#allocation20_spill] sm:$0xff]  ;;  %v869_v23 = vadd.f32 %v4883_v48, %v5637_v21 }
 0x44d   : > { %v2022_v0 = vpop.xlane.xlu1 %2021  ;;  %2353 = vmatprep.subr.bf16.mxu0 %v5602_v60  ;;  %v2256_v60 = vpack.c.bf16 %v4801_v43, %v4766_v24  ;;  %v2255_v24 = vpack.c.bf16 %v4799_v16, %v4761_v7  ;;  %v2252_v43 = vpack.c.bf16 %v4742_v20, %v4723_v63  ;;  %v2254_v7 = vpack.c.bf16 %v4754_v57, %v4732_v35 }
 0x44e   : > { %3226 = vrcp.f32 %v2022_v0  ;;  %2393 = vmatpush1.bf16.msra.mxu1 %v5605_v12  ;;  %v3221_v37 = vpop.eup %3220  ;;  %v5620_v0 = vld [vmem:[#allocation133_spill] sm:$0xff]  ;;  %v5623_v12 = vld [vmem:[#allocation130_spill] sm:$0xff]  ;;  %v5633_v35 = vpack.c.bf16 %v4749_v32, %v4727_v30  ;;  %v5634_v57 = vpack.c.bf16 %v4717_v41, %v4701_v22  ;;  %v866_v40 = vadd.f32 %v4883_v48, %v5636_v29 }
 0x44f   : > { %2394 = vmatprep.subr.bf16.mxu1 %v5608_v53  ;;  %v5622_v3 = vpack.c.bf16 %v5620_v0, %v5621_v42  ;;  %v2259_v10 = vmul.f32 %v3221_v37, %v850_v56  ;;  %v5625_v36 = vpack.c.bf16 %v5623_v12, %v5624_v62  ;;  %v5639_v0 = vld [vmem:[#allocation92_spill] sm:$0xff]  ;;  %v5641_v22 = vpack.c.bf16 %v4713_v47, %v4696_v45  ;;  %v5678_v29 = vld [vmem:[#allocation82_spill] sm:$0xff] }
 0x450   : > { %2354 = vmatpush1.bf16.msra.mxu0 %v5611_v39  ;;  %v2027_v50 = vpop.xlane.xlu0 %2026  ;;  %v5626_v39 = vld [vmem:[#allocation132_spill] sm:$0xff]  ;;  %v5643_v42 = vpack.c.bf16 %v4670_v11, %v4652_v19  ;;  %v5647_v47 = vpack.c.bf16 %v4678_v18, %v4660_v25  ;;  %v5651_v19 = vpack.c.bf16 %v4634_v6, %v4616_v1  ;;  %v5655_v25 = vld [vmem:[#allocation85_spill] sm:$0xff]  ;;  %v5659_v1 = vld [vmem:[#allocation86_spill] sm:$0xff] }
 0x451   : > { %2355 = vmatprep.subr.bf16.mxu0 %v5616_v52  ;;  %3228 = vrcp.f32 %v2027_v50  ;;  %v5628_v8 = vpack.c.bf16 %v5626_v39, %v5627_v4  ;;  %v2257_v50 = vpack.c.bf16 %v4803_v51, %v4774_v58  ;;  %v5631_v51 = vpack.c.bf16 %v4736_v46, %v4720_v28  ;;  %v5654_v4 = vld [vmem:[#allocation87_spill] sm:$0xff] }
 0x452   : > { %2395 = vmatpush1.bf16.msra.mxu1 %v5619_v34  ;;  %v5635_v28 = vpack.c.bf16 %v4706_v54, %v4688_v55  ;;  %v5638_v34 = vld [vmem:[#allocation94_spill] sm:$0xff]  ;;  %v5642_v55 = vpack.c.bf16 %v4683_v9, %v4665_v5  ;;  %v5648_v5 = vld [vmem:[#allocation93_spill] sm:$0xff]  ;;  %v5656_v18 = vpack.c.bf16 %v5654_v4, %v5655_v25 }
 0x453   : > { %v3223_v2 = vpop.eup %3222  ;;  %2396 = vmatprep.subr.bf16.mxu1 %v5622_v3  ;;  %v5640_v30 = vpack.c.bf16 %v5638_v34, %v5639_v0  ;;  %v5649_v9 = vld [vmem:[#allocation90_spill] sm:$0xff]  ;;  %v5682_v34 = vld [vmem:[#allocation71_spill] sm:$0xff] }
 0x454   : > { %v2260_v17 = vmul.f32 %v3223_v2, %v853_v31  ;;  %2356 = vmatpush1.bf16.msra.mxu0 %v5625_v36  ;;  %v5630_v31 = vld [vmem:[#allocation17_spill] sm:$0xff]  ;;  %v5650_v45 = vpack.c.bf16 %v5648_v5, %v5649_v9  ;;  %v5652_v36 = vld [vmem:[#allocation19_spill] sm:$0xff]  ;;  %v5693_v4 = vld [vmem:[#allocation30_spill] sm:$0xff] }
 0x455   : > { %v2032_v53 = vpop.xlane.xlu1 %2031  ;;  %2357 = vmatprep.subr.bf16.mxu0 %v2256_v60  ;;  %v861_v59 = vadd.f32 %v4883_v48, %v5630_v31  ;;  %v5644_v60 = vld [vmem:[#allocation91_spill] sm:$0xff]  ;;  %v5691_v5 = vld [vmem:[#allocation25_spill] sm:$0xff]  ;;  %v901_v25 = vadd.f32 %v4883_v48, %v5693_v4 }
 0x456   : > { %3230 = vrcp.f32 %v2032_v53  ;;  %v2291_v38 = vpack.c.bf16 %v2260_v17, %v2259_v10  ;;  %2397 = vmatpush1.bf16.msra.mxu1 %v5628_v8  ;;  %v3225_v37 = vpop.eup %3224  ;;  %v5645_v10 = vld [vmem:[#allocation88_spill] sm:$0xff]  ;;  %v874_v53 = vadd.f32 %v4883_v48, %v5652_v36  ;;  %v893_v9 = vadd.f32 %v4883_v48, %v5691_v5  ;;  %v5704_v4 = vld [vmem:[#allocation39_spill] sm:$0xff] }
 0x457   : > { %2398 = vmatprep.subr.bf16.mxu1 %v2258_v44  ;;  %v2261_v63 = vmul.f32 %v3225_v37, %v858_v13  ;;  %v5646_v17 = vpack.c.bf16 %v5644_v60, %v5645_v10  ;;  %v5653_v44 = vld [vmem:[#allocation21_spill] sm:$0xff]  ;;  %v5663_v13 = vld [vmem:[#allocation76_spill] sm:$0xff]  ;;  %v5688_v60 = vld [vmem:[#allocation70_spill] sm:$0xff] }
 0x458   : > { %2358 = vmatpush2.bf16.msra.mxu0 %v2255_v24  ;;  %v2037_v56 = vpop.xlane.xlu0 %2036  ;;  %v877_v39 = vadd.f32 %v4883_v48, %v5653_v44  ;;  %v5657_v24 = vpack.c.bf16 %v4642_v61, %v4624_v15  ;;  %v5664_v31 = vpack.c.bf16 %v5662_v33, %v5663_v13  ;;  %v5665_v61 = vld [vmem:[#allocation84_spill] sm:$0xff]  ;;  %v5695_v13 = vld [vmem:[#allocation34_spill] sm:$0xff] }
 0x459   : > { %2359 = vmatprep.subr.bf16.mxu0 %v2252_v43  ;;  %3232 = vrcp.f32 %v2037_v56  ;;  %v5658_v43 = vld [vmem:[#allocation89_spill] sm:$0xff]  ;;  %v5692_v44 = vld [vmem:[#allocation28_spill] sm:$0xff] }
 0x45a   : > { %2399 = vmatpush2.bf16.msra.mxu1 %v2257_v50  ;;  %v5660_v6 = vpack.c.bf16 %v5658_v43, %v5659_v1  ;;  %v5661_v50 = vpack.c.bf16 %v4598_v27, %v4580_v14  ;;  %v5671_v14 = vld [vmem:[#allocation77_spill] sm:$0xff] }
 0x45b   : > { %v3227_v16 = vpop.eup %3226  ;;  %2400 = vmatprep.subr.bf16.mxu1 %v2254_v7  ;;  %v5667_v7 = vld [vmem:[#allocation83_spill] sm:$0xff] }
 0x45c   : > { %v2262_v20 = vmul.f32 %v3227_v16, %v861_v59  ;;  %2360 = vmatpush2.bf16.msra.mxu0 %v5631_v51  ;;  %v5666_v59 = vpack.c.bf16 %v4606_v26, %v5665_v61  ;;  %v5668_v16 = vld [vmem:[#allocation79_spill] sm:$0xff]  ;;  %v5670_v51 = vld [vmem:[#allocation81_spill] sm:$0xff]  ;;  %v5676_v26 = vld [vmem:[#allocation68_spill] sm:$0xff] }
 0x45d   : > { %v2042_v58 = vpop.xlane.xlu1 %2041  ;;  %2361 = vmatprep.subr.bf16.mxu0 %v5632_v49  ;;  %v5672_v27 = vpack.c.bf16 %v5670_v51, %v5671_v14  ;;  %v5673_v49 = vld [vmem:[#allocation24_spill] sm:$0xff]  ;;  %v5696_v51 = vld [vmem:[#allocation31_spill] sm:$0xff] }
 0x45e   : > { %3234 = vrcp.f32 %v2042_v58  ;;  %v2292_v52 = vpack.c.bf16 %v2262_v20, %v2261_v63  ;;  %2401 = vmatpush2.bf16.msra.mxu1 %v5633_v35  ;;  %v3229_v2 = vpop.eup %3228  ;;  %v5669_v63 = vpack.c.bf16 %v5667_v7, %v5668_v16  ;;  %v5674_v35 = vld [vmem:[#allocation26_spill] sm:$0xff]  ;;  %v922_v14 = vadd.f32 %v4883_v48, %v5696_v51 }
 0x45f   : > { %2402 = vmatprep.subr.bf16.mxu1 %v5634_v57  ;;  %v2263_v54 = vmul.f32 %v3229_v2, %v866_v40  ;;  %v885_v57 = vadd.f32 %v4883_v48, %v5674_v35  ;;  %v5675_v2 = vld [vmem:[#allocation72_spill] sm:$0xff]  ;;  %v5679_v40 = vld [vmem:[#allocation78_spill] sm:$0xff] }
 0x460   : > { %2362 = vmatpush2.bf16.msra.mxu0 %v5635_v28  ;;  %v2047_v46 = vpop.xlane.xlu0 %2046  ;;  %v5677_v28 = vpack.c.bf16 %v5675_v2, %v5676_v26  ;;  %v5680_v21 = vpack.c.bf16 %v5678_v29, %v5679_v40  ;;  %v5699_v40 = vld [vmem:[#allocation38_spill] sm:$0xff] }
 0x461   : > { %2363 = vmatprep.subr.bf16.mxu0 %v5640_v30  ;;  %3236 = vrcp.f32 %v2047_v46 }
 0x462   : > { %2403 = vmatpush2.bf16.msra.mxu1 %v5641_v22  ;;  %v5684_v22 = vld [vmem:[#allocation73_spill] sm:$0xff] }
 0x463   : > { %v3231_v32 = vpop.eup %3230  ;;  %2404 = vmatprep.subr.bf16.mxu1 %v5642_v55  ;;  %v5685_v55 = vld [vmem:[#allocation69_spill] sm:$0xff] }
 0x464   : > { %v2264_v41 = vmul.f32 %v3231_v32, %v869_v23  ;;  %2364 = vmatpush2.bf16.msra.mxu0 %v5643_v42  ;;  %v5681_v23 = vld [vmem:[#allocation75_spill] sm:$0xff] }
 0x465   : > { %v2052_v3 = vpop.xlane.xlu1 %2051  ;;  %2365 = vmatprep.subr.bf16.mxu0 %v5646_v17  ;;  %v5683_v0 = vpack.c.bf16 %v5681_v23, %v5682_v34 }
 0x466   : > { %3238 = vrcp.f32 %v2052_v3  ;;  %v2293_v12 = vpack.c.bf16 %v2264_v41, %v2263_v54  ;;  %2405 = vmatpush2.bf16.msra.mxu1 %v5647_v47  ;;  %v3233_v62 = vpop.eup %3232  ;;  %v5686_v54 = vpack.c.bf16 %v5684_v22, %v5685_v55  ;;  %v5687_v3 = vld [vmem:[#allocation74_spill] sm:$0xff] }
 0x467   : > { %2406 = vmatprep.subr.bf16.mxu1 %v5650_v45  ;;  %v5689_v10 = vpack.c.bf16 %v5687_v3, %v5688_v60 }
 0x468   : > { %2366 = vmatpush2.bf16.msra.mxu0 %v5651_v19  ;;  %2309 = vxpose.xlu1.c.b16.start [1/8] (narrow) %v2291_v38, 16  ;;  %v2057_v11 = vpop.xlane.xlu0 %2056  ;;  %v2265_v38 = vmul.f32 %v3233_v62, %v874_v53 }
 0x469   : > { %2367 = vmatprep.subr.bf16.mxu0 %v5656_v18  ;;  %3240 = vrcp.f32 %v2057_v11 }
 0x46a   : > { %2407 = vmatpush2.bf16.msra.mxu1 %v5657_v24 }
 0x46b   : > { %v3235_v8 = vpop.eup %3234  ;;  %2408 = vmatprep.subr.bf16.mxu1 %v5660_v6 }
 0x46c   : > { %v2266_v37 = vmul.f32 %v3235_v8, %v877_v39  ;;  %2368 = vmatpush2.bf16.msra.mxu0 %v5661_v50  ;;  %2310 = vxpose.xlu1.c.b16.cont [2/8] (narrow) %v2292_v52, 16  ;;  %v2062_v56 = vpop.xlane.xlu1 %2061  ;;  %v882_v52 = vadd.f32 %v4883_v48, %v5673_v49  ;;  %v898_v39 = vadd.f32 %v4883_v48, %v5692_v44 }
 0x46d   : > { %2369 = vmatprep.subr.bf16.mxu0 %v5664_v31  ;;  %3242 = vrcp.f32 %v2062_v56  ;;  %v5694_v56 = vld [vmem:[#allocation32_spill] sm:$0xff]  ;;  %v917_v31 = vadd.f32 %v4883_v48, %v5695_v13 }
 0x46e   : > { %v2294_v15 = vpack.c.bf16 %v2266_v37, %v2265_v38  ;;  %2409 = vmatpush2.bf16.msra.mxu1 %v5666_v59  ;;  %v3237_v20 = vpop.eup %3236  ;;  %v914_v33 = vadd.f32 %v4883_v48, %v5694_v56  ;;  %v5707_v56 = vld [vmem:[#allocation44_spill] sm:$0xff] }
 0x46f   : > { %2410 = vmatprep.subr.bf16.mxu1 %v5669_v63  ;;  %v2267_v30 = vmul.f32 %v3237_v20, %v882_v52 }
 0x470   : > { %2370 = vmatpush2.bf16.msra.mxu0 %v5672_v27  ;;  %2311 = vxpose.xlu1.c.b16.cont [3/8] (narrow) %v2293_v12, 16  ;;  %v2067_v58 = vpop.xlane.xlu0 %2066  ;;  %v5690_v12 = vld [vmem:[#allocation23_spill] sm:$0xff]  ;;  %v5697_v27 = vld [vmem:[#allocation33_spill] sm:$0xff] }
 0x471   : > { %2371 = vmatprep.subr.bf16.mxu0 %v5677_v28  ;;  %3244 = vrcp.f32 %v2067_v58  ;;  %v890_v47 = vadd.f32 %v4883_v48, %v5690_v12  ;;  %v925_v58 = vadd.f32 %v4883_v48, %v5697_v27  ;;  %v5710_v27 = vld [vmem:[#allocation27_spill] sm:$0xff] }
 0x472   : > { %2411 = vmatpush2.bf16.msra.mxu1 %v5680_v21  ;;  %v933_v21 = vadd.f32 %v4883_v48, %v5699_v40  ;;  %v2308_v40 = vld [vmem:[#allocation3 + $0x8] sm:$0xff] }
 0x473   : > { %v3239_v46 = vpop.eup %3238  ;;  %2412 = vmatprep.subr.bf16.mxu1 %v5683_v0 }
 0x474   : > { %v2268_v32 = vmul.f32 %v3239_v46, %v885_v57  ;;  %2372 = vmatpush2.bf16.msra.mxu0 %v5686_v54  ;;  %2312 = vxpose.xlu1.c.b16.cont [4/8] (narrow) %v2294_v15, 16  ;;  %v2072_v41 = vpop.xlane.xlu1 %2071  ;;  %v5698_v46 = vld [vmem:[#allocation36_spill] sm:$0xff]  ;;  %v5700_v54 = vld [vmem:[#allocation35_spill] sm:$0xff] }
 0x475   : > { %3246 = vrcp.f32 %v2072_v41  ;;  %v930_v29 = vadd.f32 %v4883_v48, %v5698_v46  ;;  %v2307_v46 = vld [vmem:[#allocation3] sm:$0xff] }
 0x476   : > { %v2295_v42 = vpack.c.bf16 %v2268_v32, %v2267_v30  ;;  %2413 = vmatpush2.bf16.msra.mxu1 %v5689_v10  ;;  %v3241_v17 = vpop.eup %3240 }
 0x477   : > { %v2269_v62 = vmul.f32 %v3241_v17, %v890_v47 }
 0x478   : > { %2313 = vxpose.xlu1.c.b16.cont [5/8] (narrow) %v2295_v42, 16  ;;  %v5701_v42 = vld [vmem:[#allocation37_spill] sm:$0xff] }
 0x47a   : > { %v3243_v45 = vpop.eup %3242 }
 0x47b   : > { %v2270_v19 = vmul.f32 %v3243_v45, %v893_v9  ;;  %v5702_v9 = vld [vmem:[#allocation40_spill] sm:$0xff] }
 0x47d   : > { %v2296_v11 = vpack.c.bf16 %v2270_v19, %v2269_v62  ;;  %v5703_v62 = vld [vmem:[#allocation42_spill] sm:$0xff] }
 0x47e   : > { %v3245_v36 = vpop.eup %3244 }
 0x47f   : > { %2314 = vxpose.xlu1.c.b16.cont [6/8] (narrow) %v2296_v11, 16  ;;  %v2271_v8 = vmul.f32 %v3245_v36, %v898_v39 }
 0x480   : > { %v2087_v53 = vpop.xlane.xlu0 %2086 }
 0x481   : > { %3248 = vrcp.f32 %v2087_v53 }
 0x482   : > { %v3247_v18 = vpop.eup %3246 }
 0x483   : > { %v2272_v24 = vmul.f32 %v3247_v18, %v901_v25  ;;  %v5705_v18 = vld [vmem:[#allocation41_spill] sm:$0xff] }
 0x485   : > { %v2092_v43 = vpop.xlane.xlu1 %2091  ;;  %v2297_v1 = vpack.c.bf16 %v2272_v24, %v2271_v8 }
 0x486   : > { %3250 = vrcp.f32 %v2092_v43 }
 0x487   : > { %2315 = vxpose.xlu1.c.b16.cont [7/8] (narrow) %v2297_v1, 16 }
 0x488   : > { %v2097_v6 = vpop.xlane.xlu0 %2096 }
 0x489   : > { %3252 = vrcp.f32 %v2097_v6  ;;  %v5706_v6 = vld [vmem:[#allocation46_spill] sm:$0xff] }
 0x48d   : > { %v2102_v38 = vpop.xlane.xlu1 %2101 }
 0x48e   : > { %3254 = vrcp.f32 %v2102_v38  ;;  %v3249_v37 = vpop.eup %3248  ;;  %v965_v38 = vadd.f32 %v4883_v48, %v5706_v6 }
 0x48f   : > { %v2275_v61 = vmul.f32 %v3249_v37, %v914_v33 }
 0x490   : > { %v2107_v50 = vpop.xlane.xlu0 %2106 }
 0x491   : > { %3256 = vrcp.f32 %v2107_v50 }
 0x493   : > { %v3251_v15 = vpop.eup %3250 }
 0x494   : > { %v2276_v59 = vmul.f32 %v3251_v15, %v917_v31 }
 0x495   : > { %v2112_v7 = vpop.xlane.xlu1 %2111 }
 0x496   : > { %3258 = vrcp.f32 %v2112_v7  ;;  %v2299_v16 = vpack.c.bf16 %v2276_v59, %v2275_v61  ;;  %v3253_v63 = vpop.eup %3252  ;;  %v5708_v7 = vld [vmem:[#allocation43_spill] sm:$0xff] }
 0x497   : > { %v2277_v52 = vmul.f32 %v3253_v63, %v922_v14  ;;  %v5709_v63 = vld [vmem:[#allocation45_spill] sm:$0xff] }
 0x498   : > { %2325 = vxpose.xlu0.c.b16.start [1/8] (narrow) %v2299_v16, 16  ;;  %v2117_v20 = vpop.xlane.xlu0 %2116 }
 0x499   : > { %3260 = vrcp.f32 %v2117_v20 }
 0x49b   : > { %v3255_v49 = vpop.eup %3254 }
 0x49c   : > { %v2278_v35 = vmul.f32 %v3255_v49, %v925_v58  ;;  %v5711_v49 = vld [vmem:[#allocation29_spill] sm:$0xff] }
 0x49d   : > { %v2122_v57 = vpop.xlane.xlu1 %2121 }
 0x49e   : > { %3262 = vrcp.f32 %v2122_v57  ;;  %v2300_v2 = vpack.c.bf16 %v2278_v35, %v2277_v52  ;;  %v3257_v26 = vpop.eup %3256 }
 0x49f   : > { %v2279_v34 = vmul.f32 %v3257_v26, %v930_v29 }
 0x4a0   : > { %2326 = vxpose.xlu0.c.b16.cont [2/8] (narrow) %v2300_v2, 16  ;;  %v2127_v28 = vpop.xlane.xlu0 %2126 }
 0x4a1   : > { %3264 = vrcp.f32 %v2127_v28 }
 0x4a3   : > { %v3259_v23 = vpop.eup %3258 }
 0x4a4   : > { %v2280_v0 = vmul.f32 %v3259_v23, %v933_v21 }
 0x4a5   : > { %v2132_v30 = vpop.xlane.xlu1 %2131 }
 0x4a6   : > { %3266 = vrcp.f32 %v2132_v30  ;;  %v2301_v32 = vpack.c.bf16 %v2280_v0, %v2279_v34  ;;  %v3261_v22 = vpop.eup %3260 }
 0x4a7   : > { %v2281_v41 = vmul.f32 %v3261_v22, %v5700_v54 }
 0x4a8   : > { %2327 = vxpose.xlu0.c.b16.cont [3/8] (narrow) %v2301_v32, 16 }
 0x4ab   : > { %v3263_v55 = vpop.eup %3262 }
 0x4ac   : > { %v2282_v3 = vmul.f32 %v3263_v55, %v5701_v42 }
 0x4ae   : > { %v2302_v60 = vpack.c.bf16 %v2282_v3, %v2281_v41  ;;  %v2137_v10 = vpop.xlane.xlu0 %2136  ;;  %v3265_v17 = vpop.eup %3264 }
 0x4af   : > { %3268 = vrcp.f32 %v2137_v10  ;;  %v2283_v45 = vmul.f32 %v3265_v17, %v5702_v9 }
 0x4b0   : > { %2328 = vxpose.xlu0.c.b16.cont [4/8] (narrow) %v2302_v60, 16  ;;  %v2142_v12 = vpop.xlane.xlu1 %2141 }
 0x4b1   : > { %3270 = vrcp.f32 %v2142_v12 }
 0x4b2   : > { %v2147_v5 = vpop.xlane.xlu0 %2146 }
 0x4b3   : > { %v3267_v47 = vpop.eup %3266  ;;  %3272 = vrcp.f32 %v2147_v5 }
 0x4b4   : > { %v2284_v19 = vmul.f32 %v3267_v47, %v5703_v62  ;;  %v2152_v11 = vpop.xlane.xlu1 %2151 }
 0x4b5   : > { %3274 = vrcp.f32 %v2152_v11 }
 0x4b6   : > { %v2303_v36 = vpack.c.bf16 %v2284_v19, %v2283_v45 }
 0x4b8   : > { %2329 = vxpose.xlu0.c.b16.cont [5/8] (narrow) %v2303_v36, 16  ;;  %v2157_v53 = vpop.xlane.xlu0 %2156 }
 0x4b9   : > { %3276 = vrcp.f32 %v2157_v53 }
 0x4bc   : > { %v3269_v44 = vpop.eup %3268  ;;  %v2077_v43 = vpop.xlane.xlu0 %2076 }
 0x4bd   : > { %v2285_v25 = vmul.f32 %v3269_v44, %v5704_v4 }
 0x4be   : > { %v3271_v39 = vpop.eup %3270 }
 0x4bf   : > { %v2286_v8 = vmul.f32 %v3271_v39, %v5705_v18 }
 0x4c0   : > { %v3273_v24 = vpop.eup %3272  ;;  %v2162_v1 = vpop.xlane.xlu1 %2161 }
 0x4c1   : > { %3278 = vrcp.f32 %v2162_v1  ;;  %v2304_v37 = vpack.c.bf16 %v2286_v8, %v2285_v25  ;;  %v2287_v33 = vmul.f32 %v3273_v24, %v5707_v56 }
 0x4c2   : > { %v3275_v50 = vpop.eup %3274  ;;  %3280 = vrcp.f32 %v2077_v43 }
 0x4c3   : > { %2330 = vxpose.xlu0.c.b16.cont [6/8] (narrow) %v2304_v37, 16  ;;  %v2288_v13 = vmul.f32 %v3275_v50, %v965_v38 }
 0x4c4   : > { %v2082_v31 = vpop.xlane.xlu1 %2081 }
 0x4c5   : > { %3282 = vrcp.f32 %v2082_v31  ;;  %v2305_v15 = vpack.c.bf16 %v2288_v13, %v2287_v33 }
 0x4c6   : > { %v3277_v61 = vpop.eup %3276 }
 0x4c7   : > { %2331 = vxpose.xlu0.c.b16.cont [7/8] (narrow) %v2305_v15, 16  ;;  %v2289_v16 = vmul.f32 %v3277_v61, %v5708_v7 }
 0x4ce   : > { %v3279_v59 = vpop.eup %3278 }
 0x4cf   : > { %v2290_v20 = vmul.f32 %v3279_v59, %v5709_v63  ;;  %v3281_v51 = vpop.eup %3280 }
 0x4d0   : > { %v2273_v58 = vmul.f32 %v3281_v51, %v5710_v27 }
 0x4d1   : > { %v2306_v48 = vpack.c.bf16 %v2290_v20, %v2289_v16 }
 0x4d2   : > { %v3283_v14 = vpop.eup %3282 }
 0x4d3   : > { %2332 = vxpose.xlu0.c.b16.end [8/8] (narrow) %v2306_v48, 16  ;;  %v2274_v52 = vmul.f32 %v3283_v14, %v5711_v49 }
 0x4d5   : > { %v2298_v35 = vpack.c.bf16 %v2274_v52, %v2273_v58 }
 0x4d7   : > { %2316 = vxpose.xlu1.c.b16.end [8/8] (narrow) %v2298_v35, 16 }
 0x519   : > { %v2333_v57 = vpop.trf.xlu0 }
 0x51a   : > { %2373 = vmatprep.mubr.bf16.mxu0 %v2333_v57  ;;  %2414 = vmatprep.mubr.bf16.mxu1 %v2333_v57 }
 0x51d   : > { %v2317_v2 = vpop.trf.xlu1 }
 0x51e   : > { %2374 = vmatmul.mubr.bf16.vlgmr.msra.gmra.mxu0 %v2317_v2  ;;  %2415 = vmatmul.mubr.bf16.vlgmr.msra.gmra.mxu1 %v2317_v2 }
 0x5de   : > { %v2375_v26 = vpop.f32.mrf.mxu0  ;;  %v2416_v28 = vpop.f32.mrf.mxu1 }
 0x5e0   : > { %v2377_v29 = vpop.f32.mrf.mxu0  ;;  %v2418_v21 = vpop.f32.mrf.mxu1 }
 0x5e1   : > { %v2427_v23 = vcombine.low %v2375_v26, %v2377_v29  ;;  %v2428_v34 = vcombine.low %v2416_v28, %v2418_v21  ;;  %2438 = sbr.rel (%p2762_p9) target bundleno = 1729 (0x6c1), region = 72 }
 0x5e2   : > { %v2379_v0 = vpop.f32.mrf.mxu0  ;;  %v2420_v30 = vpop.f32.mrf.mxu1 }
 0x5e3   : > { %v2431_v32 = vadd.f32 %v2427_v23, %v2307_v46  ;;  %v2432_v22 = vadd.f32 %v2428_v34, %v2308_v40 }
 0x5e4   : > { %v2380_v55 = vpop.f32.mrf.mxu0  ;;  %v2421_v54 = vpop.f32.mrf.mxu1 }
 0x5e5   : > { %2433 = vst [vmem:[#allocation3] sm:$0xff] %v2431_v32  ;;  %2434 = vst [vmem:[#allocation3 + $0x8] sm:$0xff] %v2432_v22 }
 0x5e6   : > { %v3420_v12 = vmov 0   ;;  %v2452_v47 = vld [vmem:[%s5118_s8] sm:$0xff]  ;;  %v2560_v53 = vstv %s2559_s25  ;;  %v2555_v25 = vld [vmem:[%s3583_s23] sm:$0xff]  ;;  %v2557_v18 = vld [vmem:[%s3583_s23 + $0x10] sm:$0xff] }
 0x5e7   : > { %2505 = vmatprep.mubr.bf16.mxu0 %v3420_v12  ;;  %2546 = vmatprep.mubr.bf16.mxu1 %v3420_v12  ;;  %v2439_v19 = vld [vmem:[%s5114_s4] sm:$0xf]  ;;  %v2558_v50 = vld [vmem:[%s3583_s23 + $0x18] sm:$0xff] }
 0x5e8   : > { %3285 = vset.pattern.permute.xlu0 %v3420_v12  ;;  %v2556_v37 = vld [vmem:[%s3583_s23 + $0x8] sm:$0xff] }
 0x5e9   : > { %2455 = vperm.xlu0 %3285, %v2452_v47  }
 0x5ec   : > { %v2440_v41 = vld [vmem:[#allocation3] sm:$0xff]  ;;  %v2441_v42 = vld [vmem:[#allocation3 + $0x8] sm:$0xff] }
 0x5ed   : > { %v2444_v3 = vcombine.high %v2440_v41, %v2440_v41  ;;  %v2445_v60 = vcombine.high %v2441_v42, %v2441_v42  ;;  %v2448_v10 = vpack.c.bf16 %v2440_v41, %v2440_v41  ;;  %v2450_v17 = vpack.c.bf16 %v2441_v42, %v2441_v42 }
 0x5ef   : > { %v2449_v5 = vpack.c.bf16 %v2444_v3, %v2444_v3  ;;  %v2451_v9 = vpack.c.bf16 %v2445_v60, %v2445_v60  ;;  %v2462_v45 = vsel %vm1060_vm3, %v2448_v10, 0  ;;  %v2468_v62 = vsel %vm1060_vm3, %v2450_v17, 0 }
 0x5f1   : > { %2763 = vmatprep.subr.msk.bf16.mxu0 %vm1060_vm3, %v2449_v5  ;;  %2765 = vmatprep.subr.msk.bf16.mxu1 %vm1060_vm3, %v2451_v9 }
 0x5f2   : > { %2488 = vmatpush1.bf16.msra.mxu0 %v2462_v45  ;;  %2529 = vmatpush1.bf16.msra.mxu1 %v2468_v62 }
 0x5f5   : > { %2764 = vmatmul.mubr.msk.bf16.vlgmr.msra.gmra.mxu0 %vm1011_vm5, %v2439_v19  ;;  %2766 = vmatmul.mubr.msk.bf16.vlgmr.msra.gmra.mxu1 %vm1011_vm5, %v2439_v19 }
 0x664   : > { %v2456_v11 = vpop.permute.xlu0 %2455 }
 0x6b5   : > { %v2507_v36 = vpop.f32.mrf.mxu0  ;;  %v2548_v44 = vpop.f32.mrf.mxu1 }
 0x6b6   : > { %v2508_v39 = vadd.f32 %v2507_v36, %v2456_v11  ;;  %v2549_v4 = vadd.f32 %v2548_v44, %v2456_v11 }
 0x6b7   : > { %v2509_v8 = vpop.f32.mrf.mxu0  ;;  %v2550_v24 = vpop.f32.mrf.mxu1 }
 0x6b8   : > { %v2561_v43 = vmul.f32 %v2560_v53, %v2508_v39  ;;  %v2563_v1 = vmul.f32 %v2560_v53, %v2549_v4  ;;  %v2510_v6 = vadd.f32 %v2509_v8, %v2456_v11  ;;  %v2551_v38 = vadd.f32 %v2550_v24, %v2456_v11 }
 0x6b9   : > { %v2511_v56 = vpop.f32.mrf.mxu0  ;;  %v2552_v33 = vpop.f32.mrf.mxu1 }
 0x6ba   : > { %v2565_v13 = vadd.f32 %v2561_v43, %v2555_v25  ;;  %v2567_v31 = vadd.f32 %v2563_v1, %v2557_v18  ;;  %v2562_v15 = vmul.f32 %v2560_v53, %v2510_v6  ;;  %v2564_v61 = vmul.f32 %v2560_v53, %v2551_v38 }
 0x6bb   : > { %v2512_v59 = vpop.f32.mrf.mxu0  ;;  %v2553_v7 = vpop.f32.mrf.mxu1 }
 0x6bc   : > { %v2569_v16 = vmax.f32 %v2565_v13, 0.0  ;;  %v2571_v63 = vmax.f32 %v2567_v31, 0.0  ;;  %v2566_v20 = vadd.f32 %v2562_v15, %v2556_v37  ;;  %v2568_v51 = vadd.f32 %v2564_v61, %v2558_v50 }
 0x6be   : > { %2573 = vst [vmem:[%s3589_s10] sm:$0xff] %v2569_v16  ;;  %2575 = vst [vmem:[%s3589_s10 + $0x10] sm:$0xff] %v2571_v63  ;;  %v2570_v48 = vmax.f32 %v2566_v20, 0.0  ;;  %v2572_v14 = vmax.f32 %v2568_v51, 0.0 }
 0x6c0   : > { %2574 = vst [vmem:[%s3589_s10 + $0x8] sm:$0xff] %v2570_v48  ;;  %2576 = vst [vmem:[%s3589_s10 + $0x18] sm:$0xff] %v2572_v14 }
 0x6c1 PF: > { %s2773_s23 = sshll.u32 %s3400_s19, 9  ;;  %s5712_s26 = sld [smem:[#allocation156_spill]] }
 0x6c2   : > { %s2592_s9 = sshll.u32 %s3589_s10, 4  ;;  %s2578_s15 = scalar_lea.sflag [#allocation7], %s3579_s27  ;;  %s2593_s9 = int_to_ptr.vmem [resolvable:$true] %s2592_s9 }
 0x6c3   : > { %s3316_s12 = scalar_lea.vmem %s2593_s9, 512  ;;  %s3421_s14 = smov [#allocation8]  }
 0x6c4   : > { %p3317_p11 = scmp.ne.s32.totalorder %s2593_s9, %s3316_s12  ;;  %s3320_s18 = sshll.u32 %s3421_s14, 4  ;;  %s3321_s18 = int_to_ptr.vmem [resolvable:$false] %s3320_s18 }
 0x6c5   : > { %s3322_s20 = scalar_lea.vmem %s3321_s18, 1024  ;;  %p3323_p4 = scmp.lt.s32.totalorder %s2593_s9, %s3321_s18 }
 0x6c6   : > { %p3318_p1 = pnand %p3317_p11, %p3543_p10  ;;  %p3324_p5 = scmp.lt.s32.totalorder %s3322_s20, %s3316_s12 }
 0x6c7   : > { %s2590_s24 = scalar_lea.hbm %s5712_s26, %s2773_s23 }
 0x6c8   : > { %p3319_p2 = pneg %p3318_p1  ;;  %p3325_p6 = por %p3324_p5, %p3323_p4 }
 0x6ca   : > { %p3326_p7 = pnand %p3325_p6, %p3319_p2 }
 0x6cc   : > { %3329 = shalt.err (!%p3326_p7)
}
 0x6cd   : > { %s3330_s19 = scalar_lea.hbm %s2590_s24, 512  ;;  %s3334_s25 = scalar_lea.hbm %s5712_s26, 1024 }
 0x6ce   : > { %p3331_p8 = scmp.ne.s32.totalorder %s2590_s24, %s3330_s19  ;;  %p3335_p13 = scmp.lt.s32.totalorder %s2590_s24, %s5712_s26 }
 0x6cf   : > { %p3336_p0 = scmp.lt.s32.totalorder %s3334_s25, %s3330_s19 }
 0x6d0   : > { %p3332_p12 = pnand %p3331_p8, %p3543_p10 }
 0x6d1   : > { %p3337_p9 = por %p3336_p0, %p3335_p13 }
 0x6d2   : > { %p3333_p3 = pneg %p3332_p12 }
 0x6d4   : > { %p3338_p11 = pnand %p3337_p9, %p3333_p3 }
 0x6d6   : > { %3341 = shalt.err (!%p3338_p11)
}
 0x6d7   : > { %2880 = dma.vmem_to_hbm [thread:$0]  (%p3543_p10), %s2593_s9, 512, %s2590_s24, %s2578_s15  }
 0x6d8 PF: > { %s5713_s30 = sld [smem:[#allocation11_spill]]  ;;  %p2891_p1 = scmp.ge.s32.totalorder %s3412_s22, 2 }
 0x6d9   : > { %p5714_p2 = scmp.ne.s32.totalorder %s5286_s11, 0 }
 0x6db   : > { %p2887_p4 = pnand %p2891_p1, %p5714_p2 }
 0x6dd   : > { %p2888_p5 = pneg %p2887_p4 }
 0x6de   : > { %s2604_s12 = sand.u32 1, %s5713_s30  }
 0x6df   : > { %s2605_s14 = scalar_lea.sflag [#allocation7], %s2604_s12 }
 0x6e0   : > { %3379 = dma.done.wait (%p2888_p5), %s2605_s14, 512  }
 0x6e1   : > { %3381 = vsyncadd (%p2888_p5), %s2605_s14, 4294966784  ;;  %s27_s22 = sadd.s32 1, %s3412_s22   ;;  %s5715_s18 = sld [smem:[#allocation12_spill]] }
 0x6e2   : > { %p24_p6 = scmp.ge.s32.totalorder %s27_s22, 6   ;;  %s5716_s20 = sld [smem:[#allocation13_spill]] }
 0x6e3   : > { %s5717_s29 = sld [smem:[#allocation14_spill]]  ;;  %s5718_s15 = smov %s3388_s16 }
 0x6e4   : > { %s5719_s16 = smov %s3392_s17  ;;  %s5720_s17 = smov %s3556_s13 }
 0x6e5   : > { %s5721_s19 = smov %s3408_s21  ;;  %26 = sbr.rel (!%p24_p6) target bundleno = 10 (0xa), region = 114 }
 0x6e9   : > { %s5722_s21 = smov %s5717_s29 }
 0x6ea   :  { %2610 = vsyncpa [#allocation6], 1 }
 0x6eb   :  { %2612 = vsyncpa [#allocation6 + $0x1], 1 }
 0x6ec   :  { %2613 = vsyncpa [#allocation7], 1 }
 0x6ed   :  { %2615 = vsyncpa [#allocation7 + $0x1], 1 }

</bundles_post_ra>
